<compile_context>
chip_gen: v7x
topology: tpu7x:2x2x1
jax: 0.10.0
libtpu: 0.0.40
codegen_flags: <defaults>
</compile_context>

<pallas_src>
import math
import functools

import jax
import jax.numpy as jnp
from jax.experimental import pallas as pl
from jax.experimental.pallas import tpu as pltpu

_NEG_INF = jnp.float32(-1e30)
_WEIGHTS_PER_LAYER = 20


# ---------------------------------------------------------------------------
# Fused decoder-forward kernel (one grid step == one batch element)
# ---------------------------------------------------------------------------

def _make_decoder_kernel(num_layers, num_heads):
    NPL = _WEIGHTS_PER_LAYER

    def kernel(*refs):
        n_in = 3 + num_layers * NPL + 2
        in_refs = refs[:n_in]
        out_refs = refs[n_in:]

        x_ref, enc_ref, bias_ref = in_refs[0], in_refs[1], in_refs[2]
        final_w_ref, final_b_ref = in_refs[-2], in_refs[-1]
        seq_ref = out_refs[0]

        x_emb = x_ref[0]        # (T, D)   target_embed for this batch element
        enc = enc_ref[0]        # (Te, D)  encoder / cross-attention features
        self_bias = bias_ref[0] # (T, T)   additive causal+pad mask

        D = x_emb.shape[-1]
        H = num_heads
        dh = D // H
        scale = jnp.float32(1.0 / math.sqrt(dh))

        def layer_norm(v, g_ref, b_ref):
            mean = jnp.mean(v, axis=-1, keepdims=True)
            c = v - mean
            var = jnp.mean(c * c, axis=-1, keepdims=True)   # biased, like PyTorch
            return c * jax.lax.rsqrt(var + 1e-5) * g_ref[...] + b_ref[...]

        def mha(x_q, x_kv, qkv_w, qkv_b, out_w, out_b, attn_bias):
            # qkv_w: (3H, D, dh) ref; heads [0..H) = Q, [H..2H) = K, [2H..3H) = V
            # out_w: (H, dh, D) ref (per-head rows of the output projection)
            acc = None
            p_sum = None
            for h in range(H):
                qh = (jnp.dot(x_q, qkv_w[h],
                              preferred_element_type=jnp.float32)
                      + qkv_b[h]) * scale
                kh = (jnp.dot(x_kv, qkv_w[H + h],
                              preferred_element_type=jnp.float32)
                      + qkv_b[H + h])
                vh = (jnp.dot(x_kv, qkv_w[2 * H + h],
                              preferred_element_type=jnp.float32)
                      + qkv_b[2 * H + h])
                # scores: q @ k^T without an explicit transpose
                s = jax.lax.dot_general(qh, kh, (((1,), (1,)), ((), ())),
                                        preferred_element_type=jnp.float32)
                if attn_bias is not None:
                    s = s + attn_bias
                m = jnp.max(s, axis=-1, keepdims=True)
                e = jnp.exp(s - m)
                denom = jnp.sum(e, axis=-1, keepdims=True)
                p = e * pl.reciprocal(denom, approx=True)
                oh = jnp.dot(p, vh, preferred_element_type=jnp.float32)
                contrib = jnp.dot(oh, out_w[h],
                                  preferred_element_type=jnp.float32)
                acc = contrib if acc is None else acc + contrib
                p_sum = p if p_sum is None else p_sum + p
            out = acc + out_b[...]
            # nn.MultiheadAttention returns head-averaged attention weights
            return out, p_sum * jnp.float32(1.0 / H)

        x_last = x_emb
        for li in range(num_layers):
            lw = in_refs[3 + li * NPL: 3 + (li + 1) * NPL]
            (pre_g, pre_b,
             m1_qkv_w, m1_qkv_b, m1_out_w, m1_out_b,
             ln1_g, ln1_b,
             m2_qkv_w, m2_qkv_b, m2_out_w, m2_out_b,
             ln2_g, ln2_b,
             ffn_w1, ffn_b1, ffn_w2, ffn_b2,
             ln3_g, ln3_b) = lw

            # NOTE: reference module feeds `target_embed` (not the previous
            # layer's output) into EVERY layer -- reproduced exactly.
            residual = x_emb
            xn = layer_norm(x_emb, pre_g, pre_b)
            o1, attn1 = mha(xn, xn, m1_qkv_w, m1_qkv_b,
                            m1_out_w, m1_out_b, self_bias)
            x = residual + o1                     # dropout == identity (eval)
            residual = x
            x = layer_norm(x, ln1_g, ln1_b)
            # cross-attention: enc pad-mask is all-False in the reference,
            # so no bias tensor is built or applied.
            o2, attn2 = mha(x, enc, m2_qkv_w, m2_qkv_b,
                            m2_out_w, m2_out_b, None)
            x = o2 + residual
            residual = x
            x = layer_norm(x, ln2_g, ln2_b)
            hdn = jnp.maximum(
                jnp.dot(x, ffn_w1[...], preferred_element_type=jnp.float32)
                + ffn_b1[...], 0.0)
            ff = (jnp.dot(hdn, ffn_w2[...], preferred_element_type=jnp.float32)
                  + ffn_b2[...])
            x = layer_norm(ff + residual, ln3_g, ln3_b)

            out_refs[1 + 2 * li][0] = attn1       # (T, T)
            out_refs[2 + 2 * li][0] = attn2       # (T, Te)
            x_last = x

        # Final vocab projection (padded to a lane-dense width).
        seq_ref[0] = (jnp.dot(x_last, final_w_ref[...],
                              preferred_element_type=jnp.float32)
                      + final_b_ref[...])

    return kernel


# ---------------------------------------------------------------------------
# Glue: weight re-packing, mask construction, pallas_call wiring
# ---------------------------------------------------------------------------

def _prep_layer(lp, D, H):
    """Re-pack one layer's PyTorch-style weights into kernel-friendly arrays."""
    dh = D // H
    f32 = lambda a: jnp.asarray(a, jnp.float32)
    row = lambda v: f32(v).reshape(1, -1)

    def heads_w(w):                       # (D, D) torch (out,in) -> (H, D, dh)
        w = f32(w)
        return jnp.stack([w[h * dh:(h + 1) * dh, :].T for h in range(H)], axis=0)

    def heads_b(b):                       # (D,) -> (H, 1, dh)
        return f32(b).reshape(H, 1, dh)

    def out_heads(w):                     # (D, D) out_proj weight -> (H, dh, D)
        w = f32(w)
        return jnp.stack([w[:, h * dh:(h + 1) * dh].T for h in range(H)], axis=0)

    def qkv_pack(in_w, in_b):
        in_w, in_b = f32(in_w), f32(in_b)
        w = jnp.concatenate([heads_w(in_w[0:D]), heads_w(in_w[D:2 * D]),
                             heads_w(in_w[2 * D:3 * D])], axis=0)   # (3H, D, dh)
        b = jnp.concatenate([heads_b(in_b[0:D]), heads_b(in_b[D:2 * D]),
                             heads_b(in_b[2 * D:3 * D])], axis=0)   # (3H, 1, dh)
        return w, b

    m1_w, m1_b = qkv_pack(lp['mha1']['in_w'], lp['mha1']['in_b'])
    m2_w, m2_b = qkv_pack(lp['mha2']['in_w'], lp['mha2']['in_b'])
    return [
        row(lp['pre_norm_g']), row(lp['pre_norm_b']),
        m1_w, m1_b, out_heads(lp['mha1']['out_w']), row(lp['mha1']['out_b']),
        row(lp['ln1_g']), row(lp['ln1_b']),
        m2_w, m2_b, out_heads(lp['mha2']['out_w']), row(lp['mha2']['out_b']),
        row(lp['ln2_g']), row(lp['ln2_b']),
        f32(lp['ffn_w1']), row(lp['ffn_b1']),
        f32(lp['ffn_w2']), row(lp['ffn_b2']),
        row(lp['ln3_g']), row(lp['ln3_b']),
    ]


def decoder_forward(params, padded_targets, target_lengths, cross_attn_feats,
                    num_heads):
    B, T = padded_targets.shape
    D = params['embedding'].shape[1]
    vocab = params['final_w'].shape[0]
    Te = cross_attn_feats.shape[1]
    num_layers = len(params['layers'])

    # Masks -> additive bias (-1e30 where masked).  PadMask: pos >= length.
    idx = jnp.arange(T)
    causal = idx[None, :] > idx[:, None]                               # (T, T)
    pad = idx[None, :] >= target_lengths[:, None]                      # (B, T)
    self_bias = jnp.where(causal[None, :, :] | pad[:, None, :],
                          _NEG_INF, jnp.float32(0.0))                  # (B, T, T)

    # Embedding + positional encoding.  The reference does
    # `target_embed += positional_encoding(target_embed)` i.e. 2*emb + pe.
    emb = params['embedding'][padded_targets].astype(jnp.float32)
    pe = params['pe'][:T].astype(jnp.float32)
    target_embed = 2.0 * emb + pe[None, :, :]

    # Flatten weights for the fused kernel.
    flat_weights = []
    for lp in params['layers']:
        flat_weights += _prep_layer(lp, D, num_heads)

    # Final projection, zero-padded to a lane-dense (multiple of 128) width.
    Vp = ((vocab + 127) // 128) * 128
    fw = jnp.zeros((D, Vp), jnp.float32).at[:, :vocab].set(
        params['final_w'].T.astype(jnp.float32))
    fb = jnp.zeros((1, Vp), jnp.float32).at[:, :vocab].set(
        params['final_b'].reshape(1, -1).astype(jnp.float32))

    args = [target_embed, cross_attn_feats.astype(jnp.float32), self_bias]
    in_specs = [
        pl.BlockSpec((1, T, D), lambda b: (b, 0, 0)),
        pl.BlockSpec((1, Te, D), lambda b: (b, 0, 0)),
        pl.BlockSpec((1, T, T), lambda b: (b, 0, 0)),
    ]
    for a in flat_weights + [fw, fb]:
        a = jnp.asarray(a, jnp.float32)
        if a.ndim == 1:
            a = a.reshape(1, -1)
        args.append(a)
        in_specs.append(pl.BlockSpec(a.shape, lambda b, n=a.ndim: (0,) * n))

    out_shapes = [jax.ShapeDtypeStruct((B, T, Vp), jnp.float32)]
    out_specs = [pl.BlockSpec((1, T, Vp), lambda b: (b, 0, 0))]
    for _ in range(num_layers):
        out_shapes.append(jax.ShapeDtypeStruct((B, T, T), jnp.float32))
        out_specs.append(pl.BlockSpec((1, T, T), lambda b: (b, 0, 0)))
        out_shapes.append(jax.ShapeDtypeStruct((B, T, Te), jnp.float32))
        out_specs.append(pl.BlockSpec((1, T, Te), lambda b: (b, 0, 0)))

    outs = pl.pallas_call(
        _make_decoder_kernel(num_layers, num_heads),
        grid=(B,),
        in_specs=in_specs,
        out_specs=tuple(out_specs),
        out_shape=tuple(out_shapes),
        compiler_params=pltpu.CompilerParams(
            dimension_semantics=("parallel",)),
    )(*args)

    seq_out = outs[0][:, :, :vocab]
    running_att = {}
    for i in range(num_layers):
        running_att['layer{}_dec_self'.format(i + 1)] = outs[1 + 2 * i]
        running_att['layer{}_dec_cross'.format(i + 1)] = outs[2 + 2 * i]
    return seq_out, running_att


# ---------------------------------------------------------------------------
# Pure-JAX reference (for numerical cross-check)
# ---------------------------------------------------------------------------

def _reference_forward(params, padded_targets, target_lengths, cross, num_heads):
    B, T = padded_targets.shape
    D = params['embedding'].shape[1]
    H = num_heads
    dh = D // H

    idx = jnp.arange(T)
    causal = idx[None, :] > idx[:, None]
    pad = idx[None, :] >= target_lengths[:, None]
    bias = jnp.where(causal[None] | pad[:, None, :], _NEG_INF,
                     jnp.float32(0.0))

    def ln(x, g, b):
        m = jnp.mean(x, -1, keepdims=True)
        c = x - m
        v = jnp.mean(c * c, -1, keepdims=True)
        return c / jnp.sqrt(v + 1e-5) * g + b

    def mha(xq, xkv, p, attn_bias):
        Bq, Tq, _ = xq.shape
        Tk = xkv.shape[1]
        w_in, b_in = p['in_w'], p['in_b']
        q = xq @ w_in[:D].T + b_in[:D]
        k = xkv @ w_in[D:2 * D].T + b_in[D:2 * D]
        v = xkv @ w_in[2 * D:].T + b_in[2 * D:]
        q = q.reshape(Bq, Tq, H, dh).transpose(0, 2, 1, 3) / math.sqrt(dh)
        k = k.reshape(Bq, Tk, H, dh).transpose(0, 2, 1, 3)
        v = v.reshape(Bq, Tk, H, dh).transpose(0, 2, 1, 3)
        s = jnp.einsum('bhqd,bhkd->bhqk', q, k)
        if attn_bias is not None:
            s = s + attn_bias[:, None]
        p_attn = jax.nn.softmax(s, axis=-1)
        o = jnp.einsum('bhqk,bhkd->bhqd', p_attn, v)
        o = o.transpose(0, 2, 1, 3).reshape(Bq, Tq, D)
        return o @ p['out_w'].T + p['out_b'], jnp.mean(p_attn, axis=1)

    emb = params['embedding'][padded_targets]
    pe = params['pe'][:T]
    te = 2.0 * emb + pe[None]
    atts = {}
    x = te
    for i, lp in enumerate(params['layers']):
        residual = te
        xn = ln(te, lp['pre_norm_g'], lp['pre_norm_b'])
        o1, a1 = mha(xn, xn, lp['mha1'], bias)
        x = residual + o1
        residual = x
        x = ln(x, lp['ln1_g'], lp['ln1_b'])
        o2, a2 = mha(x, cross, lp['mha2'], None)
        x = o2 + residual
        residual = x
        x = ln(x, lp['ln2_g'], lp['ln2_b'])
        h1 = jax.nn.relu(x @ lp['ffn_w1'] + lp['ffn_b1'])
        ff = h1 @ lp['ffn_w2'] + lp['ffn_b2']
        x = ln(ff + residual, lp['ln3_g'], lp['ln3_b'])
        atts['layer{}_dec_self'.format(i + 1)] = a1
        atts['layer{}_dec_cross'.format(i + 1)] = a2
    seq = x @ params['final_w'].T + params['final_b']
    return seq, atts


# ---------------------------------------------------------------------------
# Deterministic parameter init (shapes follow the PyTorch module __init__)
# ---------------------------------------------------------------------------

def init_params(key, num_layers, d_model, num_heads, d_ff, max_len, vocab):
    def nrm(k, shape, scale=0.02):
        return scale * jax.random.normal(k, shape, dtype=jnp.float32)

    keys = jax.random.split(key, 3 + num_layers)
    params = {}
    params['embedding'] = nrm(keys[0], (vocab, d_model), 1.0)     # nn.Embedding
    params['final_w'] = nrm(keys[1], (vocab, d_model))            # nn.Linear(D, vocab)
    params['final_b'] = jnp.zeros((vocab,), jnp.float32)

    position = jnp.arange(max_len, dtype=jnp.float32)[:, None]
    div_term = jnp.exp(jnp.arange(0, d_model, 2, dtype=jnp.float32)
                       * (-math.log(10000.0) / d_model))
    pe = jnp.zeros((max_len, d_model), jnp.float32)
    pe = pe.at[:, 0::2].set(jnp.sin(position * div_term))
    pe = pe.at[:, 1::2].set(jnp.cos(position * div_term))
    params['pe'] = pe

    layers = []
    for i in range(num_layers):
        lk = jax.random.split(keys[3 + i], 8)
        lp = {
            'pre_norm_g': jnp.ones((d_model,), jnp.float32),
            'pre_norm_b': jnp.zeros((d_model,), jnp.float32),
            'ln1_g': jnp.ones((d_model,), jnp.float32),
            'ln1_b': jnp.zeros((d_model,), jnp.float32),
            'ln2_g': jnp.ones((d_model,), jnp.float32),
            'ln2_b': jnp.zeros((d_model,), jnp.float32),
            'ln3_g': jnp.ones((d_model,), jnp.float32),
            'ln3_b': jnp.zeros((d_model,), jnp.float32),
            'mha1': {'in_w': nrm(lk[0], (3 * d_model, d_model)),
                     'in_b': jnp.zeros((3 * d_model,), jnp.float32),
                     'out_w': nrm(lk[1], (d_model, d_model)),
                     'out_b': jnp.zeros((d_model,), jnp.float32)},
            'mha2': {'in_w': nrm(lk[2], (3 * d_model, d_model)),
                     'in_b': jnp.zeros((3 * d_model,), jnp.float32),
                     'out_w': nrm(lk[3], (d_model, d_model)),
                     'out_b': jnp.zeros((d_model,), jnp.float32)},
            # stored already transposed for x @ w
            'ffn_w1': nrm(lk[4], (d_model, d_ff)),
            'ffn_b1': jnp.zeros((d_ff,), jnp.float32),
            'ffn_w2': nrm(lk[5], (d_ff, d_model)),
            'ffn_b2': jnp.zeros((d_model,), jnp.float32),
        }
        layers.append(lp)
    params['layers'] = layers
    return params


# ---------------------------------------------------------------------------

if __name__ == "__main__":
    num_layers, d_model, num_heads, d_ff = 2, 32, 4, 64
    dropout, max_len, vocab = 0.1, 64, 40
    B, T, T_enc = 2, 8, 10

    key = jax.random.PRNGKey(0)
    kp, kt, kf = jax.random.split(key, 3)
    params = init_params(kp, num_layers, d_model, num_heads, d_ff, max_len, vocab)

    padded_targets = jax.random.randint(kt, (B, T), 0, vocab, dtype=jnp.int32)
    target_lengths = jnp.array([T, 5], dtype=jnp.int32)
    cross_attn_feats = jax.random.normal(kf, (B, T_enc, d_model),
                                         dtype=jnp.float32)

    fwd = jax.jit(functools.partial(decoder_forward, num_heads=num_heads))
    seq_out, running_att = fwd(params, padded_targets, target_lengths,
                               cross_attn_feats)
    jax.block_until_ready((seq_out, running_att))

    assert seq_out.shape == (B, T, vocab)
    assert running_att['layer1_dec_self'].shape == (B, T, T)
    assert running_att['layer2_dec_cross'].shape == (B, T, T_enc)
    assert bool(jnp.all(jnp.isfinite(seq_out)))

    # Numerical cross-check against a pure-JAX reference (loose tolerance:
    # approx reciprocal in the in-kernel softmax).
    ref_seq, ref_att = _reference_forward(params, padded_targets,
                                          target_lengths, cross_attn_feats,
                                          num_heads)
    assert bool(jnp.allclose(seq_out, ref_seq, rtol=2e-2, atol=2e-2))
    assert bool(jnp.allclose(running_att['layer1_dec_self'],
                             ref_att['layer1_dec_self'], rtol=2e-2, atol=2e-2))
    assert bool(jnp.allclose(running_att['layer2_dec_cross'],
                             ref_att['layer2_dec_cross'], rtol=2e-2, atol=2e-2))

    # TODO(synk): recognize_greedy_search (autoregressive decode loop) not
    # ported; only the forward pass was requested.
    print("KERNEL_OK")
</pallas_src>

<mosaic_0001>
module attributes {stable_mosaic.version = 11 : i64} {
  func.func @kernel(%arg0: i32, %arg1: memref<1x8x32xf32, #tpu.memory_space<vmem>>, %arg2: memref<1x10x32xf32, #tpu.memory_space<vmem>>, %arg3: memref<1x8x8xf32, #tpu.memory_space<vmem>>, %arg4: memref<1x32xf32, #tpu.memory_space<vmem>>, %arg5: memref<1x32xf32, #tpu.memory_space<vmem>>, %arg6: memref<12x32x8xf32, #tpu.memory_space<vmem>>, %arg7: memref<12x1x8xf32, #tpu.memory_space<vmem>>, %arg8: memref<4x8x32xf32, #tpu.memory_space<vmem>>, %arg9: memref<1x32xf32, #tpu.memory_space<vmem>>, %arg10: memref<1x32xf32, #tpu.memory_space<vmem>>, %arg11: memref<1x32xf32, #tpu.memory_space<vmem>>, %arg12: memref<12x32x8xf32, #tpu.memory_space<vmem>>, %arg13: memref<12x1x8xf32, #tpu.memory_space<vmem>>, %arg14: memref<4x8x32xf32, #tpu.memory_space<vmem>>, %arg15: memref<1x32xf32, #tpu.memory_space<vmem>>, %arg16: memref<1x32xf32, #tpu.memory_space<vmem>>, %arg17: memref<1x32xf32, #tpu.memory_space<vmem>>, %arg18: memref<32x64xf32, #tpu.memory_space<vmem>>, %arg19: memref<1x64xf32, #tpu.memory_space<vmem>>, %arg20: memref<64x32xf32, #tpu.memory_space<vmem>>, %arg21: memref<1x32xf32, #tpu.memory_space<vmem>>, %arg22: memref<1x32xf32, #tpu.memory_space<vmem>>, %arg23: memref<1x32xf32, #tpu.memory_space<vmem>>, %arg24: memref<1x32xf32, #tpu.memory_space<vmem>>, %arg25: memref<1x32xf32, #tpu.memory_space<vmem>>, %arg26: memref<12x32x8xf32, #tpu.memory_space<vmem>>, %arg27: memref<12x1x8xf32, #tpu.memory_space<vmem>>, %arg28: memref<4x8x32xf32, #tpu.memory_space<vmem>>, %arg29: memref<1x32xf32, #tpu.memory_space<vmem>>, %arg30: memref<1x32xf32, #tpu.memory_space<vmem>>, %arg31: memref<1x32xf32, #tpu.memory_space<vmem>>, %arg32: memref<12x32x8xf32, #tpu.memory_space<vmem>>, %arg33: memref<12x1x8xf32, #tpu.memory_space<vmem>>, %arg34: memref<4x8x32xf32, #tpu.memory_space<vmem>>, %arg35: memref<1x32xf32, #tpu.memory_space<vmem>>, %arg36: memref<1x32xf32, #tpu.memory_space<vmem>>, %arg37: memref<1x32xf32, #tpu.memory_space<vmem>>, %arg38: memref<32x64xf32, #tpu.memory_space<vmem>>, %arg39: memref<1x64xf32, #tpu.memory_space<vmem>>, %arg40: memref<64x32xf32, #tpu.memory_space<vmem>>, %arg41: memref<1x32xf32, #tpu.memory_space<vmem>>, %arg42: memref<1x32xf32, #tpu.memory_space<vmem>>, %arg43: memref<1x32xf32, #tpu.memory_space<vmem>>, %arg44: memref<32x128xf32, #tpu.memory_space<vmem>>, %arg45: memref<1x128xf32, #tpu.memory_space<vmem>>, %arg46: memref<1x8x128xf32, #tpu.memory_space<vmem>>, %arg47: memref<1x8x8xf32, #tpu.memory_space<vmem>>, %arg48: memref<1x8x10xf32, #tpu.memory_space<vmem>>, %arg49: memref<1x8x8xf32, #tpu.memory_space<vmem>>, %arg50: memref<1x8x10xf32, #tpu.memory_space<vmem>>) attributes {dimension_semantics = [#tpu.dimension_semantics<parallel>], iteration_bounds = array<i64: 2>, scalar_prefetch = 0 : i64, scratch_operands = 0 : i64, tpu.core_type = #tpu.core_type<tc>, window_params = [{transform_indices = @transform_0, window_bounds = array<i64: 1, 8, 32>}, {transform_indices = @transform_1, window_bounds = array<i64: 1, 10, 32>}, {transform_indices = @transform_2, window_bounds = array<i64: 1, 8, 8>}, {pipeline_mode = #tpu.pipeline_mode<synchronous>, transform_indices = @transform_3, window_bounds = array<i64: 1, 32>}, {pipeline_mode = #tpu.pipeline_mode<synchronous>, transform_indices = @transform_4, window_bounds = array<i64: 1, 32>}, {pipeline_mode = #tpu.pipeline_mode<synchronous>, transform_indices = @transform_5, window_bounds = array<i64: 12, 32, 8>}, {pipeline_mode = #tpu.pipeline_mode<synchronous>, transform_indices = @transform_6, window_bounds = array<i64: 12, 1, 8>}, {pipeline_mode = #tpu.pipeline_mode<synchronous>, transform_indices = @transform_7, window_bounds = array<i64: 4, 8, 32>}, {pipeline_mode = #tpu.pipeline_mode<synchronous>, transform_indices = @transform_8, window_bounds = array<i64: 1, 32>}, {pipeline_mode = #tpu.pipeline_mode<synchronous>, transform_indices = @transform_9, window_bounds = array<i64: 1, 32>}, {pipeline_mode = #tpu.pipeline_mode<synchronous>, transform_indices = @transform_10, window_bounds = array<i64: 1, 32>}, {pipeline_mode = #tpu.pipeline_mode<synchronous>, transform_indices = @transform_11, window_bounds = array<i64: 12, 32, 8>}, {pipeline_mode = #tpu.pipeline_mode<synchronous>, transform_indices = @transform_12, window_bounds = array<i64: 12, 1, 8>}, {pipeline_mode = #tpu.pipeline_mode<synchronous>, transform_indices = @transform_13, window_bounds = array<i64: 4, 8, 32>}, {pipeline_mode = #tpu.pipeline_mode<synchronous>, transform_indices = @transform_14, window_bounds = array<i64: 1, 32>}, {pipeline_mode = #tpu.pipeline_mode<synchronous>, transform_indices = @transform_15, window_bounds = array<i64: 1, 32>}, {pipeline_mode = #tpu.pipeline_mode<synchronous>, transform_indices = @transform_16, window_bounds = array<i64: 1, 32>}, {pipeline_mode = #tpu.pipeline_mode<synchronous>, transform_indices = @transform_17, window_bounds = array<i64: 32, 64>}, {pipeline_mode = #tpu.pipeline_mode<synchronous>, transform_indices = @transform_18, window_bounds = array<i64: 1, 64>}, {pipeline_mode = #tpu.pipeline_mode<synchronous>, transform_indices = @transform_19, window_bounds = array<i64: 64, 32>}, {pipeline_mode = #tpu.pipeline_mode<synchronous>, transform_indices = @transform_20, window_bounds = array<i64: 1, 32>}, {pipeline_mode = #tpu.pipeline_mode<synchronous>, transform_indices = @transform_21, window_bounds = array<i64: 1, 32>}, {pipeline_mode = #tpu.pipeline_mode<synchronous>, transform_indices = @transform_22, window_bounds = array<i64: 1, 32>}, {pipeline_mode = #tpu.pipeline_mode<synchronous>, transform_indices = @transform_23, window_bounds = array<i64: 1, 32>}, {pipeline_mode = #tpu.pipeline_mode<synchronous>, transform_indices = @transform_24, window_bounds = array<i64: 1, 32>}, {pipeline_mode = #tpu.pipeline_mode<synchronous>, transform_indices = @transform_25, window_bounds = array<i64: 12, 32, 8>}, {pipeline_mode = #tpu.pipeline_mode<synchronous>, transform_indices = @transform_26, window_bounds = array<i64: 12, 1, 8>}, {pipeline_mode = #tpu.pipeline_mode<synchronous>, transform_indices = @transform_27, window_bounds = array<i64: 4, 8, 32>}, {pipeline_mode = #tpu.pipeline_mode<synchronous>, transform_indices = @transform_28, window_bounds = array<i64: 1, 32>}, {pipeline_mode = #tpu.pipeline_mode<synchronous>, transform_indices = @transform_29, window_bounds = array<i64: 1, 32>}, {pipeline_mode = #tpu.pipeline_mode<synchronous>, transform_indices = @transform_30, window_bounds = array<i64: 1, 32>}, {pipeline_mode = #tpu.pipeline_mode<synchronous>, transform_indices = @transform_31, window_bounds = array<i64: 12, 32, 8>}, {pipeline_mode = #tpu.pipeline_mode<synchronous>, transform_indices = @transform_32, window_bounds = array<i64: 12, 1, 8>}, {pipeline_mode = #tpu.pipeline_mode<synchronous>, transform_indices = @transform_33, window_bounds = array<i64: 4, 8, 32>}, {pipeline_mode = #tpu.pipeline_mode<synchronous>, transform_indices = @transform_34, window_bounds = array<i64: 1, 32>}, {pipeline_mode = #tpu.pipeline_mode<synchronous>, transform_indices = @transform_35, window_bounds = array<i64: 1, 32>}, {pipeline_mode = #tpu.pipeline_mode<synchronous>, transform_indices = @transform_36, window_bounds = array<i64: 1, 32>}, {pipeline_mode = #tpu.pipeline_mode<synchronous>, transform_indices = @transform_37, window_bounds = array<i64: 32, 64>}, {pipeline_mode = #tpu.pipeline_mode<synchronous>, transform_indices = @transform_38, window_bounds = array<i64: 1, 64>}, {pipeline_mode = #tpu.pipeline_mode<synchronous>, transform_indices = @transform_39, window_bounds = array<i64: 64, 32>}, {pipeline_mode = #tpu.pipeline_mode<synchronous>, transform_indices = @transform_40, window_bounds = array<i64: 1, 32>}, {pipeline_mode = #tpu.pipeline_mode<synchronous>, transform_indices = @transform_41, window_bounds = array<i64: 1, 32>}, {pipeline_mode = #tpu.pipeline_mode<synchronous>, transform_indices = @transform_42, window_bounds = array<i64: 1, 32>}, {pipeline_mode = #tpu.pipeline_mode<synchronous>, transform_indices = @transform_43, window_bounds = array<i64: 32, 128>}, {pipeline_mode = #tpu.pipeline_mode<synchronous>, transform_indices = @transform_44, window_bounds = array<i64: 1, 128>}, {transform_indices = @transform_45, window_bounds = array<i64: 1, 8, 128>}, {transform_indices = @transform_46, window_bounds = array<i64: 1, 8, 8>}, {transform_indices = @transform_47, window_bounds = array<i64: 1, 8, 10>}, {transform_indices = @transform_48, window_bounds = array<i64: 1, 8, 8>}, {transform_indices = @transform_49, window_bounds = array<i64: 1, 8, 10>}]} {
    %c0 = arith.constant 0 : index
    %c0_0 = arith.constant 0 : index
    %c0_1 = arith.constant 0 : index
    %0 = vector.load %arg1[%c0, %c0_0, %c0_1] : memref<1x8x32xf32, #tpu.memory_space<vmem>>, vector<1x8x32xf32>
    %1 = vector.shape_cast %0 : vector<1x8x32xf32> to vector<8x32xf32>
    %c0_2 = arith.constant 0 : index
    %c0_3 = arith.constant 0 : index
    %c0_4 = arith.constant 0 : index
    %2 = vector.load %arg2[%c0_2, %c0_3, %c0_4] : memref<1x10x32xf32, #tpu.memory_space<vmem>>, vector<1x10x32xf32>
    %3 = vector.shape_cast %2 : vector<1x10x32xf32> to vector<10x32xf32>
    %c0_5 = arith.constant 0 : index
    %c0_6 = arith.constant 0 : index
    %c0_7 = arith.constant 0 : index
    %4 = vector.load %arg3[%c0_5, %c0_6, %c0_7] : memref<1x8x8xf32, #tpu.memory_space<vmem>>, vector<1x8x8xf32>
    %5 = vector.shape_cast %4 : vector<1x8x8xf32> to vector<8x8xf32>
    %cst = arith.constant dense<0.000000e+00> : vector<8xf32>
    %6 = vector.multi_reduction <add>, %1, %cst [1] : vector<8x32xf32> to vector<8xf32>
    %7 = vector.shape_cast %6 : vector<8xf32> to vector<8x1xf32>
    %cst_8 = arith.constant 3.200000e+01 : f32
    %8 = vector.broadcast %cst_8 : f32 to vector<8x1xf32>
    %9 = arith.divf %7, %8 : vector<8x1xf32>
    %10 = vector.broadcast %9 : vector<8x1xf32> to vector<8x32xf32>
    %11 = arith.subf %1, %10 : vector<8x32xf32>
    %12 = arith.mulf %11, %11 : vector<8x32xf32>
    %cst_9 = arith.constant dense<0.000000e+00> : vector<8xf32>
    %13 = vector.multi_reduction <add>, %12, %cst_9 [1] : vector<8x32xf32> to vector<8xf32>
    %14 = vector.shape_cast %13 : vector<8xf32> to vector<8x1xf32>
    %cst_10 = arith.constant 3.200000e+01 : f32
    %15 = vector.broadcast %cst_10 : f32 to vector<8x1xf32>
    %16 = arith.divf %14, %15 : vector<8x1xf32>
    %cst_11 = arith.constant 9.99999974E-6 : f32
    %17 = vector.broadcast %cst_11 : f32 to vector<8x1xf32>
    %18 = arith.addf %16, %17 : vector<8x1xf32>
    %19 = math.rsqrt %18 : vector<8x1xf32>
    %20 = vector.broadcast %19 : vector<8x1xf32> to vector<8x32xf32>
    %21 = arith.mulf %11, %20 : vector<8x32xf32>
    %c0_12 = arith.constant 0 : index
    %c0_13 = arith.constant 0 : index
    %22 = vector.load %arg4[%c0_12, %c0_13] : memref<1x32xf32, #tpu.memory_space<vmem>>, vector<1x32xf32>
    %23 = vector.broadcast %22 : vector<1x32xf32> to vector<8x32xf32>
    %24 = arith.mulf %21, %23 : vector<8x32xf32>
    %c0_14 = arith.constant 0 : index
    %c0_15 = arith.constant 0 : index
    %25 = vector.load %arg5[%c0_14, %c0_15] : memref<1x32xf32, #tpu.memory_space<vmem>>, vector<1x32xf32>
    %26 = vector.broadcast %25 : vector<1x32xf32> to vector<8x32xf32>
    %27 = arith.addf %24, %26 : vector<8x32xf32>
    %c0_16 = arith.constant 0 : index
    %c0_17 = arith.constant 0 : index
    %c0_18 = arith.constant 0 : index
    %28 = vector.load %arg6[%c0_16, %c0_17, %c0_18] : memref<12x32x8xf32, #tpu.memory_space<vmem>>, vector<1x32x8xf32>
    %29 = vector.shape_cast %28 : vector<1x32x8xf32> to vector<32x8xf32>
    %cst_19 = arith.constant dense<0.000000e+00> : vector<8x8xf32>
    %30 = tpu.matmul %27, %29, %cst_19 {dimension_numbers = #tpu.dot_dimension_numbers<[1], [0], [0], [1], [0, 0, 1, 1], [], []>} : vector<8x32xf32>, vector<32x8xf32>, vector<8x8xf32> -> vector<8x8xf32>
    %c0_20 = arith.constant 0 : index
    %c0_21 = arith.constant 0 : index
    %c0_22 = arith.constant 0 : index
    %31 = vector.load %arg7[%c0_20, %c0_21, %c0_22] : memref<12x1x8xf32, #tpu.memory_space<vmem>>, vector<1x1x8xf32>
    %32 = vector.shape_cast %31 : vector<1x1x8xf32> to vector<1x8xf32>
    %33 = vector.broadcast %32 : vector<1x8xf32> to vector<8x8xf32>
    %34 = arith.addf %30, %33 : vector<8x8xf32>
    %cst_23 = arith.constant 0.353553385 : f32
    %35 = vector.broadcast %cst_23 : f32 to vector<8x8xf32>
    %36 = arith.mulf %34, %35 : vector<8x8xf32>
    %c4 = arith.constant 4 : index
    %c0_24 = arith.constant 0 : index
    %c0_25 = arith.constant 0 : index
    %37 = vector.load %arg6[%c4, %c0_24, %c0_25] : memref<12x32x8xf32, #tpu.memory_space<vmem>>, vector<1x32x8xf32>
    %38 = vector.shape_cast %37 : vector<1x32x8xf32> to vector<32x8xf32>
    %cst_26 = arith.constant dense<0.000000e+00> : vector<8x8xf32>
    %39 = tpu.matmul %27, %38, %cst_26 {dimension_numbers = #tpu.dot_dimension_numbers<[1], [0], [0], [1], [0, 0, 1, 1], [], []>} : vector<8x32xf32>, vector<32x8xf32>, vector<8x8xf32> -> vector<8x8xf32>
    %c4_27 = arith.constant 4 : index
    %c0_28 = arith.constant 0 : index
    %c0_29 = arith.constant 0 : index
    %40 = vector.load %arg7[%c4_27, %c0_28, %c0_29] : memref<12x1x8xf32, #tpu.memory_space<vmem>>, vector<1x1x8xf32>
    %41 = vector.shape_cast %40 : vector<1x1x8xf32> to vector<1x8xf32>
    %42 = vector.broadcast %41 : vector<1x8xf32> to vector<8x8xf32>
    %43 = arith.addf %39, %42 : vector<8x8xf32>
    %c8 = arith.constant 8 : index
    %c0_30 = arith.constant 0 : index
    %c0_31 = arith.constant 0 : index
    %44 = vector.load %arg6[%c8, %c0_30, %c0_31] : memref<12x32x8xf32, #tpu.memory_space<vmem>>, vector<1x32x8xf32>
    %45 = vector.shape_cast %44 : vector<1x32x8xf32> to vector<32x8xf32>
    %cst_32 = arith.constant dense<0.000000e+00> : vector<8x8xf32>
    %46 = tpu.matmul %27, %45, %cst_32 {dimension_numbers = #tpu.dot_dimension_numbers<[1], [0], [0], [1], [0, 0, 1, 1], [], []>} : vector<8x32xf32>, vector<32x8xf32>, vector<8x8xf32> -> vector<8x8xf32>
    %c8_33 = arith.constant 8 : index
    %c0_34 = arith.constant 0 : index
    %c0_35 = arith.constant 0 : index
    %47 = vector.load %arg7[%c8_33, %c0_34, %c0_35] : memref<12x1x8xf32, #tpu.memory_space<vmem>>, vector<1x1x8xf32>
    %48 = vector.shape_cast %47 : vector<1x1x8xf32> to vector<1x8xf32>
    %49 = vector.broadcast %48 : vector<1x8xf32> to vector<8x8xf32>
    %50 = arith.addf %46, %49 : vector<8x8xf32>
    %cst_36 = arith.constant dense<0.000000e+00> : vector<8x8xf32>
    %51 = tpu.matmul %36, %43, %cst_36 {dimension_numbers = #tpu.dot_dimension_numbers<[1], [1], [0], [0], [0, 0, 1, 0], [], []>} : vector<8x8xf32>, vector<8x8xf32>, vector<8x8xf32> -> vector<8x8xf32>
    %52 = arith.addf %51, %5 : vector<8x8xf32>
    %cst_37 = arith.constant dense<0xFF800000> : vector<8xf32>
    %53 = vector.multi_reduction <maximumf>, %52, %cst_37 [1] : vector<8x8xf32> to vector<8xf32>
    %54 = vector.shape_cast %53 : vector<8xf32> to vector<8x1xf32>
    %55 = vector.broadcast %54 : vector<8x1xf32> to vector<8x8xf32>
    %56 = arith.subf %52, %55 : vector<8x8xf32>
    %57 = math.exp %56 : vector<8x8xf32>
    %cst_38 = arith.constant dense<0.000000e+00> : vector<8xf32>
    %58 = vector.multi_reduction <add>, %57, %cst_38 [1] : vector<8x8xf32> to vector<8xf32>
    %59 = vector.shape_cast %58 : vector<8xf32> to vector<8x1xf32>
    %60 = tpu.reciprocal %59 {approx = true} : vector<8x1xf32> -> vector<8x1xf32>
    %61 = vector.broadcast %60 : vector<8x1xf32> to vector<8x8xf32>
    %62 = arith.mulf %57, %61 : vector<8x8xf32>
    %cst_39 = arith.constant dense<0.000000e+00> : vector<8x8xf32>
    %63 = tpu.matmul %62, %50, %cst_39 {dimension_numbers = #tpu.dot_dimension_numbers<[1], [0], [0], [1], [0, 0, 1, 1], [], []>} : vector<8x8xf32>, vector<8x8xf32>, vector<8x8xf32> -> vector<8x8xf32>
    %c0_40 = arith.constant 0 : index
    %c0_41 = arith.constant 0 : index
    %c0_42 = arith.constant 0 : index
    %64 = vector.load %arg8[%c0_40, %c0_41, %c0_42] : memref<4x8x32xf32, #tpu.memory_space<vmem>>, vector<1x8x32xf32>
    %65 = vector.shape_cast %64 : vector<1x8x32xf32> to vector<8x32xf32>
    %cst_43 = arith.constant dense<0.000000e+00> : vector<8x32xf32>
    %66 = tpu.matmul %63, %65, %cst_43 {dimension_numbers = #tpu.dot_dimension_numbers<[1], [0], [0], [1], [0, 0, 1, 1], [], []>} : vector<8x8xf32>, vector<8x32xf32>, vector<8x32xf32> -> vector<8x32xf32>
    %c1 = arith.constant 1 : index
    %c0_44 = arith.constant 0 : index
    %c0_45 = arith.constant 0 : index
    %67 = vector.load %arg6[%c1, %c0_44, %c0_45] : memref<12x32x8xf32, #tpu.memory_space<vmem>>, vector<1x32x8xf32>
    %68 = vector.shape_cast %67 : vector<1x32x8xf32> to vector<32x8xf32>
    %cst_46 = arith.constant dense<0.000000e+00> : vector<8x8xf32>
    %69 = tpu.matmul %27, %68, %cst_46 {dimension_numbers = #tpu.dot_dimension_numbers<[1], [0], [0], [1], [0, 0, 1, 1], [], []>} : vector<8x32xf32>, vector<32x8xf32>, vector<8x8xf32> -> vector<8x8xf32>
    %c1_47 = arith.constant 1 : index
    %c0_48 = arith.constant 0 : index
    %c0_49 = arith.constant 0 : index
    %70 = vector.load %arg7[%c1_47, %c0_48, %c0_49] : memref<12x1x8xf32, #tpu.memory_space<vmem>>, vector<1x1x8xf32>
    %71 = vector.shape_cast %70 : vector<1x1x8xf32> to vector<1x8xf32>
    %72 = vector.broadcast %71 : vector<1x8xf32> to vector<8x8xf32>
    %73 = arith.addf %69, %72 : vector<8x8xf32>
    %cst_50 = arith.constant 0.353553385 : f32
    %74 = vector.broadcast %cst_50 : f32 to vector<8x8xf32>
    %75 = arith.mulf %73, %74 : vector<8x8xf32>
    %c5 = arith.constant 5 : index
    %c0_51 = arith.constant 0 : index
    %c0_52 = arith.constant 0 : index
    %76 = vector.load %arg6[%c5, %c0_51, %c0_52] : memref<12x32x8xf32, #tpu.memory_space<vmem>>, vector<1x32x8xf32>
    %77 = vector.shape_cast %76 : vector<1x32x8xf32> to vector<32x8xf32>
    %cst_53 = arith.constant dense<0.000000e+00> : vector<8x8xf32>
    %78 = tpu.matmul %27, %77, %cst_53 {dimension_numbers = #tpu.dot_dimension_numbers<[1], [0], [0], [1], [0, 0, 1, 1], [], []>} : vector<8x32xf32>, vector<32x8xf32>, vector<8x8xf32> -> vector<8x8xf32>
    %c5_54 = arith.constant 5 : index
    %c0_55 = arith.constant 0 : index
    %c0_56 = arith.constant 0 : index
    %79 = vector.load %arg7[%c5_54, %c0_55, %c0_56] : memref<12x1x8xf32, #tpu.memory_space<vmem>>, vector<1x1x8xf32>
    %80 = vector.shape_cast %79 : vector<1x1x8xf32> to vector<1x8xf32>
    %81 = vector.broadcast %80 : vector<1x8xf32> to vector<8x8xf32>
    %82 = arith.addf %78, %81 : vector<8x8xf32>
    %c9 = arith.constant 9 : index
    %c0_57 = arith.constant 0 : index
    %c0_58 = arith.constant 0 : index
    %83 = vector.load %arg6[%c9, %c0_57, %c0_58] : memref<12x32x8xf32, #tpu.memory_space<vmem>>, vector<1x32x8xf32>
    %84 = vector.shape_cast %83 : vector<1x32x8xf32> to vector<32x8xf32>
    %cst_59 = arith.constant dense<0.000000e+00> : vector<8x8xf32>
    %85 = tpu.matmul %27, %84, %cst_59 {dimension_numbers = #tpu.dot_dimension_numbers<[1], [0], [0], [1], [0, 0, 1, 1], [], []>} : vector<8x32xf32>, vector<32x8xf32>, vector<8x8xf32> -> vector<8x8xf32>
    %c9_60 = arith.constant 9 : index
    %c0_61 = arith.constant 0 : index
    %c0_62 = arith.constant 0 : index
    %86 = vector.load %arg7[%c9_60, %c0_61, %c0_62] : memref<12x1x8xf32, #tpu.memory_space<vmem>>, vector<1x1x8xf32>
    %87 = vector.shape_cast %86 : vector<1x1x8xf32> to vector<1x8xf32>
    %88 = vector.broadcast %87 : vector<1x8xf32> to vector<8x8xf32>
    %89 = arith.addf %85, %88 : vector<8x8xf32>
    %cst_63 = arith.constant dense<0.000000e+00> : vector<8x8xf32>
    %90 = tpu.matmul %75, %82, %cst_63 {dimension_numbers = #tpu.dot_dimension_numbers<[1], [1], [0], [0], [0, 0, 1, 0], [], []>} : vector<8x8xf32>, vector<8x8xf32>, vector<8x8xf32> -> vector<8x8xf32>
    %91 = arith.addf %90, %5 : vector<8x8xf32>
    %cst_64 = arith.constant dense<0xFF800000> : vector<8xf32>
    %92 = vector.multi_reduction <maximumf>, %91, %cst_64 [1] : vector<8x8xf32> to vector<8xf32>
    %93 = vector.shape_cast %92 : vector<8xf32> to vector<8x1xf32>
    %94 = vector.broadcast %93 : vector<8x1xf32> to vector<8x8xf32>
    %95 = arith.subf %91, %94 : vector<8x8xf32>
    %96 = math.exp %95 : vector<8x8xf32>
    %cst_65 = arith.constant dense<0.000000e+00> : vector<8xf32>
    %97 = vector.multi_reduction <add>, %96, %cst_65 [1] : vector<8x8xf32> to vector<8xf32>
    %98 = vector.shape_cast %97 : vector<8xf32> to vector<8x1xf32>
    %99 = tpu.reciprocal %98 {approx = true} : vector<8x1xf32> -> vector<8x1xf32>
    %100 = vector.broadcast %99 : vector<8x1xf32> to vector<8x8xf32>
    %101 = arith.mulf %96, %100 : vector<8x8xf32>
    %cst_66 = arith.constant dense<0.000000e+00> : vector<8x8xf32>
    %102 = tpu.matmul %101, %89, %cst_66 {dimension_numbers = #tpu.dot_dimension_numbers<[1], [0], [0], [1], [0, 0, 1, 1], [], []>} : vector<8x8xf32>, vector<8x8xf32>, vector<8x8xf32> -> vector<8x8xf32>
    %c1_67 = arith.constant 1 : index
    %c0_68 = arith.constant 0 : index
    %c0_69 = arith.constant 0 : index
    %103 = vector.load %arg8[%c1_67, %c0_68, %c0_69] : memref<4x8x32xf32, #tpu.memory_space<vmem>>, vector<1x8x32xf32>
    %104 = vector.shape_cast %103 : vector<1x8x32xf32> to vector<8x32xf32>
    %cst_70 = arith.constant dense<0.000000e+00> : vector<8x32xf32>
    %105 = tpu.matmul %102, %104, %cst_70 {dimension_numbers = #tpu.dot_dimension_numbers<[1], [0], [0], [1], [0, 0, 1, 1], [], []>} : vector<8x8xf32>, vector<8x32xf32>, vector<8x32xf32> -> vector<8x32xf32>
    %106 = arith.addf %66, %105 : vector<8x32xf32>
    %107 = arith.addf %62, %101 : vector<8x8xf32>
    %c2 = arith.constant 2 : index
    %c0_71 = arith.constant 0 : index
    %c0_72 = arith.constant 0 : index
    %108 = vector.load %arg6[%c2, %c0_71, %c0_72] : memref<12x32x8xf32, #tpu.memory_space<vmem>>, vector<1x32x8xf32>
    %109 = vector.shape_cast %108 : vector<1x32x8xf32> to vector<32x8xf32>
    %cst_73 = arith.constant dense<0.000000e+00> : vector<8x8xf32>
    %110 = tpu.matmul %27, %109, %cst_73 {dimension_numbers = #tpu.dot_dimension_numbers<[1], [0], [0], [1], [0, 0, 1, 1], [], []>} : vector<8x32xf32>, vector<32x8xf32>, vector<8x8xf32> -> vector<8x8xf32>
    %c2_74 = arith.constant 2 : index
    %c0_75 = arith.constant 0 : index
    %c0_76 = arith.constant 0 : index
    %111 = vector.load %arg7[%c2_74, %c0_75, %c0_76] : memref<12x1x8xf32, #tpu.memory_space<vmem>>, vector<1x1x8xf32>
    %112 = vector.shape_cast %111 : vector<1x1x8xf32> to vector<1x8xf32>
    %113 = vector.broadcast %112 : vector<1x8xf32> to vector<8x8xf32>
    %114 = arith.addf %110, %113 : vector<8x8xf32>
    %cst_77 = arith.constant 0.353553385 : f32
    %115 = vector.broadcast %cst_77 : f32 to vector<8x8xf32>
    %116 = arith.mulf %114, %115 : vector<8x8xf32>
    %c6 = arith.constant 6 : index
    %c0_78 = arith.constant 0 : index
    %c0_79 = arith.constant 0 : index
    %117 = vector.load %arg6[%c6, %c0_78, %c0_79] : memref<12x32x8xf32, #tpu.memory_space<vmem>>, vector<1x32x8xf32>
    %118 = vector.shape_cast %117 : vector<1x32x8xf32> to vector<32x8xf32>
    %cst_80 = arith.constant dense<0.000000e+00> : vector<8x8xf32>
    %119 = tpu.matmul %27, %118, %cst_80 {dimension_numbers = #tpu.dot_dimension_numbers<[1], [0], [0], [1], [0, 0, 1, 1], [], []>} : vector<8x32xf32>, vector<32x8xf32>, vector<8x8xf32> -> vector<8x8xf32>
    %c6_81 = arith.constant 6 : index
    %c0_82 = arith.constant 0 : index
    %c0_83 = arith.constant 0 : index
    %120 = vector.load %arg7[%c6_81, %c0_82, %c0_83] : memref<12x1x8xf32, #tpu.memory_space<vmem>>, vector<1x1x8xf32>
    %121 = vector.shape_cast %120 : vector<1x1x8xf32> to vector<1x8xf32>
    %122 = vector.broadcast %121 : vector<1x8xf32> to vector<8x8xf32>
    %123 = arith.addf %119, %122 : vector<8x8xf32>
    %c10 = arith.constant 10 : index
    %c0_84 = arith.constant 0 : index
    %c0_85 = arith.constant 0 : index
    %124 = vector.load %arg6[%c10, %c0_84, %c0_85] : memref<12x32x8xf32, #tpu.memory_space<vmem>>, vector<1x32x8xf32>
    %125 = vector.shape_cast %124 : vector<1x32x8xf32> to vector<32x8xf32>
    %cst_86 = arith.constant dense<0.000000e+00> : vector<8x8xf32>
    %126 = tpu.matmul %27, %125, %cst_86 {dimension_numbers = #tpu.dot_dimension_numbers<[1], [0], [0], [1], [0, 0, 1, 1], [], []>} : vector<8x32xf32>, vector<32x8xf32>, vector<8x8xf32> -> vector<8x8xf32>
    %c10_87 = arith.constant 10 : index
    %c0_88 = arith.constant 0 : index
    %c0_89 = arith.constant 0 : index
    %127 = vector.load %arg7[%c10_87, %c0_88, %c0_89] : memref<12x1x8xf32, #tpu.memory_space<vmem>>, vector<1x1x8xf32>
    %128 = vector.shape_cast %127 : vector<1x1x8xf32> to vector<1x8xf32>
    %129 = vector.broadcast %128 : vector<1x8xf32> to vector<8x8xf32>
    %130 = arith.addf %126, %129 : vector<8x8xf32>
    %cst_90 = arith.constant dense<0.000000e+00> : vector<8x8xf32>
    %131 = tpu.matmul %116, %123, %cst_90 {dimension_numbers = #tpu.dot_dimension_numbers<[1], [1], [0], [0], [0, 0, 1, 0], [], []>} : vector<8x8xf32>, vector<8x8xf32>, vector<8x8xf32> -> vector<8x8xf32>
    %132 = arith.addf %131, %5 : vector<8x8xf32>
    %cst_91 = arith.constant dense<0xFF800000> : vector<8xf32>
    %133 = vector.multi_reduction <maximumf>, %132, %cst_91 [1] : vector<8x8xf32> to vector<8xf32>
    %134 = vector.shape_cast %133 : vector<8xf32> to vector<8x1xf32>
    %135 = vector.broadcast %134 : vector<8x1xf32> to vector<8x8xf32>
    %136 = arith.subf %132, %135 : vector<8x8xf32>
    %137 = math.exp %136 : vector<8x8xf32>
    %cst_92 = arith.constant dense<0.000000e+00> : vector<8xf32>
    %138 = vector.multi_reduction <add>, %137, %cst_92 [1] : vector<8x8xf32> to vector<8xf32>
    %139 = vector.shape_cast %138 : vector<8xf32> to vector<8x1xf32>
    %140 = tpu.reciprocal %139 {approx = true} : vector<8x1xf32> -> vector<8x1xf32>
    %141 = vector.broadcast %140 : vector<8x1xf32> to vector<8x8xf32>
    %142 = arith.mulf %137, %141 : vector<8x8xf32>
    %cst_93 = arith.constant dense<0.000000e+00> : vector<8x8xf32>
    %143 = tpu.matmul %142, %130, %cst_93 {dimension_numbers = #tpu.dot_dimension_numbers<[1], [0], [0], [1], [0, 0, 1, 1], [], []>} : vector<8x8xf32>, vector<8x8xf32>, vector<8x8xf32> -> vector<8x8xf32>
    %c2_94 = arith.constant 2 : index
    %c0_95 = arith.constant 0 : index
    %c0_96 = arith.constant 0 : index
    %144 = vector.load %arg8[%c2_94, %c0_95, %c0_96] : memref<4x8x32xf32, #tpu.memory_space<vmem>>, vector<1x8x32xf32>
    %145 = vector.shape_cast %144 : vector<1x8x32xf32> to vector<8x32xf32>
    %cst_97 = arith.constant dense<0.000000e+00> : vector<8x32xf32>
    %146 = tpu.matmul %143, %145, %cst_97 {dimension_numbers = #tpu.dot_dimension_numbers<[1], [0], [0], [1], [0, 0, 1, 1], [], []>} : vector<8x8xf32>, vector<8x32xf32>, vector<8x32xf32> -> vector<8x32xf32>
    %147 = arith.addf %106, %146 : vector<8x32xf32>
    %148 = arith.addf %107, %142 : vector<8x8xf32>
    %c3 = arith.constant 3 : index
    %c0_98 = arith.constant 0 : index
    %c0_99 = arith.constant 0 : index
    %149 = vector.load %arg6[%c3, %c0_98, %c0_99] : memref<12x32x8xf32, #tpu.memory_space<vmem>>, vector<1x32x8xf32>
    %150 = vector.shape_cast %149 : vector<1x32x8xf32> to vector<32x8xf32>
    %cst_100 = arith.constant dense<0.000000e+00> : vector<8x8xf32>
    %151 = tpu.matmul %27, %150, %cst_100 {dimension_numbers = #tpu.dot_dimension_numbers<[1], [0], [0], [1], [0, 0, 1, 1], [], []>} : vector<8x32xf32>, vector<32x8xf32>, vector<8x8xf32> -> vector<8x8xf32>
    %c3_101 = arith.constant 3 : index
    %c0_102 = arith.constant 0 : index
    %c0_103 = arith.constant 0 : index
    %152 = vector.load %arg7[%c3_101, %c0_102, %c0_103] : memref<12x1x8xf32, #tpu.memory_space<vmem>>, vector<1x1x8xf32>
    %153 = vector.shape_cast %152 : vector<1x1x8xf32> to vector<1x8xf32>
    %154 = vector.broadcast %153 : vector<1x8xf32> to vector<8x8xf32>
    %155 = arith.addf %151, %154 : vector<8x8xf32>
    %cst_104 = arith.constant 0.353553385 : f32
    %156 = vector.broadcast %cst_104 : f32 to vector<8x8xf32>
    %157 = arith.mulf %155, %156 : vector<8x8xf32>
    %c7 = arith.constant 7 : index
    %c0_105 = arith.constant 0 : index
    %c0_106 = arith.constant 0 : index
    %158 = vector.load %arg6[%c7, %c0_105, %c0_106] : memref<12x32x8xf32, #tpu.memory_space<vmem>>, vector<1x32x8xf32>
    %159 = vector.shape_cast %158 : vector<1x32x8xf32> to vector<32x8xf32>
    %cst_107 = arith.constant dense<0.000000e+00> : vector<8x8xf32>
    %160 = tpu.matmul %27, %159, %cst_107 {dimension_numbers = #tpu.dot_dimension_numbers<[1], [0], [0], [1], [0, 0, 1, 1], [], []>} : vector<8x32xf32>, vector<32x8xf32>, vector<8x8xf32> -> vector<8x8xf32>
    %c7_108 = arith.constant 7 : index
    %c0_109 = arith.constant 0 : index
    %c0_110 = arith.constant 0 : index
    %161 = vector.load %arg7[%c7_108, %c0_109, %c0_110] : memref<12x1x8xf32, #tpu.memory_space<vmem>>, vector<1x1x8xf32>
    %162 = vector.shape_cast %161 : vector<1x1x8xf32> to vector<1x8xf32>
    %163 = vector.broadcast %162 : vector<1x8xf32> to vector<8x8xf32>
    %164 = arith.addf %160, %163 : vector<8x8xf32>
    %c11 = arith.constant 11 : index
    %c0_111 = arith.constant 0 : index
    %c0_112 = arith.constant 0 : index
    %165 = vector.load %arg6[%c11, %c0_111, %c0_112] : memref<12x32x8xf32, #tpu.memory_space<vmem>>, vector<1x32x8xf32>
    %166 = vector.shape_cast %165 : vector<1x32x8xf32> to vector<32x8xf32>
    %cst_113 = arith.constant dense<0.000000e+00> : vector<8x8xf32>
    %167 = tpu.matmul %27, %166, %cst_113 {dimension_numbers = #tpu.dot_dimension_numbers<[1], [0], [0], [1], [0, 0, 1, 1], [], []>} : vector<8x32xf32>, vector<32x8xf32>, vector<8x8xf32> -> vector<8x8xf32>
    %c11_114 = arith.constant 11 : index
    %c0_115 = arith.constant 0 : index
    %c0_116 = arith.constant 0 : index
    %168 = vector.load %arg7[%c11_114, %c0_115, %c0_116] : memref<12x1x8xf32, #tpu.memory_space<vmem>>, vector<1x1x8xf32>
    %169 = vector.shape_cast %168 : vector<1x1x8xf32> to vector<1x8xf32>
    %170 = vector.broadcast %169 : vector<1x8xf32> to vector<8x8xf32>
    %171 = arith.addf %167, %170 : vector<8x8xf32>
    %cst_117 = arith.constant dense<0.000000e+00> : vector<8x8xf32>
    %172 = tpu.matmul %157, %164, %cst_117 {dimension_numbers = #tpu.dot_dimension_numbers<[1], [1], [0], [0], [0, 0, 1, 0], [], []>} : vector<8x8xf32>, vector<8x8xf32>, vector<8x8xf32> -> vector<8x8xf32>
    %173 = arith.addf %172, %5 : vector<8x8xf32>
    %cst_118 = arith.constant dense<0xFF800000> : vector<8xf32>
    %174 = vector.multi_reduction <maximumf>, %173, %cst_118 [1] : vector<8x8xf32> to vector<8xf32>
    %175 = vector.shape_cast %174 : vector<8xf32> to vector<8x1xf32>
    %176 = vector.broadcast %175 : vector<8x1xf32> to vector<8x8xf32>
    %177 = arith.subf %173, %176 : vector<8x8xf32>
    %178 = math.exp %177 : vector<8x8xf32>
    %cst_119 = arith.constant dense<0.000000e+00> : vector<8xf32>
    %179 = vector.multi_reduction <add>, %178, %cst_119 [1] : vector<8x8xf32> to vector<8xf32>
    %180 = vector.shape_cast %179 : vector<8xf32> to vector<8x1xf32>
    %181 = tpu.reciprocal %180 {approx = true} : vector<8x1xf32> -> vector<8x1xf32>
    %182 = vector.broadcast %181 : vector<8x1xf32> to vector<8x8xf32>
    %183 = arith.mulf %178, %182 : vector<8x8xf32>
    %cst_120 = arith.constant dense<0.000000e+00> : vector<8x8xf32>
    %184 = tpu.matmul %183, %171, %cst_120 {dimension_numbers = #tpu.dot_dimension_numbers<[1], [0], [0], [1], [0, 0, 1, 1], [], []>} : vector<8x8xf32>, vector<8x8xf32>, vector<8x8xf32> -> vector<8x8xf32>
    %c3_121 = arith.constant 3 : index
    %c0_122 = arith.constant 0 : index
    %c0_123 = arith.constant 0 : index
    %185 = vector.load %arg8[%c3_121, %c0_122, %c0_123] : memref<4x8x32xf32, #tpu.memory_space<vmem>>, vector<1x8x32xf32>
    %186 = vector.shape_cast %185 : vector<1x8x32xf32> to vector<8x32xf32>
    %cst_124 = arith.constant dense<0.000000e+00> : vector<8x32xf32>
    %187 = tpu.matmul %184, %186, %cst_124 {dimension_numbers = #tpu.dot_dimension_numbers<[1], [0], [0], [1], [0, 0, 1, 1], [], []>} : vector<8x8xf32>, vector<8x32xf32>, vector<8x32xf32> -> vector<8x32xf32>
    %188 = arith.addf %147, %187 : vector<8x32xf32>
    %189 = arith.addf %148, %183 : vector<8x8xf32>
    %c0_125 = arith.constant 0 : index
    %c0_126 = arith.constant 0 : index
    %190 = vector.load %arg9[%c0_125, %c0_126] : memref<1x32xf32, #tpu.memory_space<vmem>>, vector<1x32xf32>
    %191 = vector.broadcast %190 : vector<1x32xf32> to vector<8x32xf32>
    %192 = arith.addf %188, %191 : vector<8x32xf32>
    %cst_127 = arith.constant 2.500000e-01 : f32
    %193 = vector.broadcast %cst_127 : f32 to vector<8x8xf32>
    %194 = arith.mulf %189, %193 : vector<8x8xf32>
    %195 = arith.addf %1, %192 : vector<8x32xf32>
    %cst_128 = arith.constant dense<0.000000e+00> : vector<8xf32>
    %196 = vector.multi_reduction <add>, %195, %cst_128 [1] : vector<8x32xf32> to vector<8xf32>
    %197 = vector.shape_cast %196 : vector<8xf32> to vector<8x1xf32>
    %cst_129 = arith.constant 3.200000e+01 : f32
    %198 = vector.broadcast %cst_129 : f32 to vector<8x1xf32>
    %199 = arith.divf %197, %198 : vector<8x1xf32>
    %200 = vector.broadcast %199 : vector<8x1xf32> to vector<8x32xf32>
    %201 = arith.subf %195, %200 : vector<8x32xf32>
    %202 = arith.mulf %201, %201 : vector<8x32xf32>
    %cst_130 = arith.constant dense<0.000000e+00> : vector<8xf32>
    %203 = vector.multi_reduction <add>, %202, %cst_130 [1] : vector<8x32xf32> to vector<8xf32>
    %204 = vector.shape_cast %203 : vector<8xf32> to vector<8x1xf32>
    %cst_131 = arith.constant 3.200000e+01 : f32
    %205 = vector.broadcast %cst_131 : f32 to vector<8x1xf32>
    %206 = arith.divf %204, %205 : vector<8x1xf32>
    %cst_132 = arith.constant 9.99999974E-6 : f32
    %207 = vector.broadcast %cst_132 : f32 to vector<8x1xf32>
    %208 = arith.addf %206, %207 : vector<8x1xf32>
    %209 = math.rsqrt %208 : vector<8x1xf32>
    %210 = vector.broadcast %209 : vector<8x1xf32> to vector<8x32xf32>
    %211 = arith.mulf %201, %210 : vector<8x32xf32>
    %c0_133 = arith.constant 0 : index
    %c0_134 = arith.constant 0 : index
    %212 = vector.load %arg10[%c0_133, %c0_134] : memref<1x32xf32, #tpu.memory_space<vmem>>, vector<1x32xf32>
    %213 = vector.broadcast %212 : vector<1x32xf32> to vector<8x32xf32>
    %214 = arith.mulf %211, %213 : vector<8x32xf32>
    %c0_135 = arith.constant 0 : index
    %c0_136 = arith.constant 0 : index
    %215 = vector.load %arg11[%c0_135, %c0_136] : memref<1x32xf32, #tpu.memory_space<vmem>>, vector<1x32xf32>
    %216 = vector.broadcast %215 : vector<1x32xf32> to vector<8x32xf32>
    %217 = arith.addf %214, %216 : vector<8x32xf32>
    %c0_137 = arith.constant 0 : index
    %c0_138 = arith.constant 0 : index
    %c0_139 = arith.constant 0 : index
    %218 = vector.load %arg12[%c0_137, %c0_138, %c0_139] : memref<12x32x8xf32, #tpu.memory_space<vmem>>, vector<1x32x8xf32>
    %219 = vector.shape_cast %218 : vector<1x32x8xf32> to vector<32x8xf32>
    %cst_140 = arith.constant dense<0.000000e+00> : vector<8x8xf32>
    %220 = tpu.matmul %217, %219, %cst_140 {dimension_numbers = #tpu.dot_dimension_numbers<[1], [0], [0], [1], [0, 0, 1, 1], [], []>} : vector<8x32xf32>, vector<32x8xf32>, vector<8x8xf32> -> vector<8x8xf32>
    %c0_141 = arith.constant 0 : index
    %c0_142 = arith.constant 0 : index
    %c0_143 = arith.constant 0 : index
    %221 = vector.load %arg13[%c0_141, %c0_142, %c0_143] : memref<12x1x8xf32, #tpu.memory_space<vmem>>, vector<1x1x8xf32>
    %222 = vector.shape_cast %221 : vector<1x1x8xf32> to vector<1x8xf32>
    %223 = vector.broadcast %222 : vector<1x8xf32> to vector<8x8xf32>
    %224 = arith.addf %220, %223 : vector<8x8xf32>
    %cst_144 = arith.constant 0.353553385 : f32
    %225 = vector.broadcast %cst_144 : f32 to vector<8x8xf32>
    %226 = arith.mulf %224, %225 : vector<8x8xf32>
    %c4_145 = arith.constant 4 : index
    %c0_146 = arith.constant 0 : index
    %c0_147 = arith.constant 0 : index
    %227 = vector.load %arg12[%c4_145, %c0_146, %c0_147] : memref<12x32x8xf32, #tpu.memory_space<vmem>>, vector<1x32x8xf32>
    %228 = vector.shape_cast %227 : vector<1x32x8xf32> to vector<32x8xf32>
    %cst_148 = arith.constant dense<0.000000e+00> : vector<10x8xf32>
    %229 = tpu.matmul %3, %228, %cst_148 {dimension_numbers = #tpu.dot_dimension_numbers<[1], [0], [0], [1], [0, 0, 1, 1], [], []>} : vector<10x32xf32>, vector<32x8xf32>, vector<10x8xf32> -> vector<10x8xf32>
    %c4_149 = arith.constant 4 : index
    %c0_150 = arith.constant 0 : index
    %c0_151 = arith.constant 0 : index
    %230 = vector.load %arg13[%c4_149, %c0_150, %c0_151] : memref<12x1x8xf32, #tpu.memory_space<vmem>>, vector<1x1x8xf32>
    %231 = vector.shape_cast %230 : vector<1x1x8xf32> to vector<1x8xf32>
    %232 = vector.broadcast %231 : vector<1x8xf32> to vector<10x8xf32>
    %233 = arith.addf %229, %232 : vector<10x8xf32>
    %cst_152 = arith.constant dense<0.000000e+00> : vector<8x10xf32>
    %234 = tpu.matmul %226, %233, %cst_152 {dimension_numbers = #tpu.dot_dimension_numbers<[1], [1], [0], [0], [0, 0, 1, 0], [], []>} : vector<8x8xf32>, vector<10x8xf32>, vector<8x10xf32> -> vector<8x10xf32>
    %cst_153 = arith.constant dense<0xFF800000> : vector<8xf32>
    %235 = vector.multi_reduction <maximumf>, %234, %cst_153 [1] : vector<8x10xf32> to vector<8xf32>
    %236 = vector.shape_cast %235 : vector<8xf32> to vector<8x1xf32>
    %237 = vector.broadcast %236 : vector<8x1xf32> to vector<8x10xf32>
    %238 = arith.subf %234, %237 : vector<8x10xf32>
    %239 = math.exp %238 : vector<8x10xf32>
    %cst_154 = arith.constant dense<0.000000e+00> : vector<8xf32>
    %240 = vector.multi_reduction <add>, %239, %cst_154 [1] : vector<8x10xf32> to vector<8xf32>
    %241 = vector.shape_cast %240 : vector<8xf32> to vector<8x1xf32>
    %242 = tpu.reciprocal %241 {approx = true} : vector<8x1xf32> -> vector<8x1xf32>
    %243 = vector.broadcast %242 : vector<8x1xf32> to vector<8x10xf32>
    %244 = arith.mulf %239, %243 : vector<8x10xf32>
    %c1_155 = arith.constant 1 : index
    %c0_156 = arith.constant 0 : index
    %c0_157 = arith.constant 0 : index
    %245 = vector.load %arg12[%c1_155, %c0_156, %c0_157] : memref<12x32x8xf32, #tpu.memory_space<vmem>>, vector<1x32x8xf32>
    %246 = vector.shape_cast %245 : vector<1x32x8xf32> to vector<32x8xf32>
    %cst_158 = arith.constant dense<0.000000e+00> : vector<8x8xf32>
    %247 = tpu.matmul %217, %246, %cst_158 {dimension_numbers = #tpu.dot_dimension_numbers<[1], [0], [0], [1], [0, 0, 1, 1], [], []>} : vector<8x32xf32>, vector<32x8xf32>, vector<8x8xf32> -> vector<8x8xf32>
    %c1_159 = arith.constant 1 : index
    %c0_160 = arith.constant 0 : index
    %c0_161 = arith.constant 0 : index
    %248 = vector.load %arg13[%c1_159, %c0_160, %c0_161] : memref<12x1x8xf32, #tpu.memory_space<vmem>>, vector<1x1x8xf32>
    %249 = vector.shape_cast %248 : vector<1x1x8xf32> to vector<1x8xf32>
    %250 = vector.broadcast %249 : vector<1x8xf32> to vector<8x8xf32>
    %251 = arith.addf %247, %250 : vector<8x8xf32>
    %cst_162 = arith.constant 0.353553385 : f32
    %252 = vector.broadcast %cst_162 : f32 to vector<8x8xf32>
    %253 = arith.mulf %251, %252 : vector<8x8xf32>
    %c5_163 = arith.constant 5 : index
    %c0_164 = arith.constant 0 : index
    %c0_165 = arith.constant 0 : index
    %254 = vector.load %arg12[%c5_163, %c0_164, %c0_165] : memref<12x32x8xf32, #tpu.memory_space<vmem>>, vector<1x32x8xf32>
    %255 = vector.shape_cast %254 : vector<1x32x8xf32> to vector<32x8xf32>
    %cst_166 = arith.constant dense<0.000000e+00> : vector<10x8xf32>
    %256 = tpu.matmul %3, %255, %cst_166 {dimension_numbers = #tpu.dot_dimension_numbers<[1], [0], [0], [1], [0, 0, 1, 1], [], []>} : vector<10x32xf32>, vector<32x8xf32>, vector<10x8xf32> -> vector<10x8xf32>
    %c5_167 = arith.constant 5 : index
    %c0_168 = arith.constant 0 : index
    %c0_169 = arith.constant 0 : index
    %257 = vector.load %arg13[%c5_167, %c0_168, %c0_169] : memref<12x1x8xf32, #tpu.memory_space<vmem>>, vector<1x1x8xf32>
    %258 = vector.shape_cast %257 : vector<1x1x8xf32> to vector<1x8xf32>
    %259 = vector.broadcast %258 : vector<1x8xf32> to vector<10x8xf32>
    %260 = arith.addf %256, %259 : vector<10x8xf32>
    %cst_170 = arith.constant dense<0.000000e+00> : vector<8x10xf32>
    %261 = tpu.matmul %253, %260, %cst_170 {dimension_numbers = #tpu.dot_dimension_numbers<[1], [1], [0], [0], [0, 0, 1, 0], [], []>} : vector<8x8xf32>, vector<10x8xf32>, vector<8x10xf32> -> vector<8x10xf32>
    %cst_171 = arith.constant dense<0xFF800000> : vector<8xf32>
    %262 = vector.multi_reduction <maximumf>, %261, %cst_171 [1] : vector<8x10xf32> to vector<8xf32>
    %263 = vector.shape_cast %262 : vector<8xf32> to vector<8x1xf32>
    %264 = vector.broadcast %263 : vector<8x1xf32> to vector<8x10xf32>
    %265 = arith.subf %261, %264 : vector<8x10xf32>
    %266 = math.exp %265 : vector<8x10xf32>
    %cst_172 = arith.constant dense<0.000000e+00> : vector<8xf32>
    %267 = vector.multi_reduction <add>, %266, %cst_172 [1] : vector<8x10xf32> to vector<8xf32>
    %268 = vector.shape_cast %267 : vector<8xf32> to vector<8x1xf32>
    %269 = tpu.reciprocal %268 {approx = true} : vector<8x1xf32> -> vector<8x1xf32>
    %270 = vector.broadcast %269 : vector<8x1xf32> to vector<8x10xf32>
    %271 = arith.mulf %266, %270 : vector<8x10xf32>
    %272 = arith.addf %244, %271 : vector<8x10xf32>
    %c2_173 = arith.constant 2 : index
    %c0_174 = arith.constant 0 : index
    %c0_175 = arith.constant 0 : index
    %273 = vector.load %arg12[%c2_173, %c0_174, %c0_175] : memref<12x32x8xf32, #tpu.memory_space<vmem>>, vector<1x32x8xf32>
    %274 = vector.shape_cast %273 : vector<1x32x8xf32> to vector<32x8xf32>
    %cst_176 = arith.constant dense<0.000000e+00> : vector<8x8xf32>
    %275 = tpu.matmul %217, %274, %cst_176 {dimension_numbers = #tpu.dot_dimension_numbers<[1], [0], [0], [1], [0, 0, 1, 1], [], []>} : vector<8x32xf32>, vector<32x8xf32>, vector<8x8xf32> -> vector<8x8xf32>
    %c2_177 = arith.constant 2 : index
    %c0_178 = arith.constant 0 : index
    %c0_179 = arith.constant 0 : index
    %276 = vector.load %arg13[%c2_177, %c0_178, %c0_179] : memref<12x1x8xf32, #tpu.memory_space<vmem>>, vector<1x1x8xf32>
    %277 = vector.shape_cast %276 : vector<1x1x8xf32> to vector<1x8xf32>
    %278 = vector.broadcast %277 : vector<1x8xf32> to vector<8x8xf32>
    %279 = arith.addf %275, %278 : vector<8x8xf32>
    %cst_180 = arith.constant 0.353553385 : f32
    %280 = vector.broadcast %cst_180 : f32 to vector<8x8xf32>
    %281 = arith.mulf %279, %280 : vector<8x8xf32>
    %c6_181 = arith.constant 6 : index
    %c0_182 = arith.constant 0 : index
    %c0_183 = arith.constant 0 : index
    %282 = vector.load %arg12[%c6_181, %c0_182, %c0_183] : memref<12x32x8xf32, #tpu.memory_space<vmem>>, vector<1x32x8xf32>
    %283 = vector.shape_cast %282 : vector<1x32x8xf32> to vector<32x8xf32>
    %cst_184 = arith.constant dense<0.000000e+00> : vector<10x8xf32>
    %284 = tpu.matmul %3, %283, %cst_184 {dimension_numbers = #tpu.dot_dimension_numbers<[1], [0], [0], [1], [0, 0, 1, 1], [], []>} : vector<10x32xf32>, vector<32x8xf32>, vector<10x8xf32> -> vector<10x8xf32>
    %c6_185 = arith.constant 6 : index
    %c0_186 = arith.constant 0 : index
    %c0_187 = arith.constant 0 : index
    %285 = vector.load %arg13[%c6_185, %c0_186, %c0_187] : memref<12x1x8xf32, #tpu.memory_space<vmem>>, vector<1x1x8xf32>
    %286 = vector.shape_cast %285 : vector<1x1x8xf32> to vector<1x8xf32>
    %287 = vector.broadcast %286 : vector<1x8xf32> to vector<10x8xf32>
    %288 = arith.addf %284, %287 : vector<10x8xf32>
    %cst_188 = arith.constant dense<0.000000e+00> : vector<8x10xf32>
    %289 = tpu.matmul %281, %288, %cst_188 {dimension_numbers = #tpu.dot_dimension_numbers<[1], [1], [0], [0], [0, 0, 1, 0], [], []>} : vector<8x8xf32>, vector<10x8xf32>, vector<8x10xf32> -> vector<8x10xf32>
    %cst_189 = arith.constant dense<0xFF800000> : vector<8xf32>
    %290 = vector.multi_reduction <maximumf>, %289, %cst_189 [1] : vector<8x10xf32> to vector<8xf32>
    %291 = vector.shape_cast %290 : vector<8xf32> to vector<8x1xf32>
    %292 = vector.broadcast %291 : vector<8x1xf32> to vector<8x10xf32>
    %293 = arith.subf %289, %292 : vector<8x10xf32>
    %294 = math.exp %293 : vector<8x10xf32>
    %cst_190 = arith.constant dense<0.000000e+00> : vector<8xf32>
    %295 = vector.multi_reduction <add>, %294, %cst_190 [1] : vector<8x10xf32> to vector<8xf32>
    %296 = vector.shape_cast %295 : vector<8xf32> to vector<8x1xf32>
    %297 = tpu.reciprocal %296 {approx = true} : vector<8x1xf32> -> vector<8x1xf32>
    %298 = vector.broadcast %297 : vector<8x1xf32> to vector<8x10xf32>
    %299 = arith.mulf %294, %298 : vector<8x10xf32>
    %300 = arith.addf %272, %299 : vector<8x10xf32>
    %c3_191 = arith.constant 3 : index
    %c0_192 = arith.constant 0 : index
    %c0_193 = arith.constant 0 : index
    %301 = vector.load %arg12[%c3_191, %c0_192, %c0_193] : memref<12x32x8xf32, #tpu.memory_space<vmem>>, vector<1x32x8xf32>
    %302 = vector.shape_cast %301 : vector<1x32x8xf32> to vector<32x8xf32>
    %cst_194 = arith.constant dense<0.000000e+00> : vector<8x8xf32>
    %303 = tpu.matmul %217, %302, %cst_194 {dimension_numbers = #tpu.dot_dimension_numbers<[1], [0], [0], [1], [0, 0, 1, 1], [], []>} : vector<8x32xf32>, vector<32x8xf32>, vector<8x8xf32> -> vector<8x8xf32>
    %c3_195 = arith.constant 3 : index
    %c0_196 = arith.constant 0 : index
    %c0_197 = arith.constant 0 : index
    %304 = vector.load %arg13[%c3_195, %c0_196, %c0_197] : memref<12x1x8xf32, #tpu.memory_space<vmem>>, vector<1x1x8xf32>
    %305 = vector.shape_cast %304 : vector<1x1x8xf32> to vector<1x8xf32>
    %306 = vector.broadcast %305 : vector<1x8xf32> to vector<8x8xf32>
    %307 = arith.addf %303, %306 : vector<8x8xf32>
    %cst_198 = arith.constant 0.353553385 : f32
    %308 = vector.broadcast %cst_198 : f32 to vector<8x8xf32>
    %309 = arith.mulf %307, %308 : vector<8x8xf32>
    %c7_199 = arith.constant 7 : index
    %c0_200 = arith.constant 0 : index
    %c0_201 = arith.constant 0 : index
    %310 = vector.load %arg12[%c7_199, %c0_200, %c0_201] : memref<12x32x8xf32, #tpu.memory_space<vmem>>, vector<1x32x8xf32>
    %311 = vector.shape_cast %310 : vector<1x32x8xf32> to vector<32x8xf32>
    %cst_202 = arith.constant dense<0.000000e+00> : vector<10x8xf32>
    %312 = tpu.matmul %3, %311, %cst_202 {dimension_numbers = #tpu.dot_dimension_numbers<[1], [0], [0], [1], [0, 0, 1, 1], [], []>} : vector<10x32xf32>, vector<32x8xf32>, vector<10x8xf32> -> vector<10x8xf32>
    %c7_203 = arith.constant 7 : index
    %c0_204 = arith.constant 0 : index
    %c0_205 = arith.constant 0 : index
    %313 = vector.load %arg13[%c7_203, %c0_204, %c0_205] : memref<12x1x8xf32, #tpu.memory_space<vmem>>, vector<1x1x8xf32>
    %314 = vector.shape_cast %313 : vector<1x1x8xf32> to vector<1x8xf32>
    %315 = vector.broadcast %314 : vector<1x8xf32> to vector<10x8xf32>
    %316 = arith.addf %312, %315 : vector<10x8xf32>
    %cst_206 = arith.constant dense<0.000000e+00> : vector<8x10xf32>
    %317 = tpu.matmul %309, %316, %cst_206 {dimension_numbers = #tpu.dot_dimension_numbers<[1], [1], [0], [0], [0, 0, 1, 0], [], []>} : vector<8x8xf32>, vector<10x8xf32>, vector<8x10xf32> -> vector<8x10xf32>
    %cst_207 = arith.constant dense<0xFF800000> : vector<8xf32>
    %318 = vector.multi_reduction <maximumf>, %317, %cst_207 [1] : vector<8x10xf32> to vector<8xf32>
    %319 = vector.shape_cast %318 : vector<8xf32> to vector<8x1xf32>
    %320 = vector.broadcast %319 : vector<8x1xf32> to vector<8x10xf32>
    %321 = arith.subf %317, %320 : vector<8x10xf32>
    %322 = math.exp %321 : vector<8x10xf32>
    %cst_208 = arith.constant dense<0.000000e+00> : vector<8xf32>
    %323 = vector.multi_reduction <add>, %322, %cst_208 [1] : vector<8x10xf32> to vector<8xf32>
    %324 = vector.shape_cast %323 : vector<8xf32> to vector<8x1xf32>
    %325 = tpu.reciprocal %324 {approx = true} : vector<8x1xf32> -> vector<8x1xf32>
    %326 = vector.broadcast %325 : vector<8x1xf32> to vector<8x10xf32>
    %327 = arith.mulf %322, %326 : vector<8x10xf32>
    %328 = arith.addf %300, %327 : vector<8x10xf32>
    %cst_209 = arith.constant 2.500000e-01 : f32
    %329 = vector.broadcast %cst_209 : f32 to vector<8x10xf32>
    %330 = arith.mulf %328, %329 : vector<8x10xf32>
    %c0_210 = arith.constant 0 : index
    %c0_211 = arith.constant 0 : index
    %c0_212 = arith.constant 0 : index
    %331 = vector.load %arg47[%c0_210, %c0_211, %c0_212] : memref<1x8x8xf32, #tpu.memory_space<vmem>>, vector<1x8x8xf32>
    %332 = vector.shape_cast %331 : vector<1x8x8xf32> to vector<8x8xf32>
    %333 = vector.shape_cast %194 : vector<8x8xf32> to vector<1x8x8xf32>
    tpu.vector_store %arg47[%c0_210, %c0_211, %c0_212], %333 {strides = array<i32>} : memref<1x8x8xf32, #tpu.memory_space<vmem>>, vector<1x8x8xf32>,
    %c0_213 = arith.constant 0 : index
    %c0_214 = arith.constant 0 : index
    %c0_215 = arith.constant 0 : index
    %334 = vector.load %arg48[%c0_213, %c0_214, %c0_215] : memref<1x8x10xf32, #tpu.memory_space<vmem>>, vector<1x8x10xf32>
    %335 = vector.shape_cast %334 : vector<1x8x10xf32> to vector<8x10xf32>
    %336 = vector.shape_cast %330 : vector<8x10xf32> to vector<1x8x10xf32>
    tpu.vector_store %arg48[%c0_213, %c0_214, %c0_215], %336 {strides = array<i32>} : memref<1x8x10xf32, #tpu.memory_space<vmem>>, vector<1x8x10xf32>,
    %cst_216 = arith.constant dense<0.000000e+00> : vector<8xf32>
    %337 = vector.multi_reduction <add>, %1, %cst_216 [1] : vector<8x32xf32> to vector<8xf32>
    %338 = vector.shape_cast %337 : vector<8xf32> to vector<8x1xf32>
    %cst_217 = arith.constant 3.200000e+01 : f32
    %339 = vector.broadcast %cst_217 : f32 to vector<8x1xf32>
    %340 = arith.divf %338, %339 : vector<8x1xf32>
    %341 = vector.broadcast %340 : vector<8x1xf32> to vector<8x32xf32>
    %342 = arith.subf %1, %341 : vector<8x32xf32>
    %343 = arith.mulf %342, %342 : vector<8x32xf32>
    %cst_218 = arith.constant dense<0.000000e+00> : vector<8xf32>
    %344 = vector.multi_reduction <add>, %343, %cst_218 [1] : vector<8x32xf32> to vector<8xf32>
    %345 = vector.shape_cast %344 : vector<8xf32> to vector<8x1xf32>
    %cst_219 = arith.constant 3.200000e+01 : f32
    %346 = vector.broadcast %cst_219 : f32 to vector<8x1xf32>
    %347 = arith.divf %345, %346 : vector<8x1xf32>
    %cst_220 = arith.constant 9.99999974E-6 : f32
    %348 = vector.broadcast %cst_220 : f32 to vector<8x1xf32>
    %349 = arith.addf %347, %348 : vector<8x1xf32>
    %350 = math.rsqrt %349 : vector<8x1xf32>
    %351 = vector.broadcast %350 : vector<8x1xf32> to vector<8x32xf32>
    %352 = arith.mulf %342, %351 : vector<8x32xf32>
    %c0_221 = arith.constant 0 : index
    %c0_222 = arith.constant 0 : index
    %353 = vector.load %arg24[%c0_221, %c0_222] : memref<1x32xf32, #tpu.memory_space<vmem>>, vector<1x32xf32>
    %354 = vector.broadcast %353 : vector<1x32xf32> to vector<8x32xf32>
    %355 = arith.mulf %352, %354 : vector<8x32xf32>
    %c0_223 = arith.constant 0 : index
    %c0_224 = arith.constant 0 : index
    %356 = vector.load %arg25[%c0_223, %c0_224] : memref<1x32xf32, #tpu.memory_space<vmem>>, vector<1x32xf32>
    %357 = vector.broadcast %356 : vector<1x32xf32> to vector<8x32xf32>
    %358 = arith.addf %355, %357 : vector<8x32xf32>
    %c0_225 = arith.constant 0 : index
    %c0_226 = arith.constant 0 : index
    %c0_227 = arith.constant 0 : index
    %359 = vector.load %arg26[%c0_225, %c0_226, %c0_227] : memref<12x32x8xf32, #tpu.memory_space<vmem>>, vector<1x32x8xf32>
    %360 = vector.shape_cast %359 : vector<1x32x8xf32> to vector<32x8xf32>
    %cst_228 = arith.constant dense<0.000000e+00> : vector<8x8xf32>
    %361 = tpu.matmul %358, %360, %cst_228 {dimension_numbers = #tpu.dot_dimension_numbers<[1], [0], [0], [1], [0, 0, 1, 1], [], []>} : vector<8x32xf32>, vector<32x8xf32>, vector<8x8xf32> -> vector<8x8xf32>
    %c0_229 = arith.constant 0 : index
    %c0_230 = arith.constant 0 : index
    %c0_231 = arith.constant 0 : index
    %362 = vector.load %arg27[%c0_229, %c0_230, %c0_231] : memref<12x1x8xf32, #tpu.memory_space<vmem>>, vector<1x1x8xf32>
    %363 = vector.shape_cast %362 : vector<1x1x8xf32> to vector<1x8xf32>
    %364 = vector.broadcast %363 : vector<1x8xf32> to vector<8x8xf32>
    %365 = arith.addf %361, %364 : vector<8x8xf32>
    %cst_232 = arith.constant 0.353553385 : f32
    %366 = vector.broadcast %cst_232 : f32 to vector<8x8xf32>
    %367 = arith.mulf %365, %366 : vector<8x8xf32>
    %c4_233 = arith.constant 4 : index
    %c0_234 = arith.constant 0 : index
    %c0_235 = arith.constant 0 : index
    %368 = vector.load %arg26[%c4_233, %c0_234, %c0_235] : memref<12x32x8xf32, #tpu.memory_space<vmem>>, vector<1x32x8xf32>
    %369 = vector.shape_cast %368 : vector<1x32x8xf32> to vector<32x8xf32>
    %cst_236 = arith.constant dense<0.000000e+00> : vector<8x8xf32>
    %370 = tpu.matmul %358, %369, %cst_236 {dimension_numbers = #tpu.dot_dimension_numbers<[1], [0], [0], [1], [0, 0, 1, 1], [], []>} : vector<8x32xf32>, vector<32x8xf32>, vector<8x8xf32> -> vector<8x8xf32>
    %c4_237 = arith.constant 4 : index
    %c0_238 = arith.constant 0 : index
    %c0_239 = arith.constant 0 : index
    %371 = vector.load %arg27[%c4_237, %c0_238, %c0_239] : memref<12x1x8xf32, #tpu.memory_space<vmem>>, vector<1x1x8xf32>
    %372 = vector.shape_cast %371 : vector<1x1x8xf32> to vector<1x8xf32>
    %373 = vector.broadcast %372 : vector<1x8xf32> to vector<8x8xf32>
    %374 = arith.addf %370, %373 : vector<8x8xf32>
    %c8_240 = arith.constant 8 : index
    %c0_241 = arith.constant 0 : index
    %c0_242 = arith.constant 0 : index
    %375 = vector.load %arg26[%c8_240, %c0_241, %c0_242] : memref<12x32x8xf32, #tpu.memory_space<vmem>>, vector<1x32x8xf32>
    %376 = vector.shape_cast %375 : vector<1x32x8xf32> to vector<32x8xf32>
    %cst_243 = arith.constant dense<0.000000e+00> : vector<8x8xf32>
    %377 = tpu.matmul %358, %376, %cst_243 {dimension_numbers = #tpu.dot_dimension_numbers<[1], [0], [0], [1], [0, 0, 1, 1], [], []>} : vector<8x32xf32>, vector<32x8xf32>, vector<8x8xf32> -> vector<8x8xf32>
    %c8_244 = arith.constant 8 : index
    %c0_245 = arith.constant 0 : index
    %c0_246 = arith.constant 0 : index
    %378 = vector.load %arg27[%c8_244, %c0_245, %c0_246] : memref<12x1x8xf32, #tpu.memory_space<vmem>>, vector<1x1x8xf32>
    %379 = vector.shape_cast %378 : vector<1x1x8xf32> to vector<1x8xf32>
    %380 = vector.broadcast %379 : vector<1x8xf32> to vector<8x8xf32>
    %381 = arith.addf %377, %380 : vector<8x8xf32>
    %cst_247 = arith.constant dense<0.000000e+00> : vector<8x8xf32>
    %382 = tpu.matmul %367, %374, %cst_247 {dimension_numbers = #tpu.dot_dimension_numbers<[1], [1], [0], [0], [0, 0, 1, 0], [], []>} : vector<8x8xf32>, vector<8x8xf32>, vector<8x8xf32> -> vector<8x8xf32>
    %383 = arith.addf %382, %5 : vector<8x8xf32>
    %cst_248 = arith.constant dense<0xFF800000> : vector<8xf32>
    %384 = vector.multi_reduction <maximumf>, %383, %cst_248 [1] : vector<8x8xf32> to vector<8xf32>
    %385 = vector.shape_cast %384 : vector<8xf32> to vector<8x1xf32>
    %386 = vector.broadcast %385 : vector<8x1xf32> to vector<8x8xf32>
    %387 = arith.subf %383, %386 : vector<8x8xf32>
    %388 = math.exp %387 : vector<8x8xf32>
    %cst_249 = arith.constant dense<0.000000e+00> : vector<8xf32>
    %389 = vector.multi_reduction <add>, %388, %cst_249 [1] : vector<8x8xf32> to vector<8xf32>
    %390 = vector.shape_cast %389 : vector<8xf32> to vector<8x1xf32>
    %391 = tpu.reciprocal %390 {approx = true} : vector<8x1xf32> -> vector<8x1xf32>
    %392 = vector.broadcast %391 : vector<8x1xf32> to vector<8x8xf32>
    %393 = arith.mulf %388, %392 : vector<8x8xf32>
    %cst_250 = arith.constant dense<0.000000e+00> : vector<8x8xf32>
    %394 = tpu.matmul %393, %381, %cst_250 {dimension_numbers = #tpu.dot_dimension_numbers<[1], [0], [0], [1], [0, 0, 1, 1], [], []>} : vector<8x8xf32>, vector<8x8xf32>, vector<8x8xf32> -> vector<8x8xf32>
    %c0_251 = arith.constant 0 : index
    %c0_252 = arith.constant 0 : index
    %c0_253 = arith.constant 0 : index
    %395 = vector.load %arg28[%c0_251, %c0_252, %c0_253] : memref<4x8x32xf32, #tpu.memory_space<vmem>>, vector<1x8x32xf32>
    %396 = vector.shape_cast %395 : vector<1x8x32xf32> to vector<8x32xf32>
    %cst_254 = arith.constant dense<0.000000e+00> : vector<8x32xf32>
    %397 = tpu.matmul %394, %396, %cst_254 {dimension_numbers = #tpu.dot_dimension_numbers<[1], [0], [0], [1], [0, 0, 1, 1], [], []>} : vector<8x8xf32>, vector<8x32xf32>, vector<8x32xf32> -> vector<8x32xf32>
    %c1_255 = arith.constant 1 : index
    %c0_256 = arith.constant 0 : index
    %c0_257 = arith.constant 0 : index
    %398 = vector.load %arg26[%c1_255, %c0_256, %c0_257] : memref<12x32x8xf32, #tpu.memory_space<vmem>>, vector<1x32x8xf32>
    %399 = vector.shape_cast %398 : vector<1x32x8xf32> to vector<32x8xf32>
    %cst_258 = arith.constant dense<0.000000e+00> : vector<8x8xf32>
    %400 = tpu.matmul %358, %399, %cst_258 {dimension_numbers = #tpu.dot_dimension_numbers<[1], [0], [0], [1], [0, 0, 1, 1], [], []>} : vector<8x32xf32>, vector<32x8xf32>, vector<8x8xf32> -> vector<8x8xf32>
    %c1_259 = arith.constant 1 : index
    %c0_260 = arith.constant 0 : index
    %c0_261 = arith.constant 0 : index
    %401 = vector.load %arg27[%c1_259, %c0_260, %c0_261] : memref<12x1x8xf32, #tpu.memory_space<vmem>>, vector<1x1x8xf32>
    %402 = vector.shape_cast %401 : vector<1x1x8xf32> to vector<1x8xf32>
    %403 = vector.broadcast %402 : vector<1x8xf32> to vector<8x8xf32>
    %404 = arith.addf %400, %403 : vector<8x8xf32>
    %cst_262 = arith.constant 0.353553385 : f32
    %405 = vector.broadcast %cst_262 : f32 to vector<8x8xf32>
    %406 = arith.mulf %404, %405 : vector<8x8xf32>
    %c5_263 = arith.constant 5 : index
    %c0_264 = arith.constant 0 : index
    %c0_265 = arith.constant 0 : index
    %407 = vector.load %arg26[%c5_263, %c0_264, %c0_265] : memref<12x32x8xf32, #tpu.memory_space<vmem>>, vector<1x32x8xf32>
    %408 = vector.shape_cast %407 : vector<1x32x8xf32> to vector<32x8xf32>
    %cst_266 = arith.constant dense<0.000000e+00> : vector<8x8xf32>
    %409 = tpu.matmul %358, %408, %cst_266 {dimension_numbers = #tpu.dot_dimension_numbers<[1], [0], [0], [1], [0, 0, 1, 1], [], []>} : vector<8x32xf32>, vector<32x8xf32>, vector<8x8xf32> -> vector<8x8xf32>
    %c5_267 = arith.constant 5 : index
    %c0_268 = arith.constant 0 : index
    %c0_269 = arith.constant 0 : index
    %410 = vector.load %arg27[%c5_267, %c0_268, %c0_269] : memref<12x1x8xf32, #tpu.memory_space<vmem>>, vector<1x1x8xf32>
    %411 = vector.shape_cast %410 : vector<1x1x8xf32> to vector<1x8xf32>
    %412 = vector.broadcast %411 : vector<1x8xf32> to vector<8x8xf32>
    %413 = arith.addf %409, %412 : vector<8x8xf32>
    %c9_270 = arith.constant 9 : index
    %c0_271 = arith.constant 0 : index
    %c0_272 = arith.constant 0 : index
    %414 = vector.load %arg26[%c9_270, %c0_271, %c0_272] : memref<12x32x8xf32, #tpu.memory_space<vmem>>, vector<1x32x8xf32>
    %415 = vector.shape_cast %414 : vector<1x32x8xf32> to vector<32x8xf32>
    %cst_273 = arith.constant dense<0.000000e+00> : vector<8x8xf32>
    %416 = tpu.matmul %358, %415, %cst_273 {dimension_numbers = #tpu.dot_dimension_numbers<[1], [0], [0], [1], [0, 0, 1, 1], [], []>} : vector<8x32xf32>, vector<32x8xf32>, vector<8x8xf32> -> vector<8x8xf32>
    %c9_274 = arith.constant 9 : index
    %c0_275 = arith.constant 0 : index
    %c0_276 = arith.constant 0 : index
    %417 = vector.load %arg27[%c9_274, %c0_275, %c0_276] : memref<12x1x8xf32, #tpu.memory_space<vmem>>, vector<1x1x8xf32>
    %418 = vector.shape_cast %417 : vector<1x1x8xf32> to vector<1x8xf32>
    %419 = vector.broadcast %418 : vector<1x8xf32> to vector<8x8xf32>
    %420 = arith.addf %416, %419 : vector<8x8xf32>
    %cst_277 = arith.constant dense<0.000000e+00> : vector<8x8xf32>
    %421 = tpu.matmul %406, %413, %cst_277 {dimension_numbers = #tpu.dot_dimension_numbers<[1], [1], [0], [0], [0, 0, 1, 0], [], []>} : vector<8x8xf32>, vector<8x8xf32>, vector<8x8xf32> -> vector<8x8xf32>
    %422 = arith.addf %421, %5 : vector<8x8xf32>
    %cst_278 = arith.constant dense<0xFF800000> : vector<8xf32>
    %423 = vector.multi_reduction <maximumf>, %422, %cst_278 [1] : vector<8x8xf32> to vector<8xf32>
    %424 = vector.shape_cast %423 : vector<8xf32> to vector<8x1xf32>
    %425 = vector.broadcast %424 : vector<8x1xf32> to vector<8x8xf32>
    %426 = arith.subf %422, %425 : vector<8x8xf32>
    %427 = math.exp %426 : vector<8x8xf32>
    %cst_279 = arith.constant dense<0.000000e+00> : vector<8xf32>
    %428 = vector.multi_reduction <add>, %427, %cst_279 [1] : vector<8x8xf32> to vector<8xf32>
    %429 = vector.shape_cast %428 : vector<8xf32> to vector<8x1xf32>
    %430 = tpu.reciprocal %429 {approx = true} : vector<8x1xf32> -> vector<8x1xf32>
    %431 = vector.broadcast %430 : vector<8x1xf32> to vector<8x8xf32>
    %432 = arith.mulf %427, %431 : vector<8x8xf32>
    %cst_280 = arith.constant dense<0.000000e+00> : vector<8x8xf32>
    %433 = tpu.matmul %432, %420, %cst_280 {dimension_numbers = #tpu.dot_dimension_numbers<[1], [0], [0], [1], [0, 0, 1, 1], [], []>} : vector<8x8xf32>, vector<8x8xf32>, vector<8x8xf32> -> vector<8x8xf32>
    %c1_281 = arith.constant 1 : index
    %c0_282 = arith.constant 0 : index
    %c0_283 = arith.constant 0 : index
    %434 = vector.load %arg28[%c1_281, %c0_282, %c0_283] : memref<4x8x32xf32, #tpu.memory_space<vmem>>, vector<1x8x32xf32>
    %435 = vector.shape_cast %434 : vector<1x8x32xf32> to vector<8x32xf32>
    %cst_284 = arith.constant dense<0.000000e+00> : vector<8x32xf32>
    %436 = tpu.matmul %433, %435, %cst_284 {dimension_numbers = #tpu.dot_dimension_numbers<[1], [0], [0], [1], [0, 0, 1, 1], [], []>} : vector<8x8xf32>, vector<8x32xf32>, vector<8x32xf32> -> vector<8x32xf32>
    %437 = arith.addf %397, %436 : vector<8x32xf32>
    %438 = arith.addf %393, %432 : vector<8x8xf32>
    %c2_285 = arith.constant 2 : index
    %c0_286 = arith.constant 0 : index
    %c0_287 = arith.constant 0 : index
    %439 = vector.load %arg26[%c2_285, %c0_286, %c0_287] : memref<12x32x8xf32, #tpu.memory_space<vmem>>, vector<1x32x8xf32>
    %440 = vector.shape_cast %439 : vector<1x32x8xf32> to vector<32x8xf32>
    %cst_288 = arith.constant dense<0.000000e+00> : vector<8x8xf32>
    %441 = tpu.matmul %358, %440, %cst_288 {dimension_numbers = #tpu.dot_dimension_numbers<[1], [0], [0], [1], [0, 0, 1, 1], [], []>} : vector<8x32xf32>, vector<32x8xf32>, vector<8x8xf32> -> vector<8x8xf32>
    %c2_289 = arith.constant 2 : index
    %c0_290 = arith.constant 0 : index
    %c0_291 = arith.constant 0 : index
    %442 = vector.load %arg27[%c2_289, %c0_290, %c0_291] : memref<12x1x8xf32, #tpu.memory_space<vmem>>, vector<1x1x8xf32>
    %443 = vector.shape_cast %442 : vector<1x1x8xf32> to vector<1x8xf32>
    %444 = vector.broadcast %443 : vector<1x8xf32> to vector<8x8xf32>
    %445 = arith.addf %441, %444 : vector<8x8xf32>
    %cst_292 = arith.constant 0.353553385 : f32
    %446 = vector.broadcast %cst_292 : f32 to vector<8x8xf32>
    %447 = arith.mulf %445, %446 : vector<8x8xf32>
    %c6_293 = arith.constant 6 : index
    %c0_294 = arith.constant 0 : index
    %c0_295 = arith.constant 0 : index
    %448 = vector.load %arg26[%c6_293, %c0_294, %c0_295] : memref<12x32x8xf32, #tpu.memory_space<vmem>>, vector<1x32x8xf32>
    %449 = vector.shape_cast %448 : vector<1x32x8xf32> to vector<32x8xf32>
    %cst_296 = arith.constant dense<0.000000e+00> : vector<8x8xf32>
    %450 = tpu.matmul %358, %449, %cst_296 {dimension_numbers = #tpu.dot_dimension_numbers<[1], [0], [0], [1], [0, 0, 1, 1], [], []>} : vector<8x32xf32>, vector<32x8xf32>, vector<8x8xf32> -> vector<8x8xf32>
    %c6_297 = arith.constant 6 : index
    %c0_298 = arith.constant 0 : index
    %c0_299 = arith.constant 0 : index
    %451 = vector.load %arg27[%c6_297, %c0_298, %c0_299] : memref<12x1x8xf32, #tpu.memory_space<vmem>>, vector<1x1x8xf32>
    %452 = vector.shape_cast %451 : vector<1x1x8xf32> to vector<1x8xf32>
    %453 = vector.broadcast %452 : vector<1x8xf32> to vector<8x8xf32>
    %454 = arith.addf %450, %453 : vector<8x8xf32>
    %c10_300 = arith.constant 10 : index
    %c0_301 = arith.constant 0 : index
    %c0_302 = arith.constant 0 : index
    %455 = vector.load %arg26[%c10_300, %c0_301, %c0_302] : memref<12x32x8xf32, #tpu.memory_space<vmem>>, vector<1x32x8xf32>
    %456 = vector.shape_cast %455 : vector<1x32x8xf32> to vector<32x8xf32>
    %cst_303 = arith.constant dense<0.000000e+00> : vector<8x8xf32>
    %457 = tpu.matmul %358, %456, %cst_303 {dimension_numbers = #tpu.dot_dimension_numbers<[1], [0], [0], [1], [0, 0, 1, 1], [], []>} : vector<8x32xf32>, vector<32x8xf32>, vector<8x8xf32> -> vector<8x8xf32>
    %c10_304 = arith.constant 10 : index
    %c0_305 = arith.constant 0 : index
    %c0_306 = arith.constant 0 : index
    %458 = vector.load %arg27[%c10_304, %c0_305, %c0_306] : memref<12x1x8xf32, #tpu.memory_space<vmem>>, vector<1x1x8xf32>
    %459 = vector.shape_cast %458 : vector<1x1x8xf32> to vector<1x8xf32>
    %460 = vector.broadcast %459 : vector<1x8xf32> to vector<8x8xf32>
    %461 = arith.addf %457, %460 : vector<8x8xf32>
    %cst_307 = arith.constant dense<0.000000e+00> : vector<8x8xf32>
    %462 = tpu.matmul %447, %454, %cst_307 {dimension_numbers = #tpu.dot_dimension_numbers<[1], [1], [0], [0], [0, 0, 1, 0], [], []>} : vector<8x8xf32>, vector<8x8xf32>, vector<8x8xf32> -> vector<8x8xf32>
    %463 = arith.addf %462, %5 : vector<8x8xf32>
    %cst_308 = arith.constant dense<0xFF800000> : vector<8xf32>
    %464 = vector.multi_reduction <maximumf>, %463, %cst_308 [1] : vector<8x8xf32> to vector<8xf32>
    %465 = vector.shape_cast %464 : vector<8xf32> to vector<8x1xf32>
    %466 = vector.broadcast %465 : vector<8x1xf32> to vector<8x8xf32>
    %467 = arith.subf %463, %466 : vector<8x8xf32>
    %468 = math.exp %467 : vector<8x8xf32>
    %cst_309 = arith.constant dense<0.000000e+00> : vector<8xf32>
    %469 = vector.multi_reduction <add>, %468, %cst_309 [1] : vector<8x8xf32> to vector<8xf32>
    %470 = vector.shape_cast %469 : vector<8xf32> to vector<8x1xf32>
    %471 = tpu.reciprocal %470 {approx = true} : vector<8x1xf32> -> vector<8x1xf32>
    %472 = vector.broadcast %471 : vector<8x1xf32> to vector<8x8xf32>
    %473 = arith.mulf %468, %472 : vector<8x8xf32>
    %cst_310 = arith.constant dense<0.000000e+00> : vector<8x8xf32>
    %474 = tpu.matmul %473, %461, %cst_310 {dimension_numbers = #tpu.dot_dimension_numbers<[1], [0], [0], [1], [0, 0, 1, 1], [], []>} : vector<8x8xf32>, vector<8x8xf32>, vector<8x8xf32> -> vector<8x8xf32>
    %c2_311 = arith.constant 2 : index
    %c0_312 = arith.constant 0 : index
    %c0_313 = arith.constant 0 : index
    %475 = vector.load %arg28[%c2_311, %c0_312, %c0_313] : memref<4x8x32xf32, #tpu.memory_space<vmem>>, vector<1x8x32xf32>
    %476 = vector.shape_cast %475 : vector<1x8x32xf32> to vector<8x32xf32>
    %cst_314 = arith.constant dense<0.000000e+00> : vector<8x32xf32>
    %477 = tpu.matmul %474, %476, %cst_314 {dimension_numbers = #tpu.dot_dimension_numbers<[1], [0], [0], [1], [0, 0, 1, 1], [], []>} : vector<8x8xf32>, vector<8x32xf32>, vector<8x32xf32> -> vector<8x32xf32>
    %478 = arith.addf %437, %477 : vector<8x32xf32>
    %479 = arith.addf %438, %473 : vector<8x8xf32>
    %c3_315 = arith.constant 3 : index
    %c0_316 = arith.constant 0 : index
    %c0_317 = arith.constant 0 : index
    %480 = vector.load %arg26[%c3_315, %c0_316, %c0_317] : memref<12x32x8xf32, #tpu.memory_space<vmem>>, vector<1x32x8xf32>
    %481 = vector.shape_cast %480 : vector<1x32x8xf32> to vector<32x8xf32>
    %cst_318 = arith.constant dense<0.000000e+00> : vector<8x8xf32>
    %482 = tpu.matmul %358, %481, %cst_318 {dimension_numbers = #tpu.dot_dimension_numbers<[1], [0], [0], [1], [0, 0, 1, 1], [], []>} : vector<8x32xf32>, vector<32x8xf32>, vector<8x8xf32> -> vector<8x8xf32>
    %c3_319 = arith.constant 3 : index
    %c0_320 = arith.constant 0 : index
    %c0_321 = arith.constant 0 : index
    %483 = vector.load %arg27[%c3_319, %c0_320, %c0_321] : memref<12x1x8xf32, #tpu.memory_space<vmem>>, vector<1x1x8xf32>
    %484 = vector.shape_cast %483 : vector<1x1x8xf32> to vector<1x8xf32>
    %485 = vector.broadcast %484 : vector<1x8xf32> to vector<8x8xf32>
    %486 = arith.addf %482, %485 : vector<8x8xf32>
    %cst_322 = arith.constant 0.353553385 : f32
    %487 = vector.broadcast %cst_322 : f32 to vector<8x8xf32>
    %488 = arith.mulf %486, %487 : vector<8x8xf32>
    %c7_323 = arith.constant 7 : index
    %c0_324 = arith.constant 0 : index
    %c0_325 = arith.constant 0 : index
    %489 = vector.load %arg26[%c7_323, %c0_324, %c0_325] : memref<12x32x8xf32, #tpu.memory_space<vmem>>, vector<1x32x8xf32>
    %490 = vector.shape_cast %489 : vector<1x32x8xf32> to vector<32x8xf32>
    %cst_326 = arith.constant dense<0.000000e+00> : vector<8x8xf32>
    %491 = tpu.matmul %358, %490, %cst_326 {dimension_numbers = #tpu.dot_dimension_numbers<[1], [0], [0], [1], [0, 0, 1, 1], [], []>} : vector<8x32xf32>, vector<32x8xf32>, vector<8x8xf32> -> vector<8x8xf32>
    %c7_327 = arith.constant 7 : index
    %c0_328 = arith.constant 0 : index
    %c0_329 = arith.constant 0 : index
    %492 = vector.load %arg27[%c7_327, %c0_328, %c0_329] : memref<12x1x8xf32, #tpu.memory_space<vmem>>, vector<1x1x8xf32>
    %493 = vector.shape_cast %492 : vector<1x1x8xf32> to vector<1x8xf32>
    %494 = vector.broadcast %493 : vector<1x8xf32> to vector<8x8xf32>
    %495 = arith.addf %491, %494 : vector<8x8xf32>
    %c11_330 = arith.constant 11 : index
    %c0_331 = arith.constant 0 : index
    %c0_332 = arith.constant 0 : index
    %496 = vector.load %arg26[%c11_330, %c0_331, %c0_332] : memref<12x32x8xf32, #tpu.memory_space<vmem>>, vector<1x32x8xf32>
    %497 = vector.shape_cast %496 : vector<1x32x8xf32> to vector<32x8xf32>
    %cst_333 = arith.constant dense<0.000000e+00> : vector<8x8xf32>
    %498 = tpu.matmul %358, %497, %cst_333 {dimension_numbers = #tpu.dot_dimension_numbers<[1], [0], [0], [1], [0, 0, 1, 1], [], []>} : vector<8x32xf32>, vector<32x8xf32>, vector<8x8xf32> -> vector<8x8xf32>
    %c11_334 = arith.constant 11 : index
    %c0_335 = arith.constant 0 : index
    %c0_336 = arith.constant 0 : index
    %499 = vector.load %arg27[%c11_334, %c0_335, %c0_336] : memref<12x1x8xf32, #tpu.memory_space<vmem>>, vector<1x1x8xf32>
    %500 = vector.shape_cast %499 : vector<1x1x8xf32> to vector<1x8xf32>
    %501 = vector.broadcast %500 : vector<1x8xf32> to vector<8x8xf32>
    %502 = arith.addf %498, %501 : vector<8x8xf32>
    %cst_337 = arith.constant dense<0.000000e+00> : vector<8x8xf32>
    %503 = tpu.matmul %488, %495, %cst_337 {dimension_numbers = #tpu.dot_dimension_numbers<[1], [1], [0], [0], [0, 0, 1, 0], [], []>} : vector<8x8xf32>, vector<8x8xf32>, vector<8x8xf32> -> vector<8x8xf32>
    %504 = arith.addf %503, %5 : vector<8x8xf32>
    %cst_338 = arith.constant dense<0xFF800000> : vector<8xf32>
    %505 = vector.multi_reduction <maximumf>, %504, %cst_338 [1] : vector<8x8xf32> to vector<8xf32>
    %506 = vector.shape_cast %505 : vector<8xf32> to vector<8x1xf32>
    %507 = vector.broadcast %506 : vector<8x1xf32> to vector<8x8xf32>
    %508 = arith.subf %504, %507 : vector<8x8xf32>
    %509 = math.exp %508 : vector<8x8xf32>
    %cst_339 = arith.constant dense<0.000000e+00> : vector<8xf32>
    %510 = vector.multi_reduction <add>, %509, %cst_339 [1] : vector<8x8xf32> to vector<8xf32>
    %511 = vector.shape_cast %510 : vector<8xf32> to vector<8x1xf32>
    %512 = tpu.reciprocal %511 {approx = true} : vector<8x1xf32> -> vector<8x1xf32>
    %513 = vector.broadcast %512 : vector<8x1xf32> to vector<8x8xf32>
    %514 = arith.mulf %509, %513 : vector<8x8xf32>
    %cst_340 = arith.constant dense<0.000000e+00> : vector<8x8xf32>
    %515 = tpu.matmul %514, %502, %cst_340 {dimension_numbers = #tpu.dot_dimension_numbers<[1], [0], [0], [1], [0, 0, 1, 1], [], []>} : vector<8x8xf32>, vector<8x8xf32>, vector<8x8xf32> -> vector<8x8xf32>
    %c3_341 = arith.constant 3 : index
    %c0_342 = arith.constant 0 : index
    %c0_343 = arith.constant 0 : index
    %516 = vector.load %arg28[%c3_341, %c0_342, %c0_343] : memref<4x8x32xf32, #tpu.memory_space<vmem>>, vector<1x8x32xf32>
    %517 = vector.shape_cast %516 : vector<1x8x32xf32> to vector<8x32xf32>
    %cst_344 = arith.constant dense<0.000000e+00> : vector<8x32xf32>
    %518 = tpu.matmul %515, %517, %cst_344 {dimension_numbers = #tpu.dot_dimension_numbers<[1], [0], [0], [1], [0, 0, 1, 1], [], []>} : vector<8x8xf32>, vector<8x32xf32>, vector<8x32xf32> -> vector<8x32xf32>
    %519 = arith.addf %478, %518 : vector<8x32xf32>
    %520 = arith.addf %479, %514 : vector<8x8xf32>
    %c0_345 = arith.constant 0 : index
    %c0_346 = arith.constant 0 : index
    %521 = vector.load %arg29[%c0_345, %c0_346] : memref<1x32xf32, #tpu.memory_space<vmem>>, vector<1x32xf32>
    %522 = vector.broadcast %521 : vector<1x32xf32> to vector<8x32xf32>
    %523 = arith.addf %519, %522 : vector<8x32xf32>
    %cst_347 = arith.constant 2.500000e-01 : f32
    %524 = vector.broadcast %cst_347 : f32 to vector<8x8xf32>
    %525 = arith.mulf %520, %524 : vector<8x8xf32>
    %526 = arith.addf %1, %523 : vector<8x32xf32>
    %cst_348 = arith.constant dense<0.000000e+00> : vector<8xf32>
    %527 = vector.multi_reduction <add>, %526, %cst_348 [1] : vector<8x32xf32> to vector<8xf32>
    %528 = vector.shape_cast %527 : vector<8xf32> to vector<8x1xf32>
    %cst_349 = arith.constant 3.200000e+01 : f32
    %529 = vector.broadcast %cst_349 : f32 to vector<8x1xf32>
    %530 = arith.divf %528, %529 : vector<8x1xf32>
    %531 = vector.broadcast %530 : vector<8x1xf32> to vector<8x32xf32>
    %532 = arith.subf %526, %531 : vector<8x32xf32>
    %533 = arith.mulf %532, %532 : vector<8x32xf32>
    %cst_350 = arith.constant dense<0.000000e+00> : vector<8xf32>
    %534 = vector.multi_reduction <add>, %533, %cst_350 [1] : vector<8x32xf32> to vector<8xf32>
    %535 = vector.shape_cast %534 : vector<8xf32> to vector<8x1xf32>
    %cst_351 = arith.constant 3.200000e+01 : f32
    %536 = vector.broadcast %cst_351 : f32 to vector<8x1xf32>
    %537 = arith.divf %535, %536 : vector<8x1xf32>
    %cst_352 = arith.constant 9.99999974E-6 : f32
    %538 = vector.broadcast %cst_352 : f32 to vector<8x1xf32>
    %539 = arith.addf %537, %538 : vector<8x1xf32>
    %540 = math.rsqrt %539 : vector<8x1xf32>
    %541 = vector.broadcast %540 : vector<8x1xf32> to vector<8x32xf32>
    %542 = arith.mulf %532, %541 : vector<8x32xf32>
    %c0_353 = arith.constant 0 : index
    %c0_354 = arith.constant 0 : index
    %543 = vector.load %arg30[%c0_353, %c0_354] : memref<1x32xf32, #tpu.memory_space<vmem>>, vector<1x32xf32>
    %544 = vector.broadcast %543 : vector<1x32xf32> to vector<8x32xf32>
    %545 = arith.mulf %542, %544 : vector<8x32xf32>
    %c0_355 = arith.constant 0 : index
    %c0_356 = arith.constant 0 : index
    %546 = vector.load %arg31[%c0_355, %c0_356] : memref<1x32xf32, #tpu.memory_space<vmem>>, vector<1x32xf32>
    %547 = vector.broadcast %546 : vector<1x32xf32> to vector<8x32xf32>
    %548 = arith.addf %545, %547 : vector<8x32xf32>
    %c0_357 = arith.constant 0 : index
    %c0_358 = arith.constant 0 : index
    %c0_359 = arith.constant 0 : index
    %549 = vector.load %arg32[%c0_357, %c0_358, %c0_359] : memref<12x32x8xf32, #tpu.memory_space<vmem>>, vector<1x32x8xf32>
    %550 = vector.shape_cast %549 : vector<1x32x8xf32> to vector<32x8xf32>
    %cst_360 = arith.constant dense<0.000000e+00> : vector<8x8xf32>
    %551 = tpu.matmul %548, %550, %cst_360 {dimension_numbers = #tpu.dot_dimension_numbers<[1], [0], [0], [1], [0, 0, 1, 1], [], []>} : vector<8x32xf32>, vector<32x8xf32>, vector<8x8xf32> -> vector<8x8xf32>
    %c0_361 = arith.constant 0 : index
    %c0_362 = arith.constant 0 : index
    %c0_363 = arith.constant 0 : index
    %552 = vector.load %arg33[%c0_361, %c0_362, %c0_363] : memref<12x1x8xf32, #tpu.memory_space<vmem>>, vector<1x1x8xf32>
    %553 = vector.shape_cast %552 : vector<1x1x8xf32> to vector<1x8xf32>
    %554 = vector.broadcast %553 : vector<1x8xf32> to vector<8x8xf32>
    %555 = arith.addf %551, %554 : vector<8x8xf32>
    %cst_364 = arith.constant 0.353553385 : f32
    %556 = vector.broadcast %cst_364 : f32 to vector<8x8xf32>
    %557 = arith.mulf %555, %556 : vector<8x8xf32>
    %c4_365 = arith.constant 4 : index
    %c0_366 = arith.constant 0 : index
    %c0_367 = arith.constant 0 : index
    %558 = vector.load %arg32[%c4_365, %c0_366, %c0_367] : memref<12x32x8xf32, #tpu.memory_space<vmem>>, vector<1x32x8xf32>
    %559 = vector.shape_cast %558 : vector<1x32x8xf32> to vector<32x8xf32>
    %cst_368 = arith.constant dense<0.000000e+00> : vector<10x8xf32>
    %560 = tpu.matmul %3, %559, %cst_368 {dimension_numbers = #tpu.dot_dimension_numbers<[1], [0], [0], [1], [0, 0, 1, 1], [], []>} : vector<10x32xf32>, vector<32x8xf32>, vector<10x8xf32> -> vector<10x8xf32>
    %c4_369 = arith.constant 4 : index
    %c0_370 = arith.constant 0 : index
    %c0_371 = arith.constant 0 : index
    %561 = vector.load %arg33[%c4_369, %c0_370, %c0_371] : memref<12x1x8xf32, #tpu.memory_space<vmem>>, vector<1x1x8xf32>
    %562 = vector.shape_cast %561 : vector<1x1x8xf32> to vector<1x8xf32>
    %563 = vector.broadcast %562 : vector<1x8xf32> to vector<10x8xf32>
    %564 = arith.addf %560, %563 : vector<10x8xf32>
    %c8_372 = arith.constant 8 : index
    %c0_373 = arith.constant 0 : index
    %c0_374 = arith.constant 0 : index
    %565 = vector.load %arg32[%c8_372, %c0_373, %c0_374] : memref<12x32x8xf32, #tpu.memory_space<vmem>>, vector<1x32x8xf32>
    %566 = vector.shape_cast %565 : vector<1x32x8xf32> to vector<32x8xf32>
    %cst_375 = arith.constant dense<0.000000e+00> : vector<10x8xf32>
    %567 = tpu.matmul %3, %566, %cst_375 {dimension_numbers = #tpu.dot_dimension_numbers<[1], [0], [0], [1], [0, 0, 1, 1], [], []>} : vector<10x32xf32>, vector<32x8xf32>, vector<10x8xf32> -> vector<10x8xf32>
    %c8_376 = arith.constant 8 : index
    %c0_377 = arith.constant 0 : index
    %c0_378 = arith.constant 0 : index
    %568 = vector.load %arg33[%c8_376, %c0_377, %c0_378] : memref<12x1x8xf32, #tpu.memory_space<vmem>>, vector<1x1x8xf32>
    %569 = vector.shape_cast %568 : vector<1x1x8xf32> to vector<1x8xf32>
    %570 = vector.broadcast %569 : vector<1x8xf32> to vector<10x8xf32>
    %571 = arith.addf %567, %570 : vector<10x8xf32>
    %cst_379 = arith.constant dense<0.000000e+00> : vector<8x10xf32>
    %572 = tpu.matmul %557, %564, %cst_379 {dimension_numbers = #tpu.dot_dimension_numbers<[1], [1], [0], [0], [0, 0, 1, 0], [], []>} : vector<8x8xf32>, vector<10x8xf32>, vector<8x10xf32> -> vector<8x10xf32>
    %cst_380 = arith.constant dense<0xFF800000> : vector<8xf32>
    %573 = vector.multi_reduction <maximumf>, %572, %cst_380 [1] : vector<8x10xf32> to vector<8xf32>
    %574 = vector.shape_cast %573 : vector<8xf32> to vector<8x1xf32>
    %575 = vector.broadcast %574 : vector<8x1xf32> to vector<8x10xf32>
    %576 = arith.subf %572, %575 : vector<8x10xf32>
    %577 = math.exp %576 : vector<8x10xf32>
    %cst_381 = arith.constant dense<0.000000e+00> : vector<8xf32>
    %578 = vector.multi_reduction <add>, %577, %cst_381 [1] : vector<8x10xf32> to vector<8xf32>
    %579 = vector.shape_cast %578 : vector<8xf32> to vector<8x1xf32>
    %580 = tpu.reciprocal %579 {approx = true} : vector<8x1xf32> -> vector<8x1xf32>
    %581 = vector.broadcast %580 : vector<8x1xf32> to vector<8x10xf32>
    %582 = arith.mulf %577, %581 : vector<8x10xf32>
    %cst_382 = arith.constant dense<0.000000e+00> : vector<8x8xf32>
    %583 = tpu.matmul %582, %571, %cst_382 {dimension_numbers = #tpu.dot_dimension_numbers<[1], [0], [0], [1], [0, 0, 1, 1], [], []>} : vector<8x10xf32>, vector<10x8xf32>, vector<8x8xf32> -> vector<8x8xf32>
    %c0_383 = arith.constant 0 : index
    %c0_384 = arith.constant 0 : index
    %c0_385 = arith.constant 0 : index
    %584 = vector.load %arg34[%c0_383, %c0_384, %c0_385] : memref<4x8x32xf32, #tpu.memory_space<vmem>>, vector<1x8x32xf32>
    %585 = vector.shape_cast %584 : vector<1x8x32xf32> to vector<8x32xf32>
    %cst_386 = arith.constant dense<0.000000e+00> : vector<8x32xf32>
    %586 = tpu.matmul %583, %585, %cst_386 {dimension_numbers = #tpu.dot_dimension_numbers<[1], [0], [0], [1], [0, 0, 1, 1], [], []>} : vector<8x8xf32>, vector<8x32xf32>, vector<8x32xf32> -> vector<8x32xf32>
    %c1_387 = arith.constant 1 : index
    %c0_388 = arith.constant 0 : index
    %c0_389 = arith.constant 0 : index
    %587 = vector.load %arg32[%c1_387, %c0_388, %c0_389] : memref<12x32x8xf32, #tpu.memory_space<vmem>>, vector<1x32x8xf32>
    %588 = vector.shape_cast %587 : vector<1x32x8xf32> to vector<32x8xf32>
    %cst_390 = arith.constant dense<0.000000e+00> : vector<8x8xf32>
    %589 = tpu.matmul %548, %588, %cst_390 {dimension_numbers = #tpu.dot_dimension_numbers<[1], [0], [0], [1], [0, 0, 1, 1], [], []>} : vector<8x32xf32>, vector<32x8xf32>, vector<8x8xf32> -> vector<8x8xf32>
    %c1_391 = arith.constant 1 : index
    %c0_392 = arith.constant 0 : index
    %c0_393 = arith.constant 0 : index
    %590 = vector.load %arg33[%c1_391, %c0_392, %c0_393] : memref<12x1x8xf32, #tpu.memory_space<vmem>>, vector<1x1x8xf32>
    %591 = vector.shape_cast %590 : vector<1x1x8xf32> to vector<1x8xf32>
    %592 = vector.broadcast %591 : vector<1x8xf32> to vector<8x8xf32>
    %593 = arith.addf %589, %592 : vector<8x8xf32>
    %cst_394 = arith.constant 0.353553385 : f32
    %594 = vector.broadcast %cst_394 : f32 to vector<8x8xf32>
    %595 = arith.mulf %593, %594 : vector<8x8xf32>
    %c5_395 = arith.constant 5 : index
    %c0_396 = arith.constant 0 : index
    %c0_397 = arith.constant 0 : index
    %596 = vector.load %arg32[%c5_395, %c0_396, %c0_397] : memref<12x32x8xf32, #tpu.memory_space<vmem>>, vector<1x32x8xf32>
    %597 = vector.shape_cast %596 : vector<1x32x8xf32> to vector<32x8xf32>
    %cst_398 = arith.constant dense<0.000000e+00> : vector<10x8xf32>
    %598 = tpu.matmul %3, %597, %cst_398 {dimension_numbers = #tpu.dot_dimension_numbers<[1], [0], [0], [1], [0, 0, 1, 1], [], []>} : vector<10x32xf32>, vector<32x8xf32>, vector<10x8xf32> -> vector<10x8xf32>
    %c5_399 = arith.constant 5 : index
    %c0_400 = arith.constant 0 : index
    %c0_401 = arith.constant 0 : index
    %599 = vector.load %arg33[%c5_399, %c0_400, %c0_401] : memref<12x1x8xf32, #tpu.memory_space<vmem>>, vector<1x1x8xf32>
    %600 = vector.shape_cast %599 : vector<1x1x8xf32> to vector<1x8xf32>
    %601 = vector.broadcast %600 : vector<1x8xf32> to vector<10x8xf32>
    %602 = arith.addf %598, %601 : vector<10x8xf32>
    %c9_402 = arith.constant 9 : index
    %c0_403 = arith.constant 0 : index
    %c0_404 = arith.constant 0 : index
    %603 = vector.load %arg32[%c9_402, %c0_403, %c0_404] : memref<12x32x8xf32, #tpu.memory_space<vmem>>, vector<1x32x8xf32>
    %604 = vector.shape_cast %603 : vector<1x32x8xf32> to vector<32x8xf32>
    %cst_405 = arith.constant dense<0.000000e+00> : vector<10x8xf32>
    %605 = tpu.matmul %3, %604, %cst_405 {dimension_numbers = #tpu.dot_dimension_numbers<[1], [0], [0], [1], [0, 0, 1, 1], [], []>} : vector<10x32xf32>, vector<32x8xf32>, vector<10x8xf32> -> vector<10x8xf32>
    %c9_406 = arith.constant 9 : index
    %c0_407 = arith.constant 0 : index
    %c0_408 = arith.constant 0 : index
    %606 = vector.load %arg33[%c9_406, %c0_407, %c0_408] : memref<12x1x8xf32, #tpu.memory_space<vmem>>, vector<1x1x8xf32>
    %607 = vector.shape_cast %606 : vector<1x1x8xf32> to vector<1x8xf32>
    %608 = vector.broadcast %607 : vector<1x8xf32> to vector<10x8xf32>
    %609 = arith.addf %605, %608 : vector<10x8xf32>
    %cst_409 = arith.constant dense<0.000000e+00> : vector<8x10xf32>
    %610 = tpu.matmul %595, %602, %cst_409 {dimension_numbers = #tpu.dot_dimension_numbers<[1], [1], [0], [0], [0, 0, 1, 0], [], []>} : vector<8x8xf32>, vector<10x8xf32>, vector<8x10xf32> -> vector<8x10xf32>
    %cst_410 = arith.constant dense<0xFF800000> : vector<8xf32>
    %611 = vector.multi_reduction <maximumf>, %610, %cst_410 [1] : vector<8x10xf32> to vector<8xf32>
    %612 = vector.shape_cast %611 : vector<8xf32> to vector<8x1xf32>
    %613 = vector.broadcast %612 : vector<8x1xf32> to vector<8x10xf32>
    %614 = arith.subf %610, %613 : vector<8x10xf32>
    %615 = math.exp %614 : vector<8x10xf32>
    %cst_411 = arith.constant dense<0.000000e+00> : vector<8xf32>
    %616 = vector.multi_reduction <add>, %615, %cst_411 [1] : vector<8x10xf32> to vector<8xf32>
    %617 = vector.shape_cast %616 : vector<8xf32> to vector<8x1xf32>
    %618 = tpu.reciprocal %617 {approx = true} : vector<8x1xf32> -> vector<8x1xf32>
    %619 = vector.broadcast %618 : vector<8x1xf32> to vector<8x10xf32>
    %620 = arith.mulf %615, %619 : vector<8x10xf32>
    %cst_412 = arith.constant dense<0.000000e+00> : vector<8x8xf32>
    %621 = tpu.matmul %620, %609, %cst_412 {dimension_numbers = #tpu.dot_dimension_numbers<[1], [0], [0], [1], [0, 0, 1, 1], [], []>} : vector<8x10xf32>, vector<10x8xf32>, vector<8x8xf32> -> vector<8x8xf32>
    %c1_413 = arith.constant 1 : index
    %c0_414 = arith.constant 0 : index
    %c0_415 = arith.constant 0 : index
    %622 = vector.load %arg34[%c1_413, %c0_414, %c0_415] : memref<4x8x32xf32, #tpu.memory_space<vmem>>, vector<1x8x32xf32>
    %623 = vector.shape_cast %622 : vector<1x8x32xf32> to vector<8x32xf32>
    %cst_416 = arith.constant dense<0.000000e+00> : vector<8x32xf32>
    %624 = tpu.matmul %621, %623, %cst_416 {dimension_numbers = #tpu.dot_dimension_numbers<[1], [0], [0], [1], [0, 0, 1, 1], [], []>} : vector<8x8xf32>, vector<8x32xf32>, vector<8x32xf32> -> vector<8x32xf32>
    %625 = arith.addf %586, %624 : vector<8x32xf32>
    %626 = arith.addf %582, %620 : vector<8x10xf32>
    %c2_417 = arith.constant 2 : index
    %c0_418 = arith.constant 0 : index
    %c0_419 = arith.constant 0 : index
    %627 = vector.load %arg32[%c2_417, %c0_418, %c0_419] : memref<12x32x8xf32, #tpu.memory_space<vmem>>, vector<1x32x8xf32>
    %628 = vector.shape_cast %627 : vector<1x32x8xf32> to vector<32x8xf32>
    %cst_420 = arith.constant dense<0.000000e+00> : vector<8x8xf32>
    %629 = tpu.matmul %548, %628, %cst_420 {dimension_numbers = #tpu.dot_dimension_numbers<[1], [0], [0], [1], [0, 0, 1, 1], [], []>} : vector<8x32xf32>, vector<32x8xf32>, vector<8x8xf32> -> vector<8x8xf32>
    %c2_421 = arith.constant 2 : index
    %c0_422 = arith.constant 0 : index
    %c0_423 = arith.constant 0 : index
    %630 = vector.load %arg33[%c2_421, %c0_422, %c0_423] : memref<12x1x8xf32, #tpu.memory_space<vmem>>, vector<1x1x8xf32>
    %631 = vector.shape_cast %630 : vector<1x1x8xf32> to vector<1x8xf32>
    %632 = vector.broadcast %631 : vector<1x8xf32> to vector<8x8xf32>
    %633 = arith.addf %629, %632 : vector<8x8xf32>
    %cst_424 = arith.constant 0.353553385 : f32
    %634 = vector.broadcast %cst_424 : f32 to vector<8x8xf32>
    %635 = arith.mulf %633, %634 : vector<8x8xf32>
    %c6_425 = arith.constant 6 : index
    %c0_426 = arith.constant 0 : index
    %c0_427 = arith.constant 0 : index
    %636 = vector.load %arg32[%c6_425, %c0_426, %c0_427] : memref<12x32x8xf32, #tpu.memory_space<vmem>>, vector<1x32x8xf32>
    %637 = vector.shape_cast %636 : vector<1x32x8xf32> to vector<32x8xf32>
    %cst_428 = arith.constant dense<0.000000e+00> : vector<10x8xf32>
    %638 = tpu.matmul %3, %637, %cst_428 {dimension_numbers = #tpu.dot_dimension_numbers<[1], [0], [0], [1], [0, 0, 1, 1], [], []>} : vector<10x32xf32>, vector<32x8xf32>, vector<10x8xf32> -> vector<10x8xf32>
    %c6_429 = arith.constant 6 : index
    %c0_430 = arith.constant 0 : index
    %c0_431 = arith.constant 0 : index
    %639 = vector.load %arg33[%c6_429, %c0_430, %c0_431] : memref<12x1x8xf32, #tpu.memory_space<vmem>>, vector<1x1x8xf32>
    %640 = vector.shape_cast %639 : vector<1x1x8xf32> to vector<1x8xf32>
    %641 = vector.broadcast %640 : vector<1x8xf32> to vector<10x8xf32>
    %642 = arith.addf %638, %641 : vector<10x8xf32>
    %c10_432 = arith.constant 10 : index
    %c0_433 = arith.constant 0 : index
    %c0_434 = arith.constant 0 : index
    %643 = vector.load %arg32[%c10_432, %c0_433, %c0_434] : memref<12x32x8xf32, #tpu.memory_space<vmem>>, vector<1x32x8xf32>
    %644 = vector.shape_cast %643 : vector<1x32x8xf32> to vector<32x8xf32>
    %cst_435 = arith.constant dense<0.000000e+00> : vector<10x8xf32>
    %645 = tpu.matmul %3, %644, %cst_435 {dimension_numbers = #tpu.dot_dimension_numbers<[1], [0], [0], [1], [0, 0, 1, 1], [], []>} : vector<10x32xf32>, vector<32x8xf32>, vector<10x8xf32> -> vector<10x8xf32>
    %c10_436 = arith.constant 10 : index
    %c0_437 = arith.constant 0 : index
    %c0_438 = arith.constant 0 : index
    %646 = vector.load %arg33[%c10_436, %c0_437, %c0_438] : memref<12x1x8xf32, #tpu.memory_space<vmem>>, vector<1x1x8xf32>
    %647 = vector.shape_cast %646 : vector<1x1x8xf32> to vector<1x8xf32>
    %648 = vector.broadcast %647 : vector<1x8xf32> to vector<10x8xf32>
    %649 = arith.addf %645, %648 : vector<10x8xf32>
    %cst_439 = arith.constant dense<0.000000e+00> : vector<8x10xf32>
    %650 = tpu.matmul %635, %642, %cst_439 {dimension_numbers = #tpu.dot_dimension_numbers<[1], [1], [0], [0], [0, 0, 1, 0], [], []>} : vector<8x8xf32>, vector<10x8xf32>, vector<8x10xf32> -> vector<8x10xf32>
    %cst_440 = arith.constant dense<0xFF800000> : vector<8xf32>
    %651 = vector.multi_reduction <maximumf>, %650, %cst_440 [1] : vector<8x10xf32> to vector<8xf32>
    %652 = vector.shape_cast %651 : vector<8xf32> to vector<8x1xf32>
    %653 = vector.broadcast %652 : vector<8x1xf32> to vector<8x10xf32>
    %654 = arith.subf %650, %653 : vector<8x10xf32>
    %655 = math.exp %654 : vector<8x10xf32>
    %cst_441 = arith.constant dense<0.000000e+00> : vector<8xf32>
    %656 = vector.multi_reduction <add>, %655, %cst_441 [1] : vector<8x10xf32> to vector<8xf32>
    %657 = vector.shape_cast %656 : vector<8xf32> to vector<8x1xf32>
    %658 = tpu.reciprocal %657 {approx = true} : vector<8x1xf32> -> vector<8x1xf32>
    %659 = vector.broadcast %658 : vector<8x1xf32> to vector<8x10xf32>
    %660 = arith.mulf %655, %659 : vector<8x10xf32>
    %cst_442 = arith.constant dense<0.000000e+00> : vector<8x8xf32>
    %661 = tpu.matmul %660, %649, %cst_442 {dimension_numbers = #tpu.dot_dimension_numbers<[1], [0], [0], [1], [0, 0, 1, 1], [], []>} : vector<8x10xf32>, vector<10x8xf32>, vector<8x8xf32> -> vector<8x8xf32>
    %c2_443 = arith.constant 2 : index
    %c0_444 = arith.constant 0 : index
    %c0_445 = arith.constant 0 : index
    %662 = vector.load %arg34[%c2_443, %c0_444, %c0_445] : memref<4x8x32xf32, #tpu.memory_space<vmem>>, vector<1x8x32xf32>
    %663 = vector.shape_cast %662 : vector<1x8x32xf32> to vector<8x32xf32>
    %cst_446 = arith.constant dense<0.000000e+00> : vector<8x32xf32>
    %664 = tpu.matmul %661, %663, %cst_446 {dimension_numbers = #tpu.dot_dimension_numbers<[1], [0], [0], [1], [0, 0, 1, 1], [], []>} : vector<8x8xf32>, vector<8x32xf32>, vector<8x32xf32> -> vector<8x32xf32>
    %665 = arith.addf %625, %664 : vector<8x32xf32>
    %666 = arith.addf %626, %660 : vector<8x10xf32>
    %c3_447 = arith.constant 3 : index
    %c0_448 = arith.constant 0 : index
    %c0_449 = arith.constant 0 : index
    %667 = vector.load %arg32[%c3_447, %c0_448, %c0_449] : memref<12x32x8xf32, #tpu.memory_space<vmem>>, vector<1x32x8xf32>
    %668 = vector.shape_cast %667 : vector<1x32x8xf32> to vector<32x8xf32>
    %cst_450 = arith.constant dense<0.000000e+00> : vector<8x8xf32>
    %669 = tpu.matmul %548, %668, %cst_450 {dimension_numbers = #tpu.dot_dimension_numbers<[1], [0], [0], [1], [0, 0, 1, 1], [], []>} : vector<8x32xf32>, vector<32x8xf32>, vector<8x8xf32> -> vector<8x8xf32>
    %c3_451 = arith.constant 3 : index
    %c0_452 = arith.constant 0 : index
    %c0_453 = arith.constant 0 : index
    %670 = vector.load %arg33[%c3_451, %c0_452, %c0_453] : memref<12x1x8xf32, #tpu.memory_space<vmem>>, vector<1x1x8xf32>
    %671 = vector.shape_cast %670 : vector<1x1x8xf32> to vector<1x8xf32>
    %672 = vector.broadcast %671 : vector<1x8xf32> to vector<8x8xf32>
    %673 = arith.addf %669, %672 : vector<8x8xf32>
    %cst_454 = arith.constant 0.353553385 : f32
    %674 = vector.broadcast %cst_454 : f32 to vector<8x8xf32>
    %675 = arith.mulf %673, %674 : vector<8x8xf32>
    %c7_455 = arith.constant 7 : index
    %c0_456 = arith.constant 0 : index
    %c0_457 = arith.constant 0 : index
    %676 = vector.load %arg32[%c7_455, %c0_456, %c0_457] : memref<12x32x8xf32, #tpu.memory_space<vmem>>, vector<1x32x8xf32>
    %677 = vector.shape_cast %676 : vector<1x32x8xf32> to vector<32x8xf32>
    %cst_458 = arith.constant dense<0.000000e+00> : vector<10x8xf32>
    %678 = tpu.matmul %3, %677, %cst_458 {dimension_numbers = #tpu.dot_dimension_numbers<[1], [0], [0], [1], [0, 0, 1, 1], [], []>} : vector<10x32xf32>, vector<32x8xf32>, vector<10x8xf32> -> vector<10x8xf32>
    %c7_459 = arith.constant 7 : index
    %c0_460 = arith.constant 0 : index
    %c0_461 = arith.constant 0 : index
    %679 = vector.load %arg33[%c7_459, %c0_460, %c0_461] : memref<12x1x8xf32, #tpu.memory_space<vmem>>, vector<1x1x8xf32>
    %680 = vector.shape_cast %679 : vector<1x1x8xf32> to vector<1x8xf32>
    %681 = vector.broadcast %680 : vector<1x8xf32> to vector<10x8xf32>
    %682 = arith.addf %678, %681 : vector<10x8xf32>
    %c11_462 = arith.constant 11 : index
    %c0_463 = arith.constant 0 : index
    %c0_464 = arith.constant 0 : index
    %683 = vector.load %arg32[%c11_462, %c0_463, %c0_464] : memref<12x32x8xf32, #tpu.memory_space<vmem>>, vector<1x32x8xf32>
    %684 = vector.shape_cast %683 : vector<1x32x8xf32> to vector<32x8xf32>
    %cst_465 = arith.constant dense<0.000000e+00> : vector<10x8xf32>
    %685 = tpu.matmul %3, %684, %cst_465 {dimension_numbers = #tpu.dot_dimension_numbers<[1], [0], [0], [1], [0, 0, 1, 1], [], []>} : vector<10x32xf32>, vector<32x8xf32>, vector<10x8xf32> -> vector<10x8xf32>
    %c11_466 = arith.constant 11 : index
    %c0_467 = arith.constant 0 : index
    %c0_468 = arith.constant 0 : index
    %686 = vector.load %arg33[%c11_466, %c0_467, %c0_468] : memref<12x1x8xf32, #tpu.memory_space<vmem>>, vector<1x1x8xf32>
    %687 = vector.shape_cast %686 : vector<1x1x8xf32> to vector<1x8xf32>
    %688 = vector.broadcast %687 : vector<1x8xf32> to vector<10x8xf32>
    %689 = arith.addf %685, %688 : vector<10x8xf32>
    %cst_469 = arith.constant dense<0.000000e+00> : vector<8x10xf32>
    %690 = tpu.matmul %675, %682, %cst_469 {dimension_numbers = #tpu.dot_dimension_numbers<[1], [1], [0], [0], [0, 0, 1, 0], [], []>} : vector<8x8xf32>, vector<10x8xf32>, vector<8x10xf32> -> vector<8x10xf32>
    %cst_470 = arith.constant dense<0xFF800000> : vector<8xf32>
    %691 = vector.multi_reduction <maximumf>, %690, %cst_470 [1] : vector<8x10xf32> to vector<8xf32>
    %692 = vector.shape_cast %691 : vector<8xf32> to vector<8x1xf32>
    %693 = vector.broadcast %692 : vector<8x1xf32> to vector<8x10xf32>
    %694 = arith.subf %690, %693 : vector<8x10xf32>
    %695 = math.exp %694 : vector<8x10xf32>
    %cst_471 = arith.constant dense<0.000000e+00> : vector<8xf32>
    %696 = vector.multi_reduction <add>, %695, %cst_471 [1] : vector<8x10xf32> to vector<8xf32>
    %697 = vector.shape_cast %696 : vector<8xf32> to vector<8x1xf32>
    %698 = tpu.reciprocal %697 {approx = true} : vector<8x1xf32> -> vector<8x1xf32>
    %699 = vector.broadcast %698 : vector<8x1xf32> to vector<8x10xf32>
    %700 = arith.mulf %695, %699 : vector<8x10xf32>
    %cst_472 = arith.constant dense<0.000000e+00> : vector<8x8xf32>
    %701 = tpu.matmul %700, %689, %cst_472 {dimension_numbers = #tpu.dot_dimension_numbers<[1], [0], [0], [1], [0, 0, 1, 1], [], []>} : vector<8x10xf32>, vector<10x8xf32>, vector<8x8xf32> -> vector<8x8xf32>
    %c3_473 = arith.constant 3 : index
    %c0_474 = arith.constant 0 : index
    %c0_475 = arith.constant 0 : index
    %702 = vector.load %arg34[%c3_473, %c0_474, %c0_475] : memref<4x8x32xf32, #tpu.memory_space<vmem>>, vector<1x8x32xf32>
    %703 = vector.shape_cast %702 : vector<1x8x32xf32> to vector<8x32xf32>
    %cst_476 = arith.constant dense<0.000000e+00> : vector<8x32xf32>
    %704 = tpu.matmul %701, %703, %cst_476 {dimension_numbers = #tpu.dot_dimension_numbers<[1], [0], [0], [1], [0, 0, 1, 1], [], []>} : vector<8x8xf32>, vector<8x32xf32>, vector<8x32xf32> -> vector<8x32xf32>
    %705 = arith.addf %665, %704 : vector<8x32xf32>
    %706 = arith.addf %666, %700 : vector<8x10xf32>
    %c0_477 = arith.constant 0 : index
    %c0_478 = arith.constant 0 : index
    %707 = vector.load %arg35[%c0_477, %c0_478] : memref<1x32xf32, #tpu.memory_space<vmem>>, vector<1x32xf32>
    %708 = vector.broadcast %707 : vector<1x32xf32> to vector<8x32xf32>
    %709 = arith.addf %705, %708 : vector<8x32xf32>
    %cst_479 = arith.constant 2.500000e-01 : f32
    %710 = vector.broadcast %cst_479 : f32 to vector<8x10xf32>
    %711 = arith.mulf %706, %710 : vector<8x10xf32>
    %712 = arith.addf %709, %526 : vector<8x32xf32>
    %cst_480 = arith.constant dense<0.000000e+00> : vector<8xf32>
    %713 = vector.multi_reduction <add>, %712, %cst_480 [1] : vector<8x32xf32> to vector<8xf32>
    %714 = vector.shape_cast %713 : vector<8xf32> to vector<8x1xf32>
    %cst_481 = arith.constant 3.200000e+01 : f32
    %715 = vector.broadcast %cst_481 : f32 to vector<8x1xf32>
    %716 = arith.divf %714, %715 : vector<8x1xf32>
    %717 = vector.broadcast %716 : vector<8x1xf32> to vector<8x32xf32>
    %718 = arith.subf %712, %717 : vector<8x32xf32>
    %719 = arith.mulf %718, %718 : vector<8x32xf32>
    %cst_482 = arith.constant dense<0.000000e+00> : vector<8xf32>
    %720 = vector.multi_reduction <add>, %719, %cst_482 [1] : vector<8x32xf32> to vector<8xf32>
    %721 = vector.shape_cast %720 : vector<8xf32> to vector<8x1xf32>
    %cst_483 = arith.constant 3.200000e+01 : f32
    %722 = vector.broadcast %cst_483 : f32 to vector<8x1xf32>
    %723 = arith.divf %721, %722 : vector<8x1xf32>
    %cst_484 = arith.constant 9.99999974E-6 : f32
    %724 = vector.broadcast %cst_484 : f32 to vector<8x1xf32>
    %725 = arith.addf %723, %724 : vector<8x1xf32>
    %726 = math.rsqrt %725 : vector<8x1xf32>
    %727 = vector.broadcast %726 : vector<8x1xf32> to vector<8x32xf32>
    %728 = arith.mulf %718, %727 : vector<8x32xf32>
    %c0_485 = arith.constant 0 : index
    %c0_486 = arith.constant 0 : index
    %729 = vector.load %arg36[%c0_485, %c0_486] : memref<1x32xf32, #tpu.memory_space<vmem>>, vector<1x32xf32>
    %730 = vector.broadcast %729 : vector<1x32xf32> to vector<8x32xf32>
    %731 = arith.mulf %728, %730 : vector<8x32xf32>
    %c0_487 = arith.constant 0 : index
    %c0_488 = arith.constant 0 : index
    %732 = vector.load %arg37[%c0_487, %c0_488] : memref<1x32xf32, #tpu.memory_space<vmem>>, vector<1x32xf32>
    %733 = vector.broadcast %732 : vector<1x32xf32> to vector<8x32xf32>
    %734 = arith.addf %731, %733 : vector<8x32xf32>
    %c0_489 = arith.constant 0 : index
    %c0_490 = arith.constant 0 : index
    %735 = vector.load %arg38[%c0_489, %c0_490] : memref<32x64xf32, #tpu.memory_space<vmem>>, vector<32x64xf32>
    %cst_491 = arith.constant dense<0.000000e+00> : vector<8x64xf32>
    %736 = tpu.matmul %734, %735, %cst_491 {dimension_numbers = #tpu.dot_dimension_numbers<[1], [0], [0], [1], [0, 0, 1, 1], [], []>} : vector<8x32xf32>, vector<32x64xf32>, vector<8x64xf32> -> vector<8x64xf32>
    %c0_492 = arith.constant 0 : index
    %c0_493 = arith.constant 0 : index
    %737 = vector.load %arg39[%c0_492, %c0_493] : memref<1x64xf32, #tpu.memory_space<vmem>>, vector<1x64xf32>
    %738 = vector.broadcast %737 : vector<1x64xf32> to vector<8x64xf32>
    %739 = arith.addf %736, %738 : vector<8x64xf32>
    %cst_494 = arith.constant 0.000000e+00 : f32
    %740 = vector.broadcast %cst_494 : f32 to vector<8x64xf32>
    %741 = arith.maximumf %739, %740 : vector<8x64xf32>
    %c0_495 = arith.constant 0 : index
    %c0_496 = arith.constant 0 : index
    %742 = vector.load %arg40[%c0_495, %c0_496] : memref<64x32xf32, #tpu.memory_space<vmem>>, vector<64x32xf32>
    %cst_497 = arith.constant dense<0.000000e+00> : vector<8x32xf32>
    %743 = tpu.matmul %741, %742, %cst_497 {dimension_numbers = #tpu.dot_dimension_numbers<[1], [0], [0], [1], [0, 0, 1, 1], [], []>} : vector<8x64xf32>, vector<64x32xf32>, vector<8x32xf32> -> vector<8x32xf32>
    %c0_498 = arith.constant 0 : index
    %c0_499 = arith.constant 0 : index
    %744 = vector.load %arg41[%c0_498, %c0_499] : memref<1x32xf32, #tpu.memory_space<vmem>>, vector<1x32xf32>
    %745 = vector.broadcast %744 : vector<1x32xf32> to vector<8x32xf32>
    %746 = arith.addf %743, %745 : vector<8x32xf32>
    %747 = arith.addf %746, %712 : vector<8x32xf32>
    %cst_500 = arith.constant dense<0.000000e+00> : vector<8xf32>
    %748 = vector.multi_reduction <add>, %747, %cst_500 [1] : vector<8x32xf32> to vector<8xf32>
    %749 = vector.shape_cast %748 : vector<8xf32> to vector<8x1xf32>
    %cst_501 = arith.constant 3.200000e+01 : f32
    %750 = vector.broadcast %cst_501 : f32 to vector<8x1xf32>
    %751 = arith.divf %749, %750 : vector<8x1xf32>
    %752 = vector.broadcast %751 : vector<8x1xf32> to vector<8x32xf32>
    %753 = arith.subf %747, %752 : vector<8x32xf32>
    %754 = arith.mulf %753, %753 : vector<8x32xf32>
    %cst_502 = arith.constant dense<0.000000e+00> : vector<8xf32>
    %755 = vector.multi_reduction <add>, %754, %cst_502 [1] : vector<8x32xf32> to vector<8xf32>
    %756 = vector.shape_cast %755 : vector<8xf32> to vector<8x1xf32>
    %cst_503 = arith.constant 3.200000e+01 : f32
    %757 = vector.broadcast %cst_503 : f32 to vector<8x1xf32>
    %758 = arith.divf %756, %757 : vector<8x1xf32>
    %cst_504 = arith.constant 9.99999974E-6 : f32
    %759 = vector.broadcast %cst_504 : f32 to vector<8x1xf32>
    %760 = arith.addf %758, %759 : vector<8x1xf32>
    %761 = math.rsqrt %760 : vector<8x1xf32>
    %762 = vector.broadcast %761 : vector<8x1xf32> to vector<8x32xf32>
    %763 = arith.mulf %753, %762 : vector<8x32xf32>
    %c0_505 = arith.constant 0 : index
    %c0_506 = arith.constant 0 : index
    %764 = vector.load %arg42[%c0_505, %c0_506] : memref<1x32xf32, #tpu.memory_space<vmem>>, vector<1x32xf32>
    %765 = vector.broadcast %764 : vector<1x32xf32> to vector<8x32xf32>
    %766 = arith.mulf %763, %765 : vector<8x32xf32>
    %c0_507 = arith.constant 0 : index
    %c0_508 = arith.constant 0 : index
    %767 = vector.load %arg43[%c0_507, %c0_508] : memref<1x32xf32, #tpu.memory_space<vmem>>, vector<1x32xf32>
    %768 = vector.broadcast %767 : vector<1x32xf32> to vector<8x32xf32>
    %769 = arith.addf %766, %768 : vector<8x32xf32>
    %c0_509 = arith.constant 0 : index
    %c0_510 = arith.constant 0 : index
    %c0_511 = arith.constant 0 : index
    %770 = vector.load %arg49[%c0_509, %c0_510, %c0_511] : memref<1x8x8xf32, #tpu.memory_space<vmem>>, vector<1x8x8xf32>
    %771 = vector.shape_cast %770 : vector<1x8x8xf32> to vector<8x8xf32>
    %772 = vector.shape_cast %525 : vector<8x8xf32> to vector<1x8x8xf32>
    tpu.vector_store %arg49[%c0_509, %c0_510, %c0_511], %772 {strides = array<i32>} : memref<1x8x8xf32, #tpu.memory_space<vmem>>, vector<1x8x8xf32>,
    %c0_512 = arith.constant 0 : index
    %c0_513 = arith.constant 0 : index
    %c0_514 = arith.constant 0 : index
    %773 = vector.load %arg50[%c0_512, %c0_513, %c0_514] : memref<1x8x10xf32, #tpu.memory_space<vmem>>, vector<1x8x10xf32>
    %774 = vector.shape_cast %773 : vector<1x8x10xf32> to vector<8x10xf32>
    %775 = vector.shape_cast %711 : vector<8x10xf32> to vector<1x8x10xf32>
    tpu.vector_store %arg50[%c0_512, %c0_513, %c0_514], %775 {strides = array<i32>} : memref<1x8x10xf32, #tpu.memory_space<vmem>>, vector<1x8x10xf32>,
    %c0_515 = arith.constant 0 : index
    %c0_516 = arith.constant 0 : index
    %776 = vector.load %arg44[%c0_515, %c0_516] : memref<32x128xf32, #tpu.memory_space<vmem>>, vector<32x128xf32>
    %cst_517 = arith.constant dense<0.000000e+00> : vector<8x128xf32>
    %777 = tpu.matmul %769, %776, %cst_517 {dimension_numbers = #tpu.dot_dimension_numbers<[1], [0], [0], [1], [0, 0, 1, 1], [], []>} : vector<8x32xf32>, vector<32x128xf32>, vector<8x128xf32> -> vector<8x128xf32>
    %c0_518 = arith.constant 0 : index
    %c0_519 = arith.constant 0 : index
    %778 = vector.load %arg45[%c0_518, %c0_519] : memref<1x128xf32, #tpu.memory_space<vmem>>, vector<1x128xf32>
    %779 = vector.broadcast %778 : vector<1x128xf32> to vector<8x128xf32>
    %780 = arith.addf %777, %779 : vector<8x128xf32>
    %c0_520 = arith.constant 0 : index
    %c0_521 = arith.constant 0 : index
    %c0_522 = arith.constant 0 : index
    %781 = vector.load %arg46[%c0_520, %c0_521, %c0_522] : memref<1x8x128xf32, #tpu.memory_space<vmem>>, vector<1x8x128xf32>
    %782 = vector.shape_cast %781 : vector<1x8x128xf32> to vector<8x128xf32>
    %783 = vector.shape_cast %780 : vector<8x128xf32> to vector<1x8x128xf32>
    tpu.vector_store %arg46[%c0_520, %c0_521, %c0_522], %783 {strides = array<i32>} : memref<1x8x128xf32, #tpu.memory_space<vmem>>, vector<1x8x128xf32>,
    return
  }
  func.func @transform_0(%arg0: i32) -> (i32, i32, i32) {
    %c0_i32 = arith.constant 0 : i32
    %c0_i32_0 = arith.constant 0 : i32
    %c0_i32_1 = arith.constant 0 : i32
    return %arg0, %c0_i32, %c0_i32_0 : i32, i32, i32
  }
  func.func @transform_1(%arg0: i32) -> (i32, i32, i32) {
    %c0_i32 = arith.constant 0 : i32
    %c0_i32_0 = arith.constant 0 : i32
    %c0_i32_1 = arith.constant 0 : i32
    return %arg0, %c0_i32, %c0_i32_0 : i32, i32, i32
  }
  func.func @transform_2(%arg0: i32) -> (i32, i32, i32) {
    %c0_i32 = arith.constant 0 : i32
    %c0_i32_0 = arith.constant 0 : i32
    %c0_i32_1 = arith.constant 0 : i32
    return %arg0, %c0_i32, %c0_i32_0 : i32, i32, i32
  }
  func.func @transform_3(%arg0: i32) -> (i32, i32) {
    %c0_i32 = arith.constant 0 : i32
    %c0_i32_0 = arith.constant 0 : i32
    %c0_i32_1 = arith.constant 0 : i32
    return %c0_i32, %c0_i32_0 : i32, i32
  }
  func.func @transform_4(%arg0: i32) -> (i32, i32) {
    %c0_i32 = arith.constant 0 : i32
    %c0_i32_0 = arith.constant 0 : i32
    %c0_i32_1 = arith.constant 0 : i32
    return %c0_i32, %c0_i32_0 : i32, i32
  }
  func.func @transform_5(%arg0: i32) -> (i32, i32, i32) {
    %c0_i32 = arith.constant 0 : i32
    %c0_i32_0 = arith.constant 0 : i32
    %c0_i32_1 = arith.constant 0 : i32
    %c0_i32_2 = arith.constant 0 : i32
    return %c0_i32, %c0_i32_0, %c0_i32_1 : i32, i32, i32
  }
  func.func @transform_6(%arg0: i32) -> (i32, i32, i32) {
    %c0_i32 = arith.constant 0 : i32
    %c0_i32_0 = arith.constant 0 : i32
    %c0_i32_1 = arith.constant 0 : i32
    %c0_i32_2 = arith.constant 0 : i32
    return %c0_i32, %c0_i32_0, %c0_i32_1 : i32, i32, i32
  }
  func.func @transform_7(%arg0: i32) -> (i32, i32, i32) {
    %c0_i32 = arith.constant 0 : i32
    %c0_i32_0 = arith.constant 0 : i32
    %c0_i32_1 = arith.constant 0 : i32
    %c0_i32_2 = arith.constant 0 : i32
    return %c0_i32, %c0_i32_0, %c0_i32_1 : i32, i32, i32
  }
  func.func @transform_8(%arg0: i32) -> (i32, i32) {
    %c0_i32 = arith.constant 0 : i32
    %c0_i32_0 = arith.constant 0 : i32
    %c0_i32_1 = arith.constant 0 : i32
    return %c0_i32, %c0_i32_0 : i32, i32
  }
  func.func @transform_9(%arg0: i32) -> (i32, i32) {
    %c0_i32 = arith.constant 0 : i32
    %c0_i32_0 = arith.constant 0 : i32
    %c0_i32_1 = arith.constant 0 : i32
    return %c0_i32, %c0_i32_0 : i32, i32
  }
  func.func @transform_10(%arg0: i32) -> (i32, i32) {
    %c0_i32 = arith.constant 0 : i32
    %c0_i32_0 = arith.constant 0 : i32
    %c0_i32_1 = arith.constant 0 : i32
    return %c0_i32, %c0_i32_0 : i32, i32
  }
  func.func @transform_11(%arg0: i32) -> (i32, i32, i32) {
    %c0_i32 = arith.constant 0 : i32
    %c0_i32_0 = arith.constant 0 : i32
    %c0_i32_1 = arith.constant 0 : i32
    %c0_i32_2 = arith.constant 0 : i32
    return %c0_i32, %c0_i32_0, %c0_i32_1 : i32, i32, i32
  }
  func.func @transform_12(%arg0: i32) -> (i32, i32, i32) {
    %c0_i32 = arith.constant 0 : i32
    %c0_i32_0 = arith.constant 0 : i32
    %c0_i32_1 = arith.constant 0 : i32
    %c0_i32_2 = arith.constant 0 : i32
    return %c0_i32, %c0_i32_0, %c0_i32_1 : i32, i32, i32
  }
  func.func @transform_13(%arg0: i32) -> (i32, i32, i32) {
    %c0_i32 = arith.constant 0 : i32
    %c0_i32_0 = arith.constant 0 : i32
    %c0_i32_1 = arith.constant 0 : i32
    %c0_i32_2 = arith.constant 0 : i32
    return %c0_i32, %c0_i32_0, %c0_i32_1 : i32, i32, i32
  }
  func.func @transform_14(%arg0: i32) -> (i32, i32) {
    %c0_i32 = arith.constant 0 : i32
    %c0_i32_0 = arith.constant 0 : i32
    %c0_i32_1 = arith.constant 0 : i32
    return %c0_i32, %c0_i32_0 : i32, i32
  }
  func.func @transform_15(%arg0: i32) -> (i32, i32) {
    %c0_i32 = arith.constant 0 : i32
    %c0_i32_0 = arith.constant 0 : i32
    %c0_i32_1 = arith.constant 0 : i32
    return %c0_i32, %c0_i32_0 : i32, i32
  }
  func.func @transform_16(%arg0: i32) -> (i32, i32) {
    %c0_i32 = arith.constant 0 : i32
    %c0_i32_0 = arith.constant 0 : i32
    %c0_i32_1 = arith.constant 0 : i32
    return %c0_i32, %c0_i32_0 : i32, i32
  }
  func.func @transform_17(%arg0: i32) -> (i32, i32) {
    %c0_i32 = arith.constant 0 : i32
    %c0_i32_0 = arith.constant 0 : i32
    %c0_i32_1 = arith.constant 0 : i32
    return %c0_i32, %c0_i32_0 : i32, i32
  }
  func.func @transform_18(%arg0: i32) -> (i32, i32) {
    %c0_i32 = arith.constant 0 : i32
    %c0_i32_0 = arith.constant 0 : i32
    %c0_i32_1 = arith.constant 0 : i32
    return %c0_i32, %c0_i32_0 : i32, i32
  }
  func.func @transform_19(%arg0: i32) -> (i32, i32) {
    %c0_i32 = arith.constant 0 : i32
    %c0_i32_0 = arith.constant 0 : i32
    %c0_i32_1 = arith.constant 0 : i32
    return %c0_i32, %c0_i32_0 : i32, i32
  }
  func.func @transform_20(%arg0: i32) -> (i32, i32) {
    %c0_i32 = arith.constant 0 : i32
    %c0_i32_0 = arith.constant 0 : i32
    %c0_i32_1 = arith.constant 0 : i32
    return %c0_i32, %c0_i32_0 : i32, i32
  }
  func.func @transform_21(%arg0: i32) -> (i32, i32) {
    %c0_i32 = arith.constant 0 : i32
    %c0_i32_0 = arith.constant 0 : i32
    %c0_i32_1 = arith.constant 0 : i32
    return %c0_i32, %c0_i32_0 : i32, i32
  }
  func.func @transform_22(%arg0: i32) -> (i32, i32) {
    %c0_i32 = arith.constant 0 : i32
    %c0_i32_0 = arith.constant 0 : i32
    %c0_i32_1 = arith.constant 0 : i32
    return %c0_i32, %c0_i32_0 : i32, i32
  }
  func.func @transform_23(%arg0: i32) -> (i32, i32) {
    %c0_i32 = arith.constant 0 : i32
    %c0_i32_0 = arith.constant 0 : i32
    %c0_i32_1 = arith.constant 0 : i32
    return %c0_i32, %c0_i32_0 : i32, i32
  }
  func.func @transform_24(%arg0: i32) -> (i32, i32) {
    %c0_i32 = arith.constant 0 : i32
    %c0_i32_0 = arith.constant 0 : i32
    %c0_i32_1 = arith.constant 0 : i32
    return %c0_i32, %c0_i32_0 : i32, i32
  }
  func.func @transform_25(%arg0: i32) -> (i32, i32, i32) {
    %c0_i32 = arith.constant 0 : i32
    %c0_i32_0 = arith.constant 0 : i32
    %c0_i32_1 = arith.constant 0 : i32
    %c0_i32_2 = arith.constant 0 : i32
    return %c0_i32, %c0_i32_0, %c0_i32_1 : i32, i32, i32
  }
  func.func @transform_26(%arg0: i32) -> (i32, i32, i32) {
    %c0_i32 = arith.constant 0 : i32
    %c0_i32_0 = arith.constant 0 : i32
    %c0_i32_1 = arith.constant 0 : i32
    %c0_i32_2 = arith.constant 0 : i32
    return %c0_i32, %c0_i32_0, %c0_i32_1 : i32, i32, i32
  }
  func.func @transform_27(%arg0: i32) -> (i32, i32, i32) {
    %c0_i32 = arith.constant 0 : i32
    %c0_i32_0 = arith.constant 0 : i32
    %c0_i32_1 = arith.constant 0 : i32
    %c0_i32_2 = arith.constant 0 : i32
    return %c0_i32, %c0_i32_0, %c0_i32_1 : i32, i32, i32
  }
  func.func @transform_28(%arg0: i32) -> (i32, i32) {
    %c0_i32 = arith.constant 0 : i32
    %c0_i32_0 = arith.constant 0 : i32
    %c0_i32_1 = arith.constant 0 : i32
    return %c0_i32, %c0_i32_0 : i32, i32
  }
  func.func @transform_29(%arg0: i32) -> (i32, i32) {
    %c0_i32 = arith.constant 0 : i32
    %c0_i32_0 = arith.constant 0 : i32
    %c0_i32_1 = arith.constant 0 : i32
    return %c0_i32, %c0_i32_0 : i32, i32
  }
  func.func @transform_30(%arg0: i32) -> (i32, i32) {
    %c0_i32 = arith.constant 0 : i32
    %c0_i32_0 = arith.constant 0 : i32
    %c0_i32_1 = arith.constant 0 : i32
    return %c0_i32, %c0_i32_0 : i32, i32
  }
  func.func @transform_31(%arg0: i32) -> (i32, i32, i32) {
    %c0_i32 = arith.constant 0 : i32
    %c0_i32_0 = arith.constant 0 : i32
    %c0_i32_1 = arith.constant 0 : i32
    %c0_i32_2 = arith.constant 0 : i32
    return %c0_i32, %c0_i32_0, %c0_i32_1 : i32, i32, i32
  }
  func.func @transform_32(%arg0: i32) -> (i32, i32, i32) {
    %c0_i32 = arith.constant 0 : i32
    %c0_i32_0 = arith.constant 0 : i32
    %c0_i32_1 = arith.constant 0 : i32
    %c0_i32_2 = arith.constant 0 : i32
    return %c0_i32, %c0_i32_0, %c0_i32_1 : i32, i32, i32
  }
  func.func @transform_33(%arg0: i32) -> (i32, i32, i32) {
    %c0_i32 = arith.constant 0 : i32
    %c0_i32_0 = arith.constant 0 : i32
    %c0_i32_1 = arith.constant 0 : i32
    %c0_i32_2 = arith.constant 0 : i32
    return %c0_i32, %c0_i32_0, %c0_i32_1 : i32, i32, i32
  }
  func.func @transform_34(%arg0: i32) -> (i32, i32) {
    %c0_i32 = arith.constant 0 : i32
    %c0_i32_0 = arith.constant 0 : i32
    %c0_i32_1 = arith.constant 0 : i32
    return %c0_i32, %c0_i32_0 : i32, i32
  }
  func.func @transform_35(%arg0: i32) -> (i32, i32) {
    %c0_i32 = arith.constant 0 : i32
    %c0_i32_0 = arith.constant 0 : i32
    %c0_i32_1 = arith.constant 0 : i32
    return %c0_i32, %c0_i32_0 : i32, i32
  }
  func.func @transform_36(%arg0: i32) -> (i32, i32) {
    %c0_i32 = arith.constant 0 : i32
    %c0_i32_0 = arith.constant 0 : i32
    %c0_i32_1 = arith.constant 0 : i32
    return %c0_i32, %c0_i32_0 : i32, i32
  }
  func.func @transform_37(%arg0: i32) -> (i32, i32) {
    %c0_i32 = arith.constant 0 : i32
    %c0_i32_0 = arith.constant 0 : i32
    %c0_i32_1 = arith.constant 0 : i32
    return %c0_i32, %c0_i32_0 : i32, i32
  }
  func.func @transform_38(%arg0: i32) -> (i32, i32) {
    %c0_i32 = arith.constant 0 : i32
    %c0_i32_0 = arith.constant 0 : i32
    %c0_i32_1 = arith.constant 0 : i32
    return %c0_i32, %c0_i32_0 : i32, i32
  }
  func.func @transform_39(%arg0: i32) -> (i32, i32) {
    %c0_i32 = arith.constant 0 : i32
    %c0_i32_0 = arith.constant 0 : i32
    %c0_i32_1 = arith.constant 0 : i32
    return %c0_i32, %c0_i32_0 : i32, i32
  }
  func.func @transform_40(%arg0: i32) -> (i32, i32) {
    %c0_i32 = arith.constant 0 : i32
    %c0_i32_0 = arith.constant 0 : i32
    %c0_i32_1 = arith.constant 0 : i32
    return %c0_i32, %c0_i32_0 : i32, i32
  }
  func.func @transform_41(%arg0: i32) -> (i32, i32) {
    %c0_i32 = arith.constant 0 : i32
    %c0_i32_0 = arith.constant 0 : i32
    %c0_i32_1 = arith.constant 0 : i32
    return %c0_i32, %c0_i32_0 : i32, i32
  }
  func.func @transform_42(%arg0: i32) -> (i32, i32) {
    %c0_i32 = arith.constant 0 : i32
    %c0_i32_0 = arith.constant 0 : i32
    %c0_i32_1 = arith.constant 0 : i32
    return %c0_i32, %c0_i32_0 : i32, i32
  }
  func.func @transform_43(%arg0: i32) -> (i32, i32) {
    %c0_i32 = arith.constant 0 : i32
    %c0_i32_0 = arith.constant 0 : i32
    %c0_i32_1 = arith.constant 0 : i32
    return %c0_i32, %c0_i32_0 : i32, i32
  }
  func.func @transform_44(%arg0: i32) -> (i32, i32) {
    %c0_i32 = arith.constant 0 : i32
    %c0_i32_0 = arith.constant 0 : i32
    %c0_i32_1 = arith.constant 0 : i32
    return %c0_i32, %c0_i32_0 : i32, i32
  }
  func.func @transform_45(%arg0: i32) -> (i32, i32, i32) {
    %c0_i32 = arith.constant 0 : i32
    %c0_i32_0 = arith.constant 0 : i32
    %c0_i32_1 = arith.constant 0 : i32
    return %arg0, %c0_i32, %c0_i32_0 : i32, i32, i32
  }
  func.func @transform_46(%arg0: i32) -> (i32, i32, i32) {
    %c0_i32 = arith.constant 0 : i32
    %c0_i32_0 = arith.constant 0 : i32
    %c0_i32_1 = arith.constant 0 : i32
    return %arg0, %c0_i32, %c0_i32_0 : i32, i32, i32
  }
  func.func @transform_47(%arg0: i32) -> (i32, i32, i32) {
    %c0_i32 = arith.constant 0 : i32
    %c0_i32_0 = arith.constant 0 : i32
    %c0_i32_1 = arith.constant 0 : i32
    return %arg0, %c0_i32, %c0_i32_0 : i32, i32, i32
  }
  func.func @transform_48(%arg0: i32) -> (i32, i32, i32) {
    %c0_i32 = arith.constant 0 : i32
    %c0_i32_0 = arith.constant 0 : i32
    %c0_i32_1 = arith.constant 0 : i32
    return %arg0, %c0_i32, %c0_i32_0 : i32, i32, i32
  }
  func.func @transform_49(%arg0: i32) -> (i32, i32, i32) {
    %c0_i32 = arith.constant 0 : i32
    %c0_i32_0 = arith.constant 0 : i32
    %c0_i32_1 = arith.constant 0 : i32
    return %arg0, %c0_i32, %c0_i32_0 : i32, i32, i32
  }
}

</mosaic_0001>

<bundles_post_ra>
// kernel: decoder_forward.1
= control target key start
LH: loop header
LB: loop body
LE: loop exit
PB: predicated region body
PF: predicated region fallthrough
CT: control target
= control target key end

     0   :  { %s11522_s6 = smov 1   ;;  %s11523_s10 = smov 2   ;;  %s12903_s0 = inlined_call_operand.smem [shape: u32[50], index: -1, kind: input, shape index: {}] }
   0x1   :  { %s11578_s5 = sld [smem:[%s12903_s0]]   ;;  %s11524_s14 = smov 3  }
   0x2   :  { %s11583_s9 = sld [smem:[%s12903_s0 + %s11522_s6]]   ;;  %s11525_s18 = smov 4  }
   0x3   :  { %s11588_s13 = sld [smem:[%s12903_s0 + %s11523_s10]]   ;;  %s11526_s22 = smov 5  }
   0x4   :  { %s11593_s17 = sld [smem:[%s12903_s0 + %s11524_s14]]   ;;  %s11527_s26 = smov 6  }
   0x5   :  { %s11598_s21 = sld [smem:[%s12903_s0 + %s11525_s18]]   ;;  %s11528_s30 = smov 7  }
   0x6   :  { %s11603_s25 = sld [smem:[%s12903_s0 + %s11526_s22]]   ;;  %s11529_s4 = smov 8  }
   0x7   :  { %12928 = sst [smem:[#allocation13_spill]] %s11578_s5  ;;  %s11530_s10 = smov 9  }
   0x8   :  { %12929 = sst [smem:[#allocation14_spill]] %s11583_s9  ;;  %s11531_s15 = smov 10  }
   0x9   :  { %12930 = sst [smem:[#allocation15_spill]] %s11588_s13  ;;  %s11532_s20 = smov 11  }
   0xa   :  { %12931 = sst [smem:[#allocation16_spill]] %s11593_s17  ;;  %s11534_s1 = smov 23  }
   0xb   :  { %12932 = sst [smem:[#allocation17_spill]] %s11598_s21  ;;  %s11535_s7 = smov 24  }
   0xc   :  { %s11608_s29 = sld [smem:[%s12903_s0 + %s11527_s26]]   ;;  %s11533_s26 = smov 12  }
   0xd   :  { %s11613_s3 = sld [smem:[%s12903_s0 + %s11528_s30]]   ;;  %s11537_s22 = smov 26  }
   0xe   :  { %s11618_s8 = sld [smem:[%s12903_s0 + %s11529_s4]]   ;;  %s11538_s28 = smov 27  }
   0xf   :  { %s11623_s14 = sld [smem:[%s12903_s0 + %s11530_s10]]  }
  0x10   :  { %s11628_s19 = sld [smem:[%s12903_s0 + %s11531_s15]]   ;;  %s11536_s15 = smov 25  }
  0x11   :  { %s11633_s24 = sld [smem:[%s12903_s0 + %s11532_s20]]  }
  0x12   :  { %s11638_s30 = sld [smem:[%s12903_s0 + %s11533_s26]]  }
  0x13   :  { %12933 = sst [smem:[#allocation18_spill]] %s11613_s3 }
  0x14   :  { %12934 = sst [smem:[#allocation19_spill]] %s11618_s8 }
  0x15   :  { %12935 = sst [smem:[#allocation20_spill]] %s11623_s14 }
  0x16   :  { %12936 = sst [smem:[#allocation21_spill]] %s11628_s19 }
  0x17   :  { %s11643_s6 = sld [smem:[%s12903_s0 + %s11534_s1]]  }
  0x18   :  { %s11648_s12 = sld [smem:[%s12903_s0 + %s11535_s7]]   ;;  %s11539_s7 = smov 28  }
  0x19   :  { %s11653_s20 = sld [smem:[%s12903_s0 + %s11536_s15]]   ;;  %s11540_s15 = smov 29  }
  0x1a   :  { %s11658_s27 = sld [smem:[%s12903_s0 + %s11537_s22]]   ;;  %s11541_s22 = smov 30  }
  0x1b   :  { %s11663_s4 = sld [smem:[%s12903_s0 + %s11538_s28]]   ;;  %s11542_s28 = smov 31  }
  0x1d   :  { %12937 = sst [smem:[#allocation22_spill]] %s11643_s6 }
  0x1e   :  { %12938 = sst [smem:[#allocation23_spill]] %s11648_s12 }
  0x1f   :  { %12939 = sst [smem:[#allocation24_spill]] %s11653_s20 }
  0x20   :  { %12940 = sst [smem:[#allocation25_spill]] %s11658_s27 }
  0x21   :  { %12941 = sst [smem:[#allocation26_spill]] %s11663_s4 }
  0x22   :  { %s11668_s12 = sld [smem:[%s12903_s0 + %s11539_s7]]   ;;  %s11543_s7 = smov 32  }
  0x23   :  { %s11673_s6 = sld [smem:[%s12903_s0 + %s11540_s15]]   ;;  %s11544_s15 = smov 33  }
  0x24   :  { %s11678_s27 = sld [smem:[%s12903_s0 + %s11541_s22]]   ;;  %s11545_s22 = smov 34  }
  0x25   :  { %s11683_s4 = sld [smem:[%s12903_s0 + %s11542_s28]]   ;;  %s11546_s28 = smov 35  }
  0x28   :  { %12942 = sst [smem:[#allocation27_spill]] %s11668_s12 }
  0x29   :  { %12943 = sst [smem:[#allocation28_spill]] %s11673_s6 }
  0x2a   :  { %12944 = sst [smem:[#allocation29_spill]] %s11678_s27 }
  0x2b   :  { %12945 = sst [smem:[#allocation30_spill]] %s11683_s4 }
  0x2c   :  { %s11688_s12 = sld [smem:[%s12903_s0 + %s11543_s7]]   ;;  %s11547_s7 = smov 36  }
  0x2d   :  { %s11693_s6 = sld [smem:[%s12903_s0 + %s11544_s15]]   ;;  %s11548_s15 = smov 37  }
  0x2e   :  { %s11698_s27 = sld [smem:[%s12903_s0 + %s11545_s22]]   ;;  %s11549_s22 = smov 38  }
  0x2f   :  { %s11703_s4 = sld [smem:[%s12903_s0 + %s11546_s28]]   ;;  %s11550_s28 = smov 39  }
  0x32   :  { %12946 = sst [smem:[#allocation31_spill]] %s11688_s12 }
  0x33   :  { %12947 = sst [smem:[#allocation32_spill]] %s11693_s6 }
  0x34   :  { %12948 = sst [smem:[#allocation33_spill]] %s11698_s27 }
  0x35   :  { %12949 = sst [smem:[#allocation34_spill]] %s11703_s4 }
  0x36   :  { %s11708_s12 = sld [smem:[%s12903_s0 + %s11547_s7]]   ;;  %s11551_s7 = smov 40  }
  0x37   :  { %s11713_s6 = sld [smem:[%s12903_s0 + %s11548_s15]]   ;;  %s11552_s15 = smov 41  }
  0x38   :  { %s11718_s27 = sld [smem:[%s12903_s0 + %s11549_s22]]   ;;  %s11553_s22 = smov 42  }
  0x39   :  { %s11723_s4 = sld [smem:[%s12903_s0 + %s11550_s28]]   ;;  %s11554_s28 = smov 43  }
  0x3c   :  { %12950 = sst [smem:[#allocation35_spill]] %s11708_s12 }
  0x3d   :  { %12951 = sst [smem:[#allocation36_spill]] %s11713_s6 }
  0x3e   :  { %12952 = sst [smem:[#allocation37_spill]] %s11718_s27 }
  0x3f   :  { %12953 = sst [smem:[#allocation38_spill]] %s11723_s4 }
  0x40   :  { %s11728_s12 = sld [smem:[%s12903_s0 + %s11551_s7]]   ;;  %s11555_s7 = smov 44  }
  0x41   :  { %s11733_s6 = sld [smem:[%s12903_s0 + %s11552_s15]]   ;;  %s11556_s15 = smov 45  }
  0x42   :  { %s11738_s27 = sld [smem:[%s12903_s0 + %s11553_s22]]   ;;  %s11557_s22 = smov 46  }
  0x43   :  { %s11743_s4 = sld [smem:[%s12903_s0 + %s11554_s28]]   ;;  %s11558_s28 = smov 47  }
  0x46   :  { %12954 = sst [smem:[#allocation39_spill]] %s11728_s12 }
  0x47   :  { %12955 = sst [smem:[#allocation40_spill]] %s11733_s6 }
  0x48   :  { %12956 = sst [smem:[#allocation41_spill]] %s11738_s27 }
  0x49   :  { %12957 = sst [smem:[#allocation42_spill]] %s11743_s4 }
  0x4a   :  { %s11748_s12 = sld [smem:[%s12903_s0 + %s11555_s7]]   ;;  %s11559_s7 = smov 48  }
  0x4b   :  { %s11753_s6 = sld [smem:[%s12903_s0 + %s11556_s15]]   ;;  %s11560_s15 = smov 49  }
  0x4c   :  { %s11758_s27 = sld [smem:[%s12903_s0 + %s11557_s22]]  }
  0x4d   :  { %s11763_s4 = sld [smem:[%s12903_s0 + %s11558_s28]]  }
  0x50   :  { %12958 = sst [smem:[#allocation43_spill]] %s11748_s12 }
  0x51   :  { %12959 = sst [smem:[#allocation44_spill]] %s11753_s6 }
  0x52   :  { %s11768_s12 = sld [smem:[%s12903_s0 + %s11559_s7]]  }
  0x53   :  { %s11773_s6 = sld [smem:[%s12903_s0 + %s11560_s15]]  }
  0x54   :  { %105 = vsyncpa [#allocation3], 0 }
  0x55   :  { %107 = vsyncpa [#allocation3 + $0x1], 0 }
  0x56   :  { %108 = vsyncpa [#allocation5], 0 }
  0x57   :  { %110 = vsyncpa [#allocation5 + $0x1], 0 }
  0x58   :  { %111 = vsyncpa [#allocation8], 0 }
  0x59   :  { %113 = vsyncpa [#allocation8 + $0x1], 0  ;;  %s11775_s22 = smov 0   ;;  %s11777_s23 = smov 0  }
  0x5a   :  { %s11779_s26 = smov 0   ;;  %s11781_s28 = smov 0  }
  0x5b LB: > { %s12960_s20 = sld [smem:[#allocation24_spill]]  ;;  %s12961_s3 = sld [smem:[#allocation18_spill]]  ;;  %s11512_s23 = sphi %s11777_s23, %s13004_s23   ;;  %s11508_s22 = sphi %s11775_s22, %s13003_s22   ;;  %s11520_s28 = sphi %s11781_s28, %s13006_s28   ;;  %s11516_s26 = sphi %s11779_s26, %s13005_s26  }
  0x5c   : > { %s11796_s0 = sadd.s32 4294967295, %s11520_s28   ;;  %s12913_s1 = sadd.s32 4294967294, %s11520_s28  }
  0x5d   : > { %s11800_s2 = sadd.s32 1, %s11520_s28   ;;  %s1086_s7 = sadd.s32 1, %s11516_s26 }
  0x5e   : > { %s1083_s10 = ssub.s32 %s11520_s28, %s11800_s2  ;;  %p1096_p0 = scmp.ne.s32.totalorder %s11516_s26, %s11512_s23 }
  0x5f   : > { %p1084_p1 = scmp.eq.s32.totalorder %s1083_s10, 0  ;;  %p1097_p2 = scmp.eq.s32.totalorder %s11796_s0, 1 }
  0x60   : > { %p1102_p3 = scmp.ne.s32.totalorder %s11512_s23, %s11508_s22  ;;  %p1103_p4 = scmp.eq.s32.totalorder %s12913_s1, 1 }
  0x61   : > { %s11813_s11 = scalar_select %p1084_p1, %s11516_s26, %s1086_s7  }
  0x62   : > { %p11815_p5 = por %p1097_p2, %p1096_p0  ;;  %p11819_p6 = por %p1103_p4, %p1102_p3 }
  0x63   : > { %p9285_p7 = scmp.ge.s32.totalorder %s11520_s28, 1  ;;  %p1373_p8 = scmp.lt.s32.totalorder %s11520_s28, 3 }
  0x65   : > { %p1374_p9 = pnand %p9285_p7, %p1373_p8 }
  0x66   : > { %s12964_s5 = sld [smem:[#allocation13_spill]] (!%p1374_p9)  ;;  %p1517_p10 = scmp.lt.s32.totalorder (!%p1374_p9), %s11796_s0, 1  ;;  %vm1534_vm0 = vcmask (!%p1374_p9), 261120   ;;  %v1565_v7 = vld [vmem:[%s11603_s25] sm:$0xff] (!%p1374_p9)  ;;  %v1566_v8 = vld [vmem:[%s11603_s25 + $0x8] sm:$0xff] (!%p1374_p9)  ;;  %v11561_v12 = vmov (!%p1374_p9), 0.0|0.0  }
  0x67   : > { %1377 = sbr.rel (%p1374_p9) target bundleno = 14836 (0x39f4), region = 200  ;;  %v10799_v9 = vpack.c.bf16 (!%p1374_p9), %v1566_v8, %v1565_v7  ;;  %v9299_v10 = vld [vmem:[%s11603_s25 + $0x80] sm:$0xff] (!%p1374_p9)  ;;  %v9300_v11 = vld [vmem:[%s11603_s25 + $0x88] sm:$0xff] (!%p1374_p9)  ;;  %10798 = vmatprep.subr.bf16.mxu0 (!%p1374_p9), %v11561_v12  ;;  %10804 = vmatprep.subr.bf16.mxu1 (!%p1374_p9), %v11561_v12  ;;  %v1567_v14 = vld [vmem:[%s11603_s25 + $0x10] sm:$0xff] (!%p1374_p9)  ;;  %s12965_s17 = sld [smem:[#allocation16_spill]] (!%p1374_p9)  ;;  %vm11562_vm1 = vmmov (!%p1374_p9), 0  }
  0x68   : > { %v10805_v13 = vpack.c.bf16 (!%p1374_p9), %v9300_v11, %v9299_v10  ;;  %v1568_v15 = vld [vmem:[%s11603_s25 + $0x18] sm:$0xff] (!%p1374_p9)  ;;  %v9301_v17 = vld [vmem:[%s11603_s25 + $0x90] sm:$0xff] (!%p1374_p9)  ;;  %s12966_s21 = sld [smem:[#allocation17_spill]] (!%p1374_p9)  ;;  %v11563_v20 = vmov (!%p1374_p9), 0.0   ;;  %v9306_v27 = vld [vmem:[%s11603_s25 + $0x100] sm:$0xff] (!%p1374_p9)  ;;  %vm1816_vm2 = vcmask (!%p1374_p9), 64512  }
  0x69   : > { %10800 = vmatpush3.bf16.msra.mxu0 (!%p1374_p9), %v10799_v9  ;;  %v10802_v16 = vpack.c.bf16 (!%p1374_p9), %v1568_v15, %v1567_v14  ;;  %v9302_v18 = vld [vmem:[%s11603_s25 + $0x98] sm:$0xff] (!%p1374_p9)  ;;  %10057 = vmatprep.mubr.msk.f32.mxu0 (!%p1374_p9), %vm11562_vm1, %v11563_v20  ;;  %v9307_v28 = vld [vmem:[%s11603_s25 + $0x108] sm:$0xff] (!%p1374_p9)  ;;  %v9308_v33 = vld [vmem:[%s11603_s25 + $0x110] sm:$0xff] (!%p1374_p9)  ;;  %s12967_s13 = sld [smem:[#allocation15_spill]] (!%p1374_p9)  ;;  %s12968_s9 = sld [smem:[#allocation14_spill]] (!%p1374_p9)  ;;  %vm3808_vm4 = vcmask (!%p1374_p9), 80896  }
  0x6a   : > { %10806 = vmatpush3.bf16.msra.mxu1 (!%p1374_p9), %v10805_v13  ;;  %10801 = vmatprep.subr.bf16.mxu0 (!%p1374_p9), %v11561_v12  ;;  %v10808_v19 = vpack.c.bf16 (!%p1374_p9), %v9302_v18, %v9301_v17  ;;  %v10811_v31 = vpack.c.bf16 (!%p1374_p9), %v9307_v28, %v9306_v27  ;;  %v9309_v34 = vld [vmem:[%s11603_s25 + $0x118] sm:$0xff] (!%p1374_p9)  ;;  %v9316_v36 = vld [vmem:[%s11603_s25 + $0x20] sm:$0xff] (!%p1374_p9)  ;;  %v9317_v37 = vld [vmem:[%s11603_s25 + $0x28] sm:$0xff] (!%p1374_p9)  ;;  %s12969_s8 = sld [smem:[#allocation19_spill]] (!%p1374_p9)  ;;  %s12970_s14 = sld [smem:[#allocation20_spill]] (!%p1374_p9)  ;;  %vm6966_vm5 = vcmask (!%p1374_p9), 1041408  }
  0x6b   : > { %10807 = vmatprep.subr.bf16.mxu1 (!%p1374_p9), %v11561_v12  ;;  %10068 = vmatprep.mubr.msk.f32.mxu1 (!%p1374_p9), %vm11562_vm1, %v11563_v20  ;;  %v10814_v35 = vpack.c.bf16 (!%p1374_p9), %v9309_v34, %v9308_v33  ;;  %v10817_v38 = vpack.c.bf16 (!%p1374_p9), %v9317_v37, %v9316_v36  ;;  %v9318_v39 = vld [vmem:[%s11603_s25 + $0x30] sm:$0xff] (!%p1374_p9)  ;;  %v9319_v40 = vld [vmem:[%s11603_s25 + $0x38] sm:$0xff] (!%p1374_p9)  ;;  %v9330_v42 = vld [vmem:[%s11603_s25 + $0x120] sm:$0xff] (!%p1374_p9)  ;;  %s12971_s19 = sld [smem:[#allocation21_spill]] (!%p1374_p9)  ;;  %vm11564_vm6 = vmmov (!%p1374_p9), 1   ;;  %vm8761_vm8 = vcmask (!%p1374_p9), 523264  }
  0x6c   : > { %v10820_v41 = vpack.c.bf16 (!%p1374_p9), %v9319_v40, %v9318_v39  ;;  %v9331_v43 = vld [vmem:[%s11603_s25 + $0x128] sm:$0xff] (!%p1374_p9)  ;;  %v9332_v45 = vld [vmem:[%s11603_s25 + $0x130] sm:$0xff] (!%p1374_p9)  ;;  %v9333_v46 = vld [vmem:[%s11603_s25 + $0x138] sm:$0xff] (!%p1374_p9) }
  0x6d   : > { %10803 = vmatpush3.bf16.msra.mxu0 (!%p1374_p9), %v10802_v16  ;;  %v9295_v25 = vld [vmem:[%s12965_s17] ss:$0 sm:$0xff] (!%p1374_p9)  ;;  %v10829_v44 = vpack.c.bf16 (!%p1374_p9), %v9331_v43, %v9330_v42  ;;  %v10832_v47 = vpack.c.bf16 (!%p1374_p9), %v9333_v46, %v9332_v45  ;;  %v9304_v49 = vld [vmem:[%s11608_s29 + $0x4] ss:$0 sm:$0xff] (!%p1374_p9)  ;;  %v9311_v57 = vld [vmem:[%s11608_s29 + $0x8] ss:$0 sm:$0xff] (!%p1374_p9) }
  0x6e   : > { %s11827_s18 = scalar_select %p1517_p10, %s11796_s0, 1  ;;  %10809 = vmatpush3.bf16.msra.mxu1 %v10808_v19  ;;  %10810 = vmatprep.subr.bf16.mxu0 %v11561_v12  ;;  %v9296_v29 = vld [vmem:[%s12966_s21] ss:$0 sm:$0xff]  ;;  %v9324_v15 = vld [vmem:[%s11603_s25 + $0xa8] sm:$0xff]  ;;  %v9325_v19 = vld [vmem:[%s11603_s25 + $0xb0] sm:$0xff] }
  0x6f   : > { %10082 = vmatprep.subr.mxu1 %v11563_v20  ;;  %v9297_v48 = vld [vmem:[%s11608_s29] ss:$0 sm:$0xff]  ;;  %v9328_v27 = vld [vmem:[%s11608_s29 + $0x5] ss:$0 sm:$0xff]  ;;  %v9335_v33 = vld [vmem:[%s11608_s29 + $0x9] ss:$0 sm:$0xff] }
  0x70   : > { %s9291_s7 = sshll.u32 %s11827_s18, 3  ;;  %v9323_v14 = vld [vmem:[%s11603_s25 + $0xa0] sm:$0xff]  ;;  %v9340_v45 = vld [vmem:[%s12961_s3 + $0x8] sm:$0xff]  ;;  %vm12135_vm3 = vmpackc.low %vm1816_vm2, %vm1816_vm2 }
  0x71   : > { %s11833_s10 = scalar_lea.vmem %s12964_s5, %s9291_s7  ;;  %s11917_s1 = scalar_lea.vmem %s12967_s13, %s9291_s7  ;;  %v10823_v17 = vpack.c.bf16 %v9324_v15, %v9323_v14  ;;  %vm12515_vm7 = vmpackc.low %vm6966_vm5, %vm11564_vm6 }
  0x72   : > { %v11836_v0 = vld [vmem:[%s11833_s10] sm:$0xff]  ;;  %s12915_s7 = sand.u32 1, %s11512_s23   ;;  %s9705_s13 = sshll.u32 %s11827_s18, 4 }
  0x73   : > { %v1535_v1 = vsel %vm1534_vm0, %v11836_v0, 0.0  ;;  %s12072_s5 = sshll.u32 %s12915_s7, 3  ;;  %s12084_s17 = scalar_lea.vmem %s12968_s9, %s9705_s13 }
  0x74   : > { %1536 = vadd.xlane.f32.xlu0 %v1535_v1  ;;  %s12974_s13 = sld [smem:[#allocation22_spill]]  ;;  %s12975_s18 = sld [smem:[#allocation23_spill]] }
  0x75   : > { %s12917_s7 = scalar_lea.vmem [#allocation7], %s12072_s5 }
 0x101   : > { %v1537_v2 = vpop.xlane.xlu0 %1536 }
 0x102   : > { %v1539_v3 = vmul.f32 0.03125, %v1537_v2  ;;  %v11920_v2 = vld [vmem:[%s11917_s1] sm:$0xff] }
 0x104   : > { %v1540_v4 = vsub.f32 %v11836_v0, %v1539_v3 }
 0x106   : > { %v1541_v5 = vmul.f32 %v1540_v4, %v1540_v4 }
 0x108   : > { %v1542_v6 = vsel %vm1534_vm0, %v1541_v5, 0.0 }
 0x109   : > { %1543 = vadd.xlane.f32.xlu0 %v1542_v6 }
 0x196   : > { %v1544_v21 = vpop.xlane.xlu0 %1543 }
 0x197   : > { %v1545_v22 = vmul.f32 0.03125, %v1544_v21  ;;  %v9326_v21 = vld [vmem:[%s11603_s25 + $0xb8] sm:$0xff] }
 0x199   : > { %v1546_v23 = vadd.f32 1e-05, %v1545_v22  ;;  %v10826_v22 = vpack.c.bf16 %v9326_v21, %v9325_v19  ;;  %v9348_v19 = vld [vmem:[%s11608_s29 + $0x2] ss:$0 sm:$0xff] }
 0x19b   : > { %11260 = vrsqrt.f32 %v1546_v23 }
 0x1a5   : > { %v11261_v24 = vpop.eup %11260 }
 0x1a6   : > { %v11861_v26 = vmul.f32 %v11261_v24, %v1540_v4 }
 0x1a8   : > { %v1556_v30 = vmul.f32 %v9295_v25, %v11861_v26  ;;  %v9321_v25 = vld [vmem:[%s11608_s29 + $0x1] ss:$0 sm:$0xff] }
 0x1aa   : > { %v11867_v32 = vadd.f32 %v9296_v29, %v1556_v30 }
 0x1ac   : > { %10058 = vmatmul.mubr.msk.f32.vlgmr.msra.gmra.mrb[0].mxu0 %vm1534_vm0, %v11867_v32  ;;  %10069 = vmatmul.mubr.msk.f32.vlgmr.msra.gmra.mrb[0].mxu1 %vm1534_vm0, %v11867_v32 }
 0x1ad   : > { %10812 = vmatpush3.bf16.msra.mxu0 %v10811_v31  ;;  %10079 = vmatprep.mubr.msk.f32.mxu0 %vm11562_vm1, %v11563_v20 }
 0x1ae   : > { %10813 = vmatprep.subr.bf16.mxu0 %v11561_v12  ;;  %10084 = vmatprep.mubr.msk.f32.mxu1 %vm11562_vm1, %v11563_v20 }
 0x1b1   : > { %10815 = vmatpush3.bf16.msra.mxu0 %v10814_v35 }
 0x1b2   : > { %10816 = vmatprep.subr.bf16.mxu0 %v11561_v12 }
 0x1b4   : > { %10080 = vmatmul.mubr.msk.f32.vlgmr.msra.gmra.mrb[2].mxu0 %vm1534_vm0, %v11867_v32 }
 0x1b5   : > { %10818 = vmatpush3.bf16.msra.mxu0 %v10817_v38  ;;  %10100 = vmatprep.mubr.msk.f32.mxu0 %vm11562_vm1, %v11563_v20 }
 0x1b6   : > { %10819 = vmatprep.subr.bf16.mxu0 %v11561_v12 }
 0x1b9   : > { %10821 = vmatpush3.bf16.msra.mxu0 %v10820_v41 }
 0x1ba   : > { %10828 = vmatprep.subr.bf16.mxu0 %v11561_v12 }
 0x1bc   : > { %10101 = vmatmul.mubr.msk.f32.vlgmr.msra.gmra.mrb[4].mxu0 %vm1534_vm0, %v11867_v32 }
 0x1bd   : > { %10830 = vmatpush3.bf16.msra.mxu0 %v10829_v44  ;;  %10122 = vmatprep.mubr.msk.f32.mxu0 %vm11562_vm1, %v11563_v20 }
 0x1be   : > { %10831 = vmatprep.subr.bf16.mxu0 %v11561_v12 }
 0x1c1   : > { %10833 = vmatpush3.bf16.msra.mxu0 %v10832_v47 }
 0x1c2   : > { %10135 = vmatprep.subr.mxu0 %v11563_v20 }
 0x1c4   : > { %10123 = vmatmul.mubr.msk.f32.vlgmr.msra.gmra.mrb[6].mxu0 %vm1534_vm0, %v11867_v32 }
 0x1c5   : > { %10137 = vmatprep.mubr.msk.f32.mxu0 %vm11562_vm1, %v11563_v20  ;;  %10136 = vmatpush3.msra.mxu0 %v9340_v45 }
 0x1c6   : > { %10834 = vmatprep.subr.bf16.mxu0 %v11561_v12 }
 0x27f   : > { %v1645_v50 = vpop.f32.mrb[0].mxu0  ;;  %v1729_v51 = vpop.f32.mrb[0].mxu1 }
 0x280   : > { %v1646_v52 = vadd.f32 %v9297_v48, %v1645_v50  ;;  %v1730_v53 = vadd.f32 %v9304_v49, %v1729_v51  ;;  %v10059_v54 = vpop.f32.mrb[1].mxu0  ;;  %v10070_v55 = vpop.f32.mrb[1].mxu1  ;;  %v1977_v49 = vld [vmem:[%s12961_s3] sm:$0xff]  ;;  %v9351_v51 = vld [vmem:[%s11603_s25 + $0xc8] sm:$0xff] }
 0x281   : > { %v9350_v50 = vld [vmem:[%s11603_s25 + $0xc0] sm:$0xff]  ;;  %v9353_v54 = vld [vmem:[%s11603_s25 + $0xd8] sm:$0xff] }
 0x282   : > { %v1649_v56 = vmul.f32 0.35355338, %v1646_v52  ;;  %10083 = vmatpush3.xpose.msk.msra.mxu1 %vm1816_vm2, %v1730_v53  ;;  %v10841_v52 = vpack.c.bf16 %v9351_v51, %v9350_v50  ;;  %v9352_v53 = vld [vmem:[%s11603_s25 + $0xd0] sm:$0xff] }
 0x283   : > { %10087 = vmatprep.subr.mxu1 %v11563_v20  ;;  %v10844_v55 = vpack.c.bf16 %v9353_v54, %v9352_v53  ;;  %v9383_v53 = vld [vmem:[%s11603_s25 + $0x160] sm:$0xff]  ;;  %v9384_v54 = vld [vmem:[%s11603_s25 + $0x168] sm:$0xff] }
 0x285   : > { %10085 = vmatmul.mubr.msk.f32.vlgmr.msra.gmra.mrb[2].mxu1 %vm1816_vm2, %v1649_v56  ;;  %v9343_v56 = vld [vmem:[%s11603_s25 + $0x40] sm:$0xff] }
 0x286   : > { %10089 = vmatprep.mubr.msk.f32.mxu1 %vm11562_vm1, %v11563_v20 }
 0x287   : > { %v1812_v58 = vpop.f32.mrb[2].mxu0 }
 0x288   : > { %v1813_v59 = vadd.f32 %v9311_v57, %v1812_v58  ;;  %v10081_v60 = vpop.f32.mrb[3].mxu0  ;;  %v9344_v57 = vld [vmem:[%s11603_s25 + $0x48] sm:$0xff] }
 0x289   : > { %v10835_v58 = vpack.c.bf16 %v9344_v57, %v9343_v56  ;;  %v9346_v60 = vld [vmem:[%s11603_s25 + $0x58] sm:$0xff]  ;;  %v9376_v57 = vld [vmem:[%s11603_s25 + $0xe0] sm:$0xff] }
 0x28a   : > { %10088 = vmatpush3.msra.mxu1 %v1813_v59  ;;  %v9345_v59 = vld [vmem:[%s11603_s25 + $0x50] sm:$0xff] }
 0x28b   : > { %10822 = vmatprep.subr.bf16.mxu1 %v11561_v12 }
 0x28f   : > { %v2057_v61 = vpop.f32.mrb[4].mxu0 }
 0x290   : > { %v10102_v62 = vpop.f32.mrb[5].mxu0  ;;  %v2058_v28 = vadd.f32 %v9321_v25, %v2057_v61  ;;  %v9362_v25 = vld [vmem:[%s11608_s29 + $0xa] ss:$0 sm:$0xff] }
 0x292   : > { %v2061_v34 = vmul.f32 0.35355338, %v2058_v28 }
 0x297   : > { %v2224_v63 = vpop.f32.mrb[6].mxu0 }
 0x298   : > { %v10124_v1 = vpop.f32.mrb[7].mxu0  ;;  %v2225_v35 = vadd.f32 %v9335_v33, %v2224_v63  ;;  %v10838_v63 = vpack.c.bf16 %v9346_v60, %v9345_v59  ;;  %v9378_v60 = vld [vmem:[%s11603_s25 + $0xf0] sm:$0xff] }
 0x299   : > { %v9357_v1 = vld [vmem:[%s11603_s25 + $0x140] sm:$0xff] }
 0x358   : > { %v1889_v3 = vpop.f32.mrb[2].mxu1 }
 0x359   : > { %v1890_v4 = vadd.f32 %v1889_v3, %v11920_v2  ;;  %v10086_v5 = vpop.f32.mrb[3].mxu1  ;;  %v9358_v3 = vld [vmem:[%s11603_s25 + $0x148] sm:$0xff] }
 0x35b   : > { %v1893_v6 = vsel %vm1816_vm2, %v1890_v4, -inf }
 0x35c   : > { %1894 = vmax.xlane.f32.xlu1 %v1893_v6  ;;  %v10847_v6 = vpack.c.bf16 %v9358_v3, %v9357_v1 }
 0x3e9   : > { %v1895_v7 = vpop.xlane.xlu1 %1894 }
 0x3ea   : > { %v1896_v8 = vsub.f32 %v1890_v4, %v1895_v7  ;;  %v9359_v7 = vld [vmem:[%s11603_s25 + $0x150] sm:$0xff] }
 0x3ec   : > { %v1897_v9 = vmul.f32 1.442695, %v1896_v8  ;;  %v9360_v8 = vld [vmem:[%s11603_s25 + $0x158] sm:$0xff] }
 0x3ee   : > { %11262 = vpow2.f32 %v1897_v9  ;;  %v9355_v9 = vld [vmem:[%s11608_s29 + $0x6] ss:$0 sm:$0xff] }
 0x3f8   : > { %v11263_v10 = vpop.eup %11262 }
 0x3f9   : > { %v1899_v11 = vsel %vm1816_vm2, %v11263_v10, 0.0 }
 0x3fa   : > { %1900 = vadd.xlane.f32.xlu1 %v1899_v11 }
 0x487   : > { %v1901_v13 = vpop.xlane.xlu1 %1900 }
 0x488   : > { %11264 = vrcp.f32 %v1901_v13 }
 0x492   : > { %v11265_v16 = vpop.eup %11264 }
 0x493   : > { %v11927_v18 = vmul.f32 %v11265_v16, %v11263_v10  ;;  %v10850_v10 = vpack.c.bf16 %v9360_v8, %v9359_v7 }
 0x495   : > { %10090 = vmatmul.mubr.msk.f32.vlgmr.msra.gmra.mrb[4].mxu1 %vm1816_vm2, %v11927_v18 }
 0x496   : > { %10824 = vmatpush3.bf16.msra.mxu1 %v10823_v17  ;;  %10111 = vmatprep.mubr.msk.f32.mxu1 %vm11562_vm1, %v11563_v20 }
 0x497   : > { %10825 = vmatprep.subr.bf16.mxu1 %v11561_v12 }
 0x49a   : > { %10827 = vmatpush3.bf16.msra.mxu1 %v10826_v22 }
 0x49b   : > { %10125 = vmatprep.subr.mxu1 %v11563_v20 }
 0x49d   : > { %10112 = vmatmul.mubr.msk.f32.vlgmr.msra.gmra.mrb[6].mxu1 %vm1534_vm0, %v11867_v32 }
 0x49e   : > { %10127 = vmatprep.mubr.msk.f32.mxu1 %vm11562_vm1, %v11563_v20 }
 0x568   : > { %v1973_v23 = vpop.f32.mrb[4].mxu1 }
 0x569   : > { %v10091_v24 = vpop.f32.mrb[5].mxu1 }
 0x570   : > { %v2141_v29 = vpop.f32.mrb[6].mxu1 }
 0x571   : > { %v2142_v30 = vadd.f32 %v9328_v27, %v2141_v29  ;;  %v10113_v31 = vpop.f32.mrb[7].mxu1 }
 0x573   : > { %10126 = vmatpush3.xpose.msk.msra.mxu1 %vm1816_vm2, %v2142_v30 }
 0x574   : > { %10130 = vmatprep.subr.mxu1 %v11563_v20 }
 0x576   : > { %10128 = vmatmul.mubr.msk.f32.vlgmr.msra.gmra.mrb[8].mxu1 %vm1816_vm2, %v2061_v34 }
 0x577   : > { %10131 = vmatpush3.msra.mxu1 %v2225_v35  ;;  %10132 = vmatprep.mubr.msk.f32.mxu1 %vm11562_vm1, %v11563_v20 }
 0x578   : > { %10140 = vmatprep.subr.mxu1 %v11563_v20 }
 0x649   : > { %v2300_v36 = vpop.f32.mrb[8].mxu1 }
 0x64a   : > { %v2301_v37 = vadd.f32 %v2300_v36, %v11920_v2  ;;  %v10129_v38 = vpop.f32.mrb[9].mxu1 }
 0x64c   : > { %v2304_v39 = vsel %vm1816_vm2, %v2301_v37, -inf }
 0x64d   : > { %2305 = vmax.xlane.f32.xlu0 %v2304_v39 }
 0x6da   : > { %v2306_v40 = vpop.xlane.xlu0 %2305 }
 0x6db   : > { %v2307_v41 = vsub.f32 %v2301_v37, %v2306_v40  ;;  %v9367_v40 = vld [vmem:[%s12961_s3 + $0x10] sm:$0xff] }
 0x6dd   : > { %v2308_v42 = vmul.f32 1.442695, %v2307_v41 }
 0x6df   : > { %11266 = vpow2.f32 %v2308_v42  ;;  %v9369_v42 = vld [vmem:[%s11603_s25 + $0x60] sm:$0xff] }
 0x6e9   : > { %v11267_v43 = vpop.eup %11266 }
 0x6ea   : > { %v2310_v44 = vsel %vm1816_vm2, %v11267_v43, 0.0 }
 0x6eb   : > { %2311 = vadd.xlane.f32.xlu1 %v2310_v44 }
 0x778   : > { %v2312_v46 = vpop.xlane.xlu1 %2311 }
 0x779   : > { %11268 = vrcp.f32 %v2312_v46 }
 0x783   : > { %v11269_v47 = vpop.eup %11268 }
 0x784   : > { %v11955_v48 = vmul.f32 %v11269_v47, %v11267_v43  ;;  %v9370_v43 = vld [vmem:[%s11603_s25 + $0x68] sm:$0xff]  ;;  %v9371_v47 = vld [vmem:[%s11603_s25 + $0x70] sm:$0xff] }
 0x785   : > { %v10853_v45 = vpack.c.bf16 %v9370_v43, %v9369_v42 }
 0x786   : > { %10133 = vmatmul.mubr.msk.f32.vlgmr.msra.gmra.mrb[10].mxu1 %vm1816_vm2, %v11955_v48  ;;  %v2536_v50 = vadd.f32 %v11955_v48, %v11927_v18  ;;  %v9385_v18 = vld [vmem:[%s11603_s25 + $0x170] sm:$0xff]  ;;  %v9386_v48 = vld [vmem:[%s11603_s25 + $0x178] sm:$0xff] }
 0x787   : > { %10141 = vmatpush3.msra.mxu1 %v1977_v49  ;;  %10142 = vmatprep.mubr.msk.f32.mxu1 %vm11562_vm1, %v11563_v20  ;;  %v9372_v49 = vld [vmem:[%s11603_s25 + $0x78] sm:$0xff]  ;;  %v10868_v56 = vpack.c.bf16 %v9386_v48, %v9385_v18 }
 0x788   : > { %10840 = vmatprep.subr.bf16.mxu1 %v11561_v12  ;;  %v9403_v18 = vld [vmem:[%s11633_s24 + $0x98] sm:$0xff] }
 0x78a   : > { %10143 = vmatmul.mubr.msk.f32.vlgmr.msra.gmra.mrb[12].mxu1 %vm1816_vm2, %v1973_v23 }
 0x78b   : > { %10842 = vmatpush3.bf16.msra.mxu1 %v10841_v52  ;;  %10164 = vmatprep.mubr.msk.f32.mxu1 %vm11562_vm1, %v11563_v20  ;;  %v10856_v52 = vpack.c.bf16 %v9372_v49, %v9371_v47 }
 0x78c   : > { %10843 = vmatprep.subr.bf16.mxu1 %v11561_v12 }
 0x78f   : > { %10845 = vmatpush3.bf16.msra.mxu1 %v10844_v55  ;;  %v10865_v55 = vpack.c.bf16 %v9384_v54, %v9383_v53  ;;  %v9400_v53 = vld [vmem:[%s11633_s24 + $0x80] sm:$0xff]  ;;  %v9401_v54 = vld [vmem:[%s11633_s24 + $0x88] sm:$0xff] }
 0x790   : > { %10178 = vmatprep.subr.mxu1 %v11563_v20 }
 0x792   : > { %10165 = vmatmul.mubr.msk.f32.vlgmr.msra.gmra.mrb[14].mxu1 %vm1534_vm0, %v11867_v32 }
 0x793   : > { %10180 = vmatprep.mubr.msk.f32.mxu1 %vm11562_vm1, %v11563_v20 }
 0x859   : > { %v2384_v61 = vpop.f32.mrb[10].mxu1 }
 0x85a   : > { %v10134_v62 = vpop.f32.mrb[11].mxu1  ;;  %10138 = vmatmul.mubr.msk.f32.vlgmr.msra.gmra.mrb[8].mxu0 %vm1816_vm2, %v2384_v61  ;;  %v9379_v61 = vld [vmem:[%s11603_s25 + $0xf8] sm:$0xff] }
 0x85b   : > { %10836 = vmatpush3.bf16.msra.mxu0 %v10835_v58  ;;  %10153 = vmatprep.mubr.msk.f32.mxu0 %vm11562_vm1, %v11563_v20  ;;  %v9377_v58 = vld [vmem:[%s11603_s25 + $0xe8] sm:$0xff]  ;;  %v10862_v1 = vpack.c.bf16 %v9379_v61, %v9378_v60 }
 0x85c   : > { %10837 = vmatprep.subr.bf16.mxu0 %v11561_v12  ;;  %v10859_v59 = vpack.c.bf16 %v9377_v58, %v9376_v57  ;;  %v3550_v57 = vld [vmem:[%s11633_s24] sm:$0xff]  ;;  %v3551_v58 = vld [vmem:[%s11633_s24 + $0x8] sm:$0xff] }
 0x85d   : > { %v2532_v4 = vpop.f32.mrb[12].mxu1  ;;  %v10871_v60 = vpack.c.bf16 %v3551_v58, %v3550_v57  ;;  %v9412_v61 = vld [vmem:[%s11633_s24 + $0x28] sm:$0xff] }
 0x85e   : > { %v10144_v5 = vpop.f32.mrb[13].mxu1 }
 0x85f   : > { %10839 = vmatpush3.bf16.msra.mxu0 %v10838_v63 }
 0x860   : > { %10846 = vmatprep.subr.bf16.mxu0 %v11561_v12 }
 0x862   : > { %10154 = vmatmul.mubr.msk.f32.vlgmr.msra.gmra.mrb[10].mxu0 %vm1534_vm0, %v11867_v32 }
 0x863   : > { %10848 = vmatpush3.bf16.msra.mxu0 %v10847_v6  ;;  %10175 = vmatprep.mubr.msk.f32.mxu0 %vm11562_vm1, %v11563_v20 }
 0x864   : > { %10849 = vmatprep.subr.bf16.mxu0 %v11561_v12 }
 0x865   : > { %v2700_v11 = vpop.f32.mrb[14].mxu1 }
 0x866   : > { %v2701_v13 = vadd.f32 %v9355_v9, %v2700_v11  ;;  %v10166_v14 = vpop.f32.mrb[15].mxu1  ;;  %v9381_v11 = vld [vmem:[%s11608_s29 + $0x7] ss:$0 sm:$0xff] }
 0x867   : > { %10851 = vmatpush3.bf16.msra.mxu0 %v10850_v10  ;;  %v9374_v10 = vld [vmem:[%s11608_s29 + $0x3] ss:$0 sm:$0xff] }
 0x868   : > { %10179 = vmatpush3.xpose.msk.msra.mxu1 %vm1816_vm2, %v2701_v13  ;;  %10188 = vmatprep.subr.mxu0 %v11563_v20 }
 0x869   : > { %10183 = vmatprep.subr.mxu1 %v11563_v20 }
 0x86a   : > { %10176 = vmatmul.mubr.msk.f32.vlgmr.msra.gmra.mrb[12].mxu0 %vm1534_vm0, %v11867_v32 }
 0x86b   : > { %10190 = vmatprep.mubr.msk.f32.mxu0 %vm11562_vm1, %v11563_v20  ;;  %10189 = vmatpush3.msra.mxu0 %v9367_v40 }
 0x86c   : > { %10858 = vmatprep.subr.bf16.mxu0 %v11561_v12 }
 0x92d   : > { %v2459_v15 = vpop.f32.mrb[8].mxu0 }
 0x92e   : > { %v12002_v16 = vadd.f32 %v2532_v4, %v2459_v15  ;;  %v10139_v17 = vpop.f32.mrb[9].mxu0 }
 0x935   : > { %v2616_v21 = vpop.f32.mrb[10].mxu0 }
 0x936   : > { %v2617_v22 = vadd.f32 %v9348_v19, %v2616_v21  ;;  %v10155_v23 = vpop.f32.mrb[11].mxu0  ;;  %v9388_v19 = vld [vmem:[%s11608_s29 + $0xb] ss:$0 sm:$0xff] }
 0x938   : > { %v2620_v24 = vmul.f32 0.35355338, %v2617_v22 }
 0x93a   : > { %10181 = vmatmul.mubr.msk.f32.vlgmr.msra.gmra.mrb[16].mxu1 %vm1816_vm2, %v2620_v24 }
 0x93b   : > { %10185 = vmatprep.mubr.msk.f32.mxu1 %vm11562_vm1, %v11563_v20 }
 0x93d   : > { %v2783_v27 = vpop.f32.mrb[12].mxu0 }
 0x93e   : > { %v2784_v28 = vadd.f32 %v9362_v25, %v2783_v27  ;;  %v10177_v29 = vpop.f32.mrb[13].mxu0 }
 0x940   : > { %10184 = vmatpush3.msra.mxu1 %v2784_v28 }
 0x941   : > { %10852 = vmatprep.subr.bf16.mxu1 %v11561_v12 }
 0xa0d   : > { %v2859_v30 = vpop.f32.mrb[16].mxu1 }
 0xa0e   : > { %v2860_v31 = vadd.f32 %v2859_v30, %v11920_v2  ;;  %v10182_v33 = vpop.f32.mrb[17].mxu1 }
 0xa10   : > { %v2863_v34 = vsel %vm1816_vm2, %v2860_v31, -inf }
 0xa11   : > { %2864 = vmax.xlane.f32.xlu0 %v2863_v34 }
 0xa9e   : > { %v2865_v35 = vpop.xlane.xlu0 %2864 }
 0xa9f   : > { %v2866_v36 = vsub.f32 %v2860_v31, %v2865_v35  ;;  %v9393_v31 = vld [vmem:[%s12961_s3 + $0x18] sm:$0xff]  ;;  %s12916_s3 = scalar_lea.vmem [#allocation4], %s12072_s5 }
 0xaa1   : > { %v2867_v37 = vmul.f32 1.442695, %v2866_v36 }
 0xaa3   : > { %11270 = vpow2.f32 %v2867_v37  ;;  %v12087_v37 = vld [vmem:[%s12084_s17] sm:$0xff] }
 0xaad   : > { %v11271_v38 = vpop.eup %11270 }
 0xaae   : > { %v2869_v39 = vsel %vm1816_vm2, %v11271_v38, 0.0 }
 0xaaf   : > { %2870 = vadd.xlane.f32.xlu1 %v2869_v39 }
 0xb3c   : > { %v2871_v41 = vpop.xlane.xlu1 %2870 }
 0xb3d   : > { %11272 = vrcp.f32 %v2871_v41  ;;  %v9395_v41 = vld [vmem:[%s12969_s8] ss:$0 sm:$0xff] }
 0xb47   : > { %v11273_v44 = vpop.eup %11272 }
 0xb48   : > { %v2873_v46 = vmul.f32 %v11273_v44, %v11271_v38 }
 0xb4a   : > { %10186 = vmatmul.mubr.msk.f32.vlgmr.msra.gmra.mrb[18].mxu1 %vm1816_vm2, %v2873_v46  ;;  %v12022_v51 = vadd.f32 %v2873_v46, %v2536_v50 }
 0xb4b   : > { %10854 = vmatpush3.bf16.msra.mxu1 %v10853_v45  ;;  %10201 = vmatprep.mubr.msk.f32.mxu1 %vm11562_vm1, %v11563_v20 }
 0xb4c   : > { %10855 = vmatprep.subr.bf16.mxu1 %v11561_v12 }
 0xb4f   : > { %10857 = vmatpush3.bf16.msra.mxu1 %v10856_v52 }
 0xb50   : > { %10864 = vmatprep.subr.bf16.mxu1 %v11561_v12 }
 0xb52   : > { %10202 = vmatmul.mubr.msk.f32.vlgmr.msra.gmra.mrb[20].mxu1 %vm1534_vm0, %v11867_v32 }
 0xb53   : > { %10866 = vmatpush3.bf16.msra.mxu1 %v10865_v55  ;;  %10223 = vmatprep.mubr.msk.f32.mxu1 %vm11562_vm1, %v11563_v20  ;;  %v10876_v55 = vpack.c.bf16 %v9401_v54, %v9400_v53 }
 0xb54   : > { %10867 = vmatprep.subr.bf16.mxu1 %v11561_v12 }
 0xb57   : > { %10869 = vmatpush3.bf16.msra.mxu1 %v10868_v56  ;;  %v12101_v56 = vld [vmem:[%s12084_s17 + $0x8] sm:$0x3] }
 0xb58   : > { %10236 = vmatprep.subr.mxu1 %v11563_v20 }
 0xb5a   : > { %10224 = vmatmul.mubr.msk.f32.vlgmr.msra.gmra.mrb[22].mxu1 %vm1534_vm0, %v11867_v32 }
 0xb5b   : > { %10238 = vmatprep.mubr.msk.f32.mxu1 %vm11562_vm1, %v11563_v20  ;;  %10237 = vmatpush3.msra.mxu1 %v9393_v31 }
 0xb5c   : > { %10877 = vmatprep.subr.bf16.mxu1 %v10876_v55 }
 0xc1d   : > { %v2943_v62 = vpop.f32.mrb[18].mxu1 }
 0xc1e   : > { %v10187_v63 = vpop.f32.mrb[19].mxu1  ;;  %10191 = vmatmul.mubr.msk.f32.vlgmr.msra.gmra.mrb[14].mxu0 %vm1816_vm2, %v2943_v62 }
 0xc1f   : > { %10860 = vmatpush3.bf16.msra.mxu0 %v10859_v59  ;;  %10212 = vmatprep.mubr.msk.f32.mxu0 %vm11562_vm1, %v11563_v20  ;;  %v9411_v59 = vld [vmem:[%s11633_s24 + $0x20] sm:$0xff]  ;;  %v3552_v63 = vld [vmem:[%s11633_s24 + $0x10] sm:$0xff] }
 0xc20   : > { %10861 = vmatprep.subr.bf16.mxu0 %v11561_v12  ;;  %v10889_v62 = vpack.c.bf16 %v9412_v61, %v9411_v59  ;;  %v9438_v59 = vld [vmem:[%s11633_s24 + $0xd0] sm:$0xff] }
 0xc23   : > { %10863 = vmatpush3.bf16.msra.mxu0 %v10862_v1  ;;  %v3553_v1 = vld [vmem:[%s11633_s24 + $0x18] sm:$0xff] }
 0xc24   : > { %10226 = vmatprep.subr.mxu0 %v11563_v20 }
 0xc25   : > { %v3103_v3 = vpop.f32.mrb[20].mxu1 }
 0xc26   : > { %v10203_v4 = vpop.f32.mrb[21].mxu1  ;;  %10213 = vmatmul.mubr.msk.f32.vlgmr.msra.gmra.mrb[16].mxu0 %vm1534_vm0, %v11867_v32  ;;  %v3104_v13 = vadd.f32 %v9374_v10, %v3103_v3  ;;  %v9413_v3 = vld [vmem:[%s11633_s24 + $0x30] sm:$0xff] }
 0xc27   : > { %10228 = vmatprep.mubr.msk.f32.mxu0 %vm11562_vm1, %v11563_v20  ;;  %v10874_v4 = vpack.c.bf16 %v3553_v1, %v3552_v63  ;;  %v9447_v1 = vld [vmem:[%s11633_s24 + $0x60] sm:$0xff] }
 0xc28   : > { %v3107_v21 = vmul.f32 0.35355338, %v3104_v13 }
 0xc2d   : > { %v3270_v5 = vpop.f32.mrb[22].mxu1 }
 0xc2e   : > { %v10225_v6 = vpop.f32.mrb[23].mxu1  ;;  %v3271_v32 = vadd.f32 %v9388_v19, %v3270_v5  ;;  %v9414_v5 = vld [vmem:[%s11633_s24 + $0x38] sm:$0xff]  ;;  %v9405_v19 = vld [vmem:[%s11638_s30 + $0x4] ss:$0 sm:$0xff] }
 0xc2f   : > { %v10892_v6 = vpack.c.bf16 %v9414_v5, %v9413_v3  ;;  %v9448_v3 = vld [vmem:[%s11633_s24 + $0x68] sm:$0xff]  ;;  %v9449_v5 = vld [vmem:[%s11633_s24 + $0x70] sm:$0xff] }
 0xcf1   : > { %v3018_v7 = vpop.f32.mrb[14].mxu0 }
 0xcf2   : > { %v3022_v8 = vadd.f32 %v3018_v7, %v12002_v16  ;;  %v10192_v9 = vpop.f32.mrb[15].mxu0 }
 0xcf9   : > { %v3187_v14 = vpop.f32.mrb[16].mxu0 }
 0xcfa   : > { %v3188_v15 = vadd.f32 %v9381_v11, %v3187_v14  ;;  %v10214_v17 = vpop.f32.mrb[17].mxu0  ;;  %v9396_v11 = vld [vmem:[%s12970_s14] ss:$0 sm:$0xff] }
 0xcfb   : > { %v9397_v14 = vld [vmem:[%s12971_s19] ss:$0 sm:$0xff] }
 0xcfc   : > { %10227 = vmatpush3.xpose.msk.msra.mxu0 %vm1816_vm2, %v3188_v15 }
 0xcfd   : > { %10231 = vmatprep.subr.mxu0 %v11563_v20 }
 0xcff   : > { %10229 = vmatmul.mubr.msk.f32.vlgmr.msra.gmra.mrb[18].mxu0 %vm1816_vm2, %v3107_v21 }
 0xd00   : > { %10232 = vmatpush3.msra.mxu0 %v3271_v32  ;;  %10233 = vmatprep.mubr.msk.f32.mxu0 %vm11562_vm1, %v11563_v20 }
 0xd01   : > { %10870 = vmatprep.subr.bf16.mxu0 %v11561_v12 }
 0xdd2   : > { %v3346_v16 = vpop.f32.mrb[18].mxu0 }
 0xdd3   : > { %v3347_v22 = vadd.f32 %v3346_v16, %v11920_v2  ;;  %v10230_v23 = vpop.f32.mrb[19].mxu0 }
 0xdd5   : > { %v3350_v24 = vsel %vm1816_vm2, %v3347_v22, -inf }
 0xdd6   : > { %3351 = vmax.xlane.f32.xlu0 %v3350_v24 }
 0xe63   : > { %v3352_v25 = vpop.xlane.xlu0 %3351 }
 0xe64   : > { %v3353_v27 = vsub.f32 %v3347_v22, %v3352_v25  ;;  %v9418_v25 = vld [vmem:[%s11633_s24 + $0xa0] sm:$0xff] }
 0xe66   : > { %v3354_v28 = vmul.f32 1.442695, %v3353_v27  ;;  %v9419_v27 = vld [vmem:[%s11633_s24 + $0xa8] sm:$0xff] }
 0xe68   : > { %11274 = vpow2.f32 %v3354_v28  ;;  %v10894_v28 = vpack.c.bf16 %v9419_v27, %v9418_v25  ;;  %v9456_v25 = vld [vmem:[%s11633_s24 + $0xf0] sm:$0xff]  ;;  %v9457_v27 = vld [vmem:[%s11633_s24 + $0xf8] sm:$0xff] }
 0xe72   : > { %v11275_v29 = vpop.eup %11274 }
 0xe73   : > { %v3356_v30 = vsel %vm1816_vm2, %v11275_v29, 0.0 }
 0xe74   : > { %3357 = vadd.xlane.f32.xlu1 %v3356_v30 }
 0xf01   : > { %v3358_v33 = vpop.xlane.xlu1 %3357 }
 0xf02   : > { %11276 = vrcp.f32 %v3358_v33  ;;  %v9420_v33 = vld [vmem:[%s11633_s24 + $0xb0] sm:$0xff] }
 0xf0c   : > { %v11277_v2 = vpop.eup %11276 }
 0xf0d   : > { %v3360_v34 = vmul.f32 %v11277_v2, %v11275_v29  ;;  %v9398_v29 = vld [vmem:[%s11638_s30] ss:$0 sm:$0xff]  ;;  %v9421_v2 = vld [vmem:[%s11633_s24 + $0xb8] sm:$0xff] }
 0xf0f   : > { %10234 = vmatmul.mubr.msk.f32.vlgmr.msra.gmra.mrb[20].mxu0 %vm1816_vm2, %v3360_v34  ;;  %v3510_v35 = vadd.f32 %v3360_v34, %v12022_v51 }
 0xf10   : > { %10249 = vmatprep.mubr.msk.f32.mxu0 %vm11562_vm1, %v11563_v20  ;;  %10872 = vmatpush3.bf16.msra.mxu0 %v10871_v60  ;;  %v9439_v60 = vld [vmem:[%s11633_s24 + $0xd8] sm:$0xff] }
 0xf11   : > { %v3519_v36 = vmul.f32 0.25, %v3510_v35  ;;  %10873 = vmatprep.subr.bf16.mxu0 %v11561_v12  ;;  %v10916_v63 = vpack.c.bf16 %v9439_v60, %v9438_v59  ;;  %v9459_v59 = vld [vmem:[%s11638_s30 + $0x7] ss:$0 sm:$0xff] }
 0xf13   : > { %4610 = vst.msk [vmem:[%s12916_s3] sm:$0xff] %vm1816_vm2, %v3519_v36  ;;  %s12979_s3 = sld [smem:[#allocation30_spill]] }
 0xf14   : > { %10875 = vmatpush3.bf16.msra.mxu0 %v10874_v4  ;;  %v10925_v4 = vpack.c.bf16 %v9448_v3, %v9447_v1  ;;  %v9452_v1 = vld [vmem:[%s11638_s30 + $0x3] ss:$0 sm:$0xff] }
 0xf15   : > { %10884 = vmatprep.subr.bf16.mxu0 %v11561_v12 }
 0xfe2   : > { %v3430_v38 = vpop.f32.mrb[20].mxu0 }
 0xfe3   : > { %v10235_v39 = vpop.f32.mrb[21].mxu0  ;;  %10239 = vmatmul.mubr.msk.f32.vlgmr.msra.gmra.mrb[24].mxu1 %vm1816_vm2, %v3430_v38 }
 0xfe4   : > { %10260 = vmatprep.mubr.msk.f32.mxu1 %vm1534_vm0, %v12087_v37  ;;  %10879 = vmatpush3.bf16.msra.mxu1 %v10876_v55  ;;  %v10898_v39 = vpack.c.bf16 %v9421_v2, %v9420_v33  ;;  %v4629_v33 = vld [vmem:[%s12960_s20 + $0x8] sm:$0xff] }
0x10b6   : > { %v3505_v40 = vpop.f32.mrb[24].mxu1 }
0x10b7   : > { %v3509_v42 = vadd.f32 %v3505_v40, %v3022_v8  ;;  %v10240_v43 = vpop.f32.mrb[25].mxu1  ;;  %v9429_v40 = vld [vmem:[%s11633_s24 + $0x40] sm:$0xff] }
0x10b8   : > { %v9431_v43 = vld [vmem:[%s11633_s24 + $0x50] sm:$0xff] }
0x10b9   : > { %v3518_v44 = vadd.f32 %v9395_v41, %v3509_v42  ;;  %v9430_v41 = vld [vmem:[%s11633_s24 + $0x48] sm:$0xff] }
0x10ba   : > { %v10907_v42 = vpack.c.bf16 %v9430_v41, %v9429_v40  ;;  %v9477_v40 = vld [vmem:[%s12960_s20 + $0x108] sm:$0xff]  ;;  %v9466_v41 = vld [vmem:[%s12975_s18] ss:$0 sm:$0xff]  ;;  %s12978_s18 = sld [smem:[#allocation27_spill]] }
0x10bb   : > { %v3520_v45 = vadd.f32 %v3518_v44, %v11836_v0  ;;  %v9402_v0 = vld [vmem:[%s11633_s24 + $0x90] sm:$0xff]  ;;  %v9432_v44 = vld [vmem:[%s11633_s24 + $0x58] sm:$0xff] }
0x10bc   : > { %v10880_v48 = vpack.c.bf16 %v9403_v18, %v9402_v0  ;;  %v9416_v18 = vld [vmem:[%s11638_s30 + $0x1] ss:$0 sm:$0xff] }
0x10bd   : > { %v3521_v46 = vsel %vm1534_vm0, %v3520_v45, 0.0 }
0x10be   : > { %3522 = vadd.xlane.f32.xlu0 %v3521_v46  ;;  %10881 = vmatprep.subr.bf16.mxu1 %v10880_v48 }
0x10bf   : > { %10883 = vmatpush3.bf16.msra.mxu1 %v10880_v48 }
0x10c0   : > { %10888 = vmatprep.subr.bf16.mxu1 %v11561_v12 }
0x10c2   : > { %10261 = vmatmul.mubr.msk.f32.vlgmr.msra.gmra.mrb[26].mxu1 %vm1534_vm0, %v12101_v56 }
0x10c3   : > { %10278 = vmatprep.mubr.msk.f32.mxu1 %vm11562_vm1, %v11563_v20  ;;  %10890 = vmatpush3.bf16.msra.mxu1 %v10889_v62 }
0x10c4   : > { %10891 = vmatprep.subr.bf16.mxu1 %v11561_v12 }
0x10c7   : > { %10893 = vmatpush3.bf16.msra.mxu1 %v10892_v6  ;;  %v9450_v6 = vld [vmem:[%s11633_s24 + $0x78] sm:$0xff] }
0x10c8   : > { %10902 = vmatprep.subr.bf16.mxu1 %v11561_v12 }
0x114b   : > { %v3523_v47 = vpop.xlane.xlu0 %3522 }
0x114c   : > { %v3524_v49 = vmul.f32 0.03125, %v3523_v47 }
0x114e   : > { %v3525_v50 = vsub.f32 %v3520_v45, %v3524_v49  ;;  %v10910_v45 = vpack.c.bf16 %v9432_v44, %v9431_v43  ;;  %v9423_v49 = vld [vmem:[%s11638_s30 + $0x5] ss:$0 sm:$0xff]  ;;  %v9479_v44 = vld [vmem:[%s12960_s20 + $0x118] sm:$0xff] }
0x1150   : > { %v3526_v51 = vmul.f32 %v3525_v50, %v3525_v50 }
0x1152   : > { %v3527_v52 = vsel %vm1534_vm0, %v3526_v51, 0.0  ;;  %v9436_v51 = vld [vmem:[%s11633_s24 + $0xc0] sm:$0xff] }
0x1153   : > { %3528 = vadd.xlane.f32.xlu1 %v3527_v52  ;;  %v9437_v52 = vld [vmem:[%s11633_s24 + $0xc8] sm:$0xff] }
0x1154   : > { %v10912_v0 = vpack.c.bf16 %v9437_v52, %v9436_v51  ;;  %v9489_v51 = vld [vmem:[%s12960_s20 + $0x38] sm:$0xff] }
0x1195   : > { %v10262_v21 = vpop.f32.mrb[26].mxu1 }
0x1196   : > { %v3726_v32 = vadd.f32 %v10262_v21, %v9405_v19  ;;  %v3720_v16 = vpop.f32.mrb[27].mxu1 }
0x1197   : > { %v3721_v22 = vadd.f32 %v9405_v19, %v3720_v16  ;;  %v9434_v16 = vld [vmem:[%s11638_s30 + $0x2] ss:$0 sm:$0xff] }
0x1199   : > { %v10885_v24 = vpack.c.bf16 %v3726_v32, %v3721_v22 }
0x11e0   : > { %v3529_v7 = vpop.xlane.xlu1 %3528 }
0x11e1   : > { %v3530_v8 = vmul.f32 0.03125, %v3529_v7  ;;  %v10928_v7 = vpack.c.bf16 %v9450_v6, %v9449_v5  ;;  %v9469_v5 = vld [vmem:[%s12960_s20 + $0x80] sm:$0xff]  ;;  %v9470_v6 = vld [vmem:[%s12960_s20 + $0x88] sm:$0xff] }
0x11e3   : > { %v3531_v9 = vadd.f32 1e-05, %v3530_v8 }
0x11e5   : > { %11278 = vrsqrt.f32 %v3531_v9 }
0x11ef   : > { %v11279_v10 = vpop.eup %11278 }
0x11f0   : > { %v3533_v13 = vmul.f32 %v11279_v10, %v3525_v50  ;;  %v9441_v10 = vld [vmem:[%s11638_s30 + $0x6] ss:$0 sm:$0xff] }
0x11f2   : > { %v3541_v15 = vmul.f32 %v9396_v11, %v3533_v13  ;;  %v9454_v13 = vld [vmem:[%s11633_s24 + $0xe0] sm:$0xff] }
0x11f4   : > { %v12122_v17 = vadd.f32 %v9397_v14, %v3541_v15  ;;  %v9455_v14 = vld [vmem:[%s11633_s24 + $0xe8] sm:$0xff] }
0x11f5   : > { %v10930_v32 = vpack.c.bf16 %v9455_v14, %v9454_v13  ;;  %v9471_v13 = vld [vmem:[%s12960_s20 + $0x90] sm:$0xff]  ;;  %v9472_v14 = vld [vmem:[%s12960_s20 + $0x98] sm:$0xff] }
0x11f6   : > { %10250 = vmatmul.mubr.msk.f32.vlgmr.msra.gmra.mrb[22].mxu0 %vm1534_vm0, %v12122_v17  ;;  %10279 = vmatmul.mubr.msk.f32.vlgmr.msra.gmra.mrb[28].mxu1 %vm1534_vm0, %v12122_v17 }
0x11f7   : > { %10267 = vmatprep.mubr.msk.f32.mxu0 %vm11562_vm1, %v11563_v20  ;;  %10296 = vmatprep.mubr.msk.f32.mxu1 %vm11562_vm1, %v11563_v20 }
0x11f8   : > { %10887 = vmatpush3.bf16.xpose.msk.msra.mxu0 %vm12135_vm3, %v10885_v24 }
0x11f9   : > { %10895 = vmatprep.subr.bf16.mxu0 %v10894_v28 }
0x12c9   : > { %v3630_v30 = vpop.f32.mrb[22].mxu0  ;;  %v3899_v31 = vpop.f32.mrb[28].mxu1 }
0x12ca   : > { %v3631_v34 = vadd.f32 %v9398_v29, %v3630_v30  ;;  %v10251_v35 = vpop.f32.mrb[23].mxu0  ;;  %v10280_v36 = vpop.f32.mrb[29].mxu1  ;;  %v3900_v57 = vadd.f32 %v9416_v18, %v3899_v31  ;;  %v10934_v30 = vpack.c.bf16 %v9457_v27, %v9456_v25  ;;  %v4628_v31 = vld [vmem:[%s12960_s20] sm:$0xff]  ;;  %v9503_v18 = vld [vmem:[%s12960_s20 + $0x138] sm:$0xff] }
0x12cb   : > { %v10943_v2 = vpack.c.bf16 %v4629_v33, %v4628_v31  ;;  %v4631_v35 = vld [vmem:[%s12960_s20 + $0x18] sm:$0xff]  ;;  %v9465_v36 = vld [vmem:[%s12974_s13] ss:$0 sm:$0xff]  ;;  %s12976_s13 = sld [smem:[#allocation25_spill]] }
0x12cc   : > { %v3634_v38 = vmul.f32 0.35355338, %v3631_v34  ;;  %v3903_v62 = vmul.f32 0.35355338, %v3900_v57  ;;  %v4630_v34 = vld [vmem:[%s12960_s20 + $0x10] sm:$0xff] }
0x12ce   : > { %10268 = vmatmul.mubr.msk.f32.vlgmr.msra.gmra.mrb[24].mxu0 %vm1816_vm2, %v3634_v38  ;;  %v4619_v38 = vmul.f32 %v9465_v36, %v11861_v26 }
0x12cf   : > { %10897 = vmatpush3.bf16.msra.mxu0 %v10894_v28  ;;  %10289 = vmatprep.mubr.msk.f32.mxu0 %vm1534_vm0, %v12087_v37 }
0x12d0   : > { %10899 = vmatprep.subr.bf16.mxu0 %v10898_v39  ;;  %v12222_v43 = vadd.f32 %v9466_v41, %v4619_v38 }
0x12d1   : > { %v9467_v27 = vld [vmem:[%s12976_s13] ss:$0 sm:$0xff] }
0x12d3   : > { %10901 = vmatpush3.bf16.msra.mxu0 %v10898_v39  ;;  %v9476_v39 = vld [vmem:[%s12960_s20 + $0x100] sm:$0xff] }
0x12d4   : > { %10906 = vmatprep.subr.bf16.mxu0 %v11561_v12 }
0x12d6   : > { %10290 = vmatmul.mubr.msk.f32.vlgmr.msra.gmra.mrb[26].mxu0 %vm1534_vm0, %v12101_v56 }
0x12d7   : > { %10908 = vmatpush3.bf16.msra.mxu0 %v10907_v42  ;;  %10307 = vmatprep.mubr.msk.f32.mxu0 %vm11562_vm1, %v11563_v20  ;;  %v10955_v42 = vpack.c.bf16 %v9477_v40, %v9476_v39 }
0x12d8   : > { %10909 = vmatprep.subr.bf16.mxu0 %v11561_v12 }
0x12db   : > { %10911 = vmatpush3.bf16.msra.mxu0 %v10910_v45  ;;  %v9486_v45 = vld [vmem:[%s12960_s20 + $0x20] sm:$0xff] }
0x12dc   : > { %10920 = vmatprep.subr.bf16.mxu0 %v11561_v12 }
0x12de   : > { %10308 = vmatmul.mubr.msk.f32.vlgmr.msra.gmra.mrb[28].mxu0 %vm1534_vm0, %v12122_v17 }
0x12df   : > { %10325 = vmatprep.mubr.msk.f32.mxu0 %vm11562_vm1, %v11563_v20 }
0x13a1   : > { %v12164_v46 = vpop.f32.mrb[24].mxu0 }
0x13a2   : > { %v10269_v47 = vpop.f32.mrb[25].mxu0 }
0x13a3   : > { %v9487_v47 = vld [vmem:[%s12960_s20 + $0x28] sm:$0xff] }
0x13a9   : > { %v10291_v50 = vpop.f32.mrb[26].mxu0 }
0x13aa   : > { %v3989_v53 = vadd.f32 %v10291_v50, %v9423_v49  ;;  %v3983_v54 = vpop.f32.mrb[27].mxu0  ;;  %v9488_v50 = vld [vmem:[%s12960_s20 + $0x30] sm:$0xff] }
0x13ab   : > { %v3984_v55 = vadd.f32 %v9423_v49, %v3983_v54  ;;  %v10961_v49 = vpack.c.bf16 %v9487_v47, %v9486_v45  ;;  %v10964_v52 = vpack.c.bf16 %v9489_v51, %v9488_v50  ;;  %v9501_v54 = vld [vmem:[%s12960_s20 + $0x128] sm:$0xff]  ;;  %v9493_v47 = vld [vmem:[%s12960_s20 + $0xa0] sm:$0xff] }
0x13ad   : > { %v10903_v48 = vpack.c.bf16 %v3989_v53, %v3984_v55  ;;  %v9500_v53 = vld [vmem:[%s12960_s20 + $0x120] sm:$0xff] }
0x13ae   : > { %v10973_v55 = vpack.c.bf16 %v9501_v54, %v9500_v53  ;;  %v9495_v53 = vld [vmem:[%s12960_s20 + $0xb0] sm:$0xff]  ;;  %v9496_v54 = vld [vmem:[%s12960_s20 + $0xb8] sm:$0xff] }
0x13af   : > { %10905 = vmatpush3.bf16.xpose.msk.msra.mxu1 %vm12135_vm3, %v10903_v48 }
0x13b0   : > { %10913 = vmatprep.subr.bf16.mxu1 %v10912_v0 }
0x13b1   : > { %v4162_v58 = vpop.f32.mrb[28].mxu0 }
0x13b2   : > { %v10309_v61 = vpop.f32.mrb[29].mxu0  ;;  %v4163_v22 = vadd.f32 %v9434_v16, %v4162_v58 }
0x13b4   : > { %v4166_v29 = vmul.f32 0.35355338, %v4163_v22 }
0x13b6   : > { %10297 = vmatmul.mubr.msk.f32.vlgmr.msra.gmra.mrb[30].mxu1 %vm1816_vm2, %v3903_v62 }
0x13b7   : > { %10915 = vmatpush3.bf16.msra.mxu1 %v10912_v0  ;;  %10318 = vmatprep.mubr.msk.f32.mxu1 %vm1534_vm0, %v12087_v37  ;;  %v9502_v0 = vld [vmem:[%s12960_s20 + $0x130] sm:$0xff] }
0x13b8   : > { %10917 = vmatprep.subr.bf16.mxu1 %v10916_v63  ;;  %v10976_v48 = vpack.c.bf16 %v9503_v18, %v9502_v0 }
0x13bb   : > { %10919 = vmatpush3.bf16.msra.mxu1 %v10916_v63 }
0x13bc   : > { %10924 = vmatprep.subr.bf16.mxu1 %v11561_v12 }
0x13be   : > { %10319 = vmatmul.mubr.msk.f32.vlgmr.msra.gmra.mrb[32].mxu1 %vm1534_vm0, %v12101_v56 }
0x13bf   : > { %10926 = vmatpush3.bf16.msra.mxu1 %v10925_v4  ;;  %10336 = vmatprep.mubr.msk.f32.mxu1 %vm11562_vm1, %v11563_v20 }
0x13c0   : > { %10927 = vmatprep.subr.bf16.mxu1 %v11561_v12 }
0x13c3   : > { %10929 = vmatpush3.bf16.msra.mxu1 %v10928_v7 }
0x13c4   : > { %10938 = vmatprep.subr.bf16.mxu1 %v11561_v12 }
0x13c6   : > { %10337 = vmatmul.mubr.msk.f32.vlgmr.msra.gmra.mrb[34].mxu1 %vm1534_vm0, %v12122_v17 }
0x13c7   : > { %10354 = vmatprep.mubr.msk.f32.mxu1 %vm11562_vm1, %v11563_v20 }
0x1489   : > { %v12192_v8 = vpop.f32.mrb[30].mxu1 }
0x148a   : > { %v10298_v9 = vpop.f32.mrb[31].mxu1 }
0x1491   : > { %v10320_v11 = vpop.f32.mrb[32].mxu1 }
0x1492   : > { %v4252_v15 = vadd.f32 %v10320_v11, %v9441_v10  ;;  %v4246_v19 = vpop.f32.mrb[33].mxu1 }
0x1493   : > { %v4247_v21 = vadd.f32 %v9441_v10, %v4246_v19  ;;  %v10949_v10 = vpack.c.bf16 %v9470_v6, %v9469_v5 }
0x1495   : > { %v10921_v17 = vpack.c.bf16 %v4252_v15, %v4247_v21  ;;  %v10952_v15 = vpack.c.bf16 %v9472_v14, %v9471_v13 }
0x1497   : > { %10923 = vmatpush3.bf16.xpose.msk.msra.mxu0 %vm12135_vm3, %v10921_v17 }
0x1498   : > { %10931 = vmatprep.subr.bf16.mxu0 %v10930_v32 }
0x1499   : > { %v12200_v24 = vpop.f32.mrb[34].mxu1 }
0x149a   : > { %v10338_v28 = vpop.f32.mrb[35].mxu1  ;;  %v4426_v4 = vadd.f32 %v9452_v1, %v12200_v24 }
0x149b   : > { %v9474_v28 = vld [vmem:[%s12976_s13 + $0x4] ss:$0 sm:$0xff] }
0x149c   : > { %v4429_v11 = vmul.f32 0.35355338, %v4426_v4 }
0x149e   : > { %10326 = vmatmul.mubr.msk.f32.vlgmr.msra.gmra.mrb[30].mxu0 %vm1816_vm2, %v4166_v29 }
0x149f   : > { %10933 = vmatpush3.bf16.msra.mxu0 %v10930_v32  ;;  %10347 = vmatprep.mubr.msk.f32.mxu0 %vm1534_vm0, %v12087_v37  ;;  %v10946_v37 = vpack.c.bf16 %v4631_v35, %v4630_v34 }
0x14a0   : > { %10935 = vmatprep.subr.bf16.mxu0 %v10934_v30 }
0x14a3   : > { %10937 = vmatpush3.bf16.msra.mxu0 %v10934_v30 }
0x14a4   : > { %10942 = vmatprep.subr.bf16.mxu0 %v11561_v12 }
0x14a6   : > { %10348 = vmatmul.mubr.msk.f32.vlgmr.msra.gmra.mrb[32].mxu0 %vm1534_vm0, %v12101_v56  ;;  %v9478_v56 = vld [vmem:[%s12960_s20 + $0x110] sm:$0xff] }
0x14a7   : > { %10944 = vmatpush3.bf16.msra.mxu0 %v10943_v2  ;;  %10365 = vmatprep.mubr.msk.f32.mxu0 %vm11562_vm1, %v11563_v20  ;;  %v10958_v26 = vpack.c.bf16 %v9479_v44, %v9478_v56  ;;  %v9481_v2 = vld [vmem:[%s12976_s13 + $0x8] ss:$0 sm:$0xff] }
0x14a8   : > { %10945 = vmatprep.subr.bf16.mxu0 %v11561_v12 }
0x14ab   : > { %10947 = vmatpush3.bf16.msra.mxu0 %v10946_v37  ;;  %v12290_v37 = vld [vmem:[%s11917_s1] sm:$0xff]  ;;  %s12977_s1 = sld [smem:[#allocation26_spill]] }
0x14ac   : > { %10954 = vmatprep.subr.bf16.mxu0 %v11561_v12 }
0x14ae   : > { %10366 = vmatmul.mubr.msk.f32.vlgmr.msra.gmra.mrb[34].mxu0 %vm1534_vm0, %v12222_v43 }
0x14af   : > { %10956 = vmatpush3.bf16.msra.mxu0 %v10955_v42  ;;  %10387 = vmatprep.mubr.msk.f32.mxu0 %vm11562_vm1, %v11563_v20 }
0x14b0   : > { %10957 = vmatprep.subr.bf16.mxu0 %v11561_v12 }
0x14b3   : > { %10959 = vmatpush3.bf16.msra.mxu0 %v10958_v26 }
0x14b4   : > { %10960 = vmatprep.subr.bf16.mxu0 %v11561_v12 }
0x14b6   : > { %10388 = vmatmul.mubr.msk.f32.vlgmr.msra.gmra.mrb[36].mxu0 %vm1534_vm0, %v12222_v43 }
0x14b7   : > { %10962 = vmatpush3.bf16.msra.mxu0 %v10961_v49  ;;  %10408 = vmatprep.mubr.msk.f32.mxu0 %vm11562_vm1, %v11563_v20  ;;  %v9494_v49 = vld [vmem:[%s12960_s20 + $0xa8] sm:$0xff] }
0x14b8   : > { %10963 = vmatprep.subr.bf16.mxu0 %v11561_v12  ;;  %v10967_v51 = vpack.c.bf16 %v9494_v49, %v9493_v47 }
0x14bb   : > { %10965 = vmatpush3.bf16.msra.mxu0 %v10964_v52 }
0x14bc   : > { %10972 = vmatprep.subr.bf16.mxu0 %v11561_v12 }
0x14be   : > { %10409 = vmatmul.mubr.msk.f32.vlgmr.msra.gmra.mrb[38].mxu0 %vm1534_vm0, %v12222_v43 }
0x14bf   : > { %10974 = vmatpush3.bf16.msra.mxu0 %v10973_v55  ;;  %10430 = vmatprep.mubr.msk.f32.mxu0 %vm11562_vm1, %v11563_v20  ;;  %v10970_v55 = vpack.c.bf16 %v9496_v54, %v9495_v53 }
0x14c0   : > { %10975 = vmatprep.subr.bf16.mxu0 %v11561_v12 }
0x14c3   : > { %10977 = vmatpush3.bf16.msra.mxu0 %v10976_v48  ;;  %v9491_v48 = vld [vmem:[%s12976_s13 + $0x1] ss:$0 sm:$0xff] }
0x14c4   : > { %10443 = vmatprep.subr.mxu0 %v11563_v20 }
0x14c6   : > { %10431 = vmatmul.mubr.msk.f32.vlgmr.msra.gmra.mrb[40].mxu0 %vm1534_vm0, %v12222_v43 }
0x14c7   : > { %10445 = vmatprep.mubr.msk.f32.mxu0 %vm11562_vm1, %v11563_v20 }
0x1571   : > { %v12257_v57 = vpop.f32.mrb[30].mxu0 }
0x1572   : > { %v10327_v58 = vpop.f32.mrb[31].mxu0 }
0x1573   : > { %v9498_v58 = vld [vmem:[%s12976_s13 + $0x5] ss:$0 sm:$0xff] }
0x1579   : > { %v10349_v60 = vpop.f32.mrb[32].mxu0 }
0x157a   : > { %v4515_v61 = vadd.f32 %v10349_v60, %v9459_v59  ;;  %v4509_v62 = vpop.f32.mrb[33].mxu0 }
0x157b   : > { %v4510_v63 = vadd.f32 %v9459_v59, %v4509_v62 }
0x157d   : > { %v10939_v3 = vpack.c.bf16 %v4515_v61, %v4510_v63  ;;  %v9505_v63 = vld [vmem:[%s12976_s13 + $0x9] ss:$0 sm:$0xff] }
0x157f   : > { %10941 = vmatpush3.bf16.xpose.msk.msra.mxu1 %vm12135_vm3, %v10939_v3 }
0x1580   : > { %10948 = vmatprep.subr.bf16.mxu1 %v11561_v12 }
0x1581   : > { %v4708_v7 = vpop.f32.mrb[34].mxu0 }
0x1582   : > { %v10367_v9 = vpop.f32.mrb[35].mxu0  ;;  %v4709_v29 = vadd.f32 %v9467_v27, %v4708_v7  ;;  %v9522_v27 = vld [vmem:[%s12960_s20 + $0xd0] sm:$0xff] }
0x1584   : > { %v4712_v34 = vmul.f32 0.35355338, %v4709_v29 }
0x1586   : > { %10355 = vmatmul.mubr.msk.f32.vlgmr.msra.gmra.mrb[36].mxu1 %vm1816_vm2, %v4429_v11 }
0x1587   : > { %10950 = vmatpush3.bf16.msra.mxu1 %v10949_v10  ;;  %10376 = vmatprep.mubr.msk.f32.mxu1 %vm11562_vm1, %v11563_v20 }
0x1588   : > { %10951 = vmatprep.subr.bf16.mxu1 %v11561_v12 }
0x1589   : > { %v4875_v19 = vpop.f32.mrb[36].mxu0 }
0x158a   : > { %v10389_v21 = vpop.f32.mrb[37].mxu0  ;;  %v4876_v35 = vadd.f32 %v9481_v2, %v4875_v19  ;;  %v9515_v2 = vld [vmem:[%s12960_s20 + $0x50] sm:$0xff] }
0x158b   : > { %10953 = vmatpush3.bf16.msra.mxu1 %v10952_v15  ;;  %v9510_v15 = vld [vmem:[%s12977_s1 + $0x8] sm:$0xff] }
0x158c   : > { %10390 = vmatprep.subr.mxu1 %v11563_v20  ;;  %10444 = vmatpush3.msra.mxu0 %v9510_v15  ;;  %v9539_v15 = vld [vmem:[%s12960_s20 + $0x60] sm:$0xff] }
0x158d   : > { %10978 = vmatprep.subr.bf16.mxu0 %v11561_v12 }
0x158e   : > { %10377 = vmatmul.mubr.msk.f32.vlgmr.msra.gmra.mrb[38].mxu1 %vm1534_vm0, %v12222_v43 }
0x158f   : > { %10392 = vmatprep.mubr.msk.f32.mxu1 %vm11562_vm1, %v11563_v20 }
0x1591   : > { %v5119_v32 = vpop.f32.mrb[38].mxu0 }
0x1592   : > { %v10410_v16 = vpop.f32.mrb[39].mxu0  ;;  %v5120_v59 = vadd.f32 %v9491_v48, %v5119_v32 }
0x1593   : > { %v5039_v16 = vld [vmem:[%s12977_s1] sm:$0xff] }
0x1594   : > { %v5123_v1 = vmul.f32 0.35355338, %v5120_v59 }
0x1599   : > { %v5286_v17 = vpop.f32.mrb[40].mxu0 }
0x159a   : > { %v10432_v22 = vpop.f32.mrb[41].mxu0  ;;  %v5287_v3 = vadd.f32 %v9505_v63, %v5286_v17  ;;  %v9520_v17 = vld [vmem:[%s12960_s20 + $0xc0] sm:$0xff] }
0x159b   : > { %v9521_v22 = vld [vmem:[%s12960_s20 + $0xc8] sm:$0xff] }
0x1659   : > { %v12278_v24 = vpop.f32.mrb[36].mxu1 }
0x165a   : > { %v10356_v25 = vpop.f32.mrb[37].mxu1 }
0x165b   : > { %v10985_v25 = vpack.c.bf16 %v9521_v22, %v9520_v17  ;;  %v9541_v22 = vld [vmem:[%s12960_s20 + $0x70] sm:$0xff] }
0x1661   : > { %v4792_v30 = vpop.f32.mrb[38].mxu1 }
0x1662   : > { %v4793_v31 = vadd.f32 %v9474_v28, %v4792_v30  ;;  %v10378_v33 = vpop.f32.mrb[39].mxu1  ;;  %v9523_v28 = vld [vmem:[%s12960_s20 + $0xd8] sm:$0xff]  ;;  %v9513_v30 = vld [vmem:[%s12960_s20 + $0x40] sm:$0xff] }
0x1663   : > { %v10988_v29 = vpack.c.bf16 %v9523_v28, %v9522_v27 }
0x1664   : > { %10391 = vmatpush3.xpose.msk.msra.mxu1 %vm1816_vm2, %v4793_v31  ;;  %v9514_v31 = vld [vmem:[%s12960_s20 + $0x48] sm:$0xff] }
0x1665   : > { %10395 = vmatprep.subr.mxu1 %v11563_v20  ;;  %v10979_v33 = vpack.c.bf16 %v9514_v31, %v9513_v30  ;;  %v9553_v30 = vld [vmem:[%s12960_s20 + $0x160] sm:$0xff]  ;;  %v9554_v31 = vld [vmem:[%s12960_s20 + $0x168] sm:$0xff] }
0x1667   : > { %10393 = vmatmul.mubr.msk.f32.vlgmr.msra.gmra.mrb[40].mxu1 %vm1816_vm2, %v4712_v34  ;;  %v9516_v34 = vld [vmem:[%s12960_s20 + $0x58] sm:$0xff] }
0x1668   : > { %10396 = vmatpush3.msra.mxu1 %v4876_v35  ;;  %10397 = vmatprep.mubr.msk.f32.mxu1 %vm11562_vm1, %v11563_v20 }
0x1669   : > { %10966 = vmatprep.subr.bf16.mxu1 %v11561_v12 }
0x173a   : > { %v4951_v36 = vpop.f32.mrb[40].mxu1 }
0x173b   : > { %v4952_v38 = vadd.f32 %v12290_v37, %v4951_v36  ;;  %v10394_v39 = vpop.f32.mrb[41].mxu1 }
0x173c   : > { %v9527_v39 = vld [vmem:[%s12960_s20 + $0x140] sm:$0xff] }
0x173d   : > { %v4955_v40 = vsel %vm1816_vm2, %v4952_v38, -inf }
0x173e   : > { %4956 = vmax.xlane.f32.xlu0 %v4955_v40  ;;  %v9528_v40 = vld [vmem:[%s12960_s20 + $0x148] sm:$0xff] }
0x17cb   : > { %v4957_v41 = vpop.xlane.xlu0 %4956 }
0x17cc   : > { %v4958_v42 = vsub.f32 %v4952_v38, %v4957_v41  ;;  %v10982_v38 = vpack.c.bf16 %v9516_v34, %v9515_v2  ;;  %v9546_v34 = vld [vmem:[%s12960_s20 + $0xe0] sm:$0xff] }
0x17ce   : > { %v4959_v56 = vmul.f32 1.442695, %v4958_v42 }
0x17d0   : > { %11280 = vpow2.f32 %v4959_v56  ;;  %v10991_v56 = vpack.c.bf16 %v9528_v40, %v9527_v39  ;;  %v9549_v39 = vld [vmem:[%s12960_s20 + $0xf8] sm:$0xff] }
0x17da   : > { %v11281_v44 = vpop.eup %11280 }
0x17db   : > { %v4961_v26 = vsel %vm1816_vm2, %v11281_v44, 0.0 }
0x17dc   : > { %4962 = vadd.xlane.f32.xlu1 %v4961_v26  ;;  %v9530_v26 = vld [vmem:[%s12960_s20 + $0x158] sm:$0xff] }
0x1869   : > { %v4963_v45 = vpop.xlane.xlu1 %4962 }
0x186a   : > { %11282 = vrcp.f32 %v4963_v45  ;;  %v9525_v45 = vld [vmem:[%s12976_s13 + $0x6] ss:$0 sm:$0xff] }
0x1874   : > { %v11283_v50 = vpop.eup %11282 }
0x1875   : > { %v12297_v52 = vmul.f32 %v11283_v50, %v11281_v44  ;;  %v9529_v44 = vld [vmem:[%s12960_s20 + $0x150] sm:$0xff] }
0x1876   : > { %v10994_v47 = vpack.c.bf16 %v9530_v26, %v9529_v44 }
0x1877   : > { %10398 = vmatmul.mubr.msk.f32.vlgmr.msra.gmra.mrb[42].mxu1 %vm1816_vm2, %v12297_v52 }
0x1878   : > { %10968 = vmatpush3.bf16.msra.mxu1 %v10967_v51  ;;  %10419 = vmatprep.mubr.msk.f32.mxu1 %vm11562_vm1, %v11563_v20 }
0x1879   : > { %10969 = vmatprep.subr.bf16.mxu1 %v11561_v12 }
0x187c   : > { %10971 = vmatpush3.bf16.msra.mxu1 %v10970_v55 }
0x187d   : > { %10433 = vmatprep.subr.mxu1 %v11563_v20 }
0x187f   : > { %10420 = vmatmul.mubr.msk.f32.vlgmr.msra.gmra.mrb[44].mxu1 %vm1534_vm0, %v12222_v43 }
0x1880   : > { %10435 = vmatprep.mubr.msk.f32.mxu1 %vm11562_vm1, %v11563_v20 }
0x194a   : > { %v5035_v0 = vpop.f32.mrb[42].mxu1 }
0x194b   : > { %v10399_v18 = vpop.f32.mrb[43].mxu1 }
0x1952   : > { %v5203_v60 = vpop.f32.mrb[44].mxu1 }
0x1953   : > { %v5204_v61 = vadd.f32 %v9498_v58, %v5203_v60  ;;  %v10421_v62 = vpop.f32.mrb[45].mxu1  ;;  %v9532_v60 = vld [vmem:[%s12976_s13 + $0xa] ss:$0 sm:$0xff] }
0x1955   : > { %10434 = vmatpush3.xpose.msk.msra.mxu1 %vm1816_vm2, %v5204_v61 }
0x1956   : > { %10438 = vmatprep.subr.mxu1 %v11563_v20 }
0x1958   : > { %10436 = vmatmul.mubr.msk.f32.vlgmr.msra.gmra.mrb[46].mxu1 %vm1816_vm2, %v5123_v1 }
0x1959   : > { %10439 = vmatpush3.msra.mxu1 %v5287_v3  ;;  %10440 = vmatprep.mubr.msk.f32.mxu1 %vm11562_vm1, %v11563_v20 }
0x195a   : > { %10448 = vmatprep.subr.mxu1 %v11563_v20 }
0x1a2b   : > { %v5362_v4 = vpop.f32.mrb[46].mxu1 }
0x1a2c   : > { %v5363_v5 = vadd.f32 %v12290_v37, %v5362_v4  ;;  %v10437_v6 = vpop.f32.mrb[47].mxu1 }
0x1a2e   : > { %v5366_v7 = vsel %vm1816_vm2, %v5363_v5, -inf }
0x1a2f   : > { %5367 = vmax.xlane.f32.xlu0 %v5366_v7 }
0x1abc   : > { %v5368_v9 = vpop.xlane.xlu0 %5367 }
0x1abd   : > { %v5369_v10 = vsub.f32 %v5363_v5, %v5368_v9 }
0x1abf   : > { %v5370_v11 = vmul.f32 1.442695, %v5369_v10 }
0x1ac1   : > { %11284 = vpow2.f32 %v5370_v11 }
0x1acb   : > { %v11285_v13 = vpop.eup %11284 }
0x1acc   : > { %v5372_v14 = vsel %vm1816_vm2, %v11285_v13, 0.0 }
0x1acd   : > { %5373 = vadd.xlane.f32.xlu1 %v5372_v14 }
0x1b5a   : > { %v5374_v19 = vpop.xlane.xlu1 %5373 }
0x1b5b   : > { %11286 = vrcp.f32 %v5374_v19  ;;  %v9540_v19 = vld [vmem:[%s12960_s20 + $0x68] sm:$0xff] }
0x1b65   : > { %v11287_v21 = vpop.eup %11286 }
0x1b66   : > { %v12325_v32 = vmul.f32 %v11287_v21, %v11285_v13  ;;  %v9537_v13 = vld [vmem:[%s12977_s1 + $0x10] sm:$0xff] }
0x1b68   : > { %10441 = vmatmul.mubr.msk.f32.vlgmr.msra.gmra.mrb[48].mxu1 %vm1816_vm2, %v12325_v32  ;;  %v5598_v27 = vadd.f32 %v12325_v32, %v12297_v52  ;;  %v9555_v52 = vld [vmem:[%s12960_s20 + $0x170] sm:$0xff]  ;;  %v9556_v32 = vld [vmem:[%s12960_s20 + $0x178] sm:$0xff] }
0x1b69   : > { %10449 = vmatpush3.msra.mxu1 %v5039_v16  ;;  %10450 = vmatprep.mubr.msk.f32.mxu1 %vm11562_vm1, %v11563_v20  ;;  %v10997_v16 = vpack.c.bf16 %v9540_v19, %v9539_v15  ;;  %v11012_v2 = vpack.c.bf16 %v9556_v32, %v9555_v52  ;;  %v12449_v15 = vld [vmem:[%s12084_s17] sm:$0xff] }
0x1b6a   : > { %10984 = vmatprep.subr.bf16.mxu1 %v11561_v12  ;;  %v9570_v32 = vld [vmem:[%s12979_s3 + $0x80] sm:$0xff] }
0x1b6c   : > { %10451 = vmatmul.mubr.msk.f32.vlgmr.msra.gmra.mrb[50].mxu1 %vm1816_vm2, %v5035_v0  ;;  %v9518_v0 = vld [vmem:[%s12976_s13 + $0x2] ss:$0 sm:$0xff] }
0x1b6d   : > { %10986 = vmatpush3.bf16.msra.mxu1 %v10985_v25  ;;  %10472 = vmatprep.mubr.msk.f32.mxu1 %vm11562_vm1, %v11563_v20  ;;  %v9542_v25 = vld [vmem:[%s12960_s20 + $0x78] sm:$0xff] }
0x1b6e   : > { %10987 = vmatprep.subr.bf16.mxu1 %v11561_v12 }
0x1b71   : > { %10989 = vmatpush3.bf16.msra.mxu1 %v10988_v29  ;;  %v11000_v29 = vpack.c.bf16 %v9542_v25, %v9541_v22  ;;  %v11336_v25 = vld [vmem:[%s11833_s10] sm:$0xff]  ;;  %s12980_s10 = sld [smem:[#allocation28_spill]] }
0x1b72   : > { %10486 = vmatprep.subr.mxu1 %v11563_v20 }
0x1b74   : > { %10473 = vmatmul.mubr.msk.f32.vlgmr.msra.gmra.mrb[52].mxu1 %vm1534_vm0, %v12222_v43 }
0x1b75   : > { %10488 = vmatprep.mubr.msk.f32.mxu1 %vm11562_vm1, %v11563_v20 }
0x1c3b   : > { %v5446_v35 = vpop.f32.mrb[48].mxu1 }
0x1c3c   : > { %v10442_v36 = vpop.f32.mrb[49].mxu1  ;;  %10446 = vmatmul.mubr.msk.f32.vlgmr.msra.gmra.mrb[42].mxu0 %vm1816_vm2, %v5446_v35  ;;  %v9547_v35 = vld [vmem:[%s12960_s20 + $0xe8] sm:$0xff] }
0x1c3d   : > { %10980 = vmatpush3.bf16.msra.mxu0 %v10979_v33  ;;  %10461 = vmatprep.mubr.msk.f32.mxu0 %vm11562_vm1, %v11563_v20  ;;  %v11009_v33 = vpack.c.bf16 %v9554_v31, %v9553_v30  ;;  %v11003_v36 = vpack.c.bf16 %v9547_v35, %v9546_v34  ;;  %v9572_v35 = vld [vmem:[%s12979_s3 + $0x90] sm:$0xff] }
0x1c3e   : > { %10981 = vmatprep.subr.bf16.mxu0 %v11561_v12 }
0x1c3f   : > { %v5594_v41 = vpop.f32.mrb[50].mxu1 }
0x1c40   : > { %v10452_v42 = vpop.f32.mrb[51].mxu1 }
0x1c41   : > { %10983 = vmatpush3.bf16.msra.mxu0 %v10982_v38  ;;  %v9548_v38 = vld [vmem:[%s12960_s20 + $0xf0] sm:$0xff] }
0x1c42   : > { %10990 = vmatprep.subr.bf16.mxu0 %v11561_v12  ;;  %v11006_v42 = vpack.c.bf16 %v9549_v39, %v9548_v38  ;;  %v6612_v39 = vld [vmem:[%s12979_s3] sm:$0xff] }
0x1c44   : > { %10462 = vmatmul.mubr.msk.f32.vlgmr.msra.gmra.mrb[44].mxu0 %vm1534_vm0, %v12222_v43 }
0x1c45   : > { %10992 = vmatpush3.bf16.msra.mxu0 %v10991_v56  ;;  %10483 = vmatprep.mubr.msk.f32.mxu0 %vm11562_vm1, %v11563_v20 }
0x1c46   : > { %10993 = vmatprep.subr.bf16.mxu0 %v11561_v12 }
0x1c47   : > { %v5762_v49 = vpop.f32.mrb[52].mxu1 }
0x1c48   : > { %v5763_v50 = vadd.f32 %v9525_v45, %v5762_v49  ;;  %v10474_v51 = vpop.f32.mrb[53].mxu1 }
0x1c49   : > { %10995 = vmatpush3.bf16.msra.mxu0 %v10994_v47  ;;  %v9544_v51 = vld [vmem:[%s12976_s13 + $0x3] ss:$0 sm:$0xff] }
0x1c4a   : > { %10487 = vmatpush3.xpose.msk.msra.mxu1 %vm1816_vm2, %v5763_v50  ;;  %10496 = vmatprep.subr.mxu0 %v11563_v20 }
0x1c4b   : > { %10491 = vmatprep.subr.mxu1 %v11563_v20 }
0x1c4c   : > { %10484 = vmatmul.mubr.msk.f32.vlgmr.msra.gmra.mrb[46].mxu0 %vm1534_vm0, %v12222_v43 }
0x1c4d   : > { %10498 = vmatprep.mubr.msk.f32.mxu0 %vm11562_vm1, %v11563_v20  ;;  %10497 = vmatpush3.msra.mxu0 %v9537_v13 }
0x1c4e   : > { %11002 = vmatprep.subr.bf16.mxu0 %v11561_v12 }
0x1d0f   : > { %v5521_v53 = vpop.f32.mrb[42].mxu0 }
0x1d10   : > { %v12372_v54 = vadd.f32 %v5594_v41, %v5521_v53  ;;  %v10447_v55 = vpop.f32.mrb[43].mxu0  ;;  %v9551_v53 = vld [vmem:[%s12976_s13 + $0x7] ss:$0 sm:$0xff] }
0x1d17   : > { %v5678_v18 = vpop.f32.mrb[44].mxu0 }
0x1d18   : > { %v5679_v48 = vadd.f32 %v9518_v0, %v5678_v18  ;;  %v10463_v58 = vpop.f32.mrb[45].mxu0 }
0x1d19   : > { %v9558_v58 = vld [vmem:[%s12976_s13 + $0xb] ss:$0 sm:$0xff] }
0x1d1a   : > { %v5682_v59 = vmul.f32 0.35355338, %v5679_v48 }
0x1d1c   : > { %10489 = vmatmul.mubr.msk.f32.vlgmr.msra.gmra.mrb[54].mxu1 %vm1816_vm2, %v5682_v59 }
0x1d1d   : > { %10493 = vmatprep.mubr.msk.f32.mxu1 %vm11562_vm1, %v11563_v20 }
0x1d1f   : > { %v5845_v61 = vpop.f32.mrb[46].mxu0 }
0x1d20   : > { %v5846_v62 = vadd.f32 %v9532_v60, %v5845_v61  ;;  %v10485_v63 = vpop.f32.mrb[47].mxu0 }
0x1d22   : > { %10492 = vmatpush3.msra.mxu1 %v5846_v62 }
0x1d23   : > { %10996 = vmatprep.subr.bf16.mxu1 %v11561_v12 }
0x1def   : > { %v5921_v1 = vpop.f32.mrb[54].mxu1 }
0x1df0   : > { %v5922_v3 = vadd.f32 %v12290_v37, %v5921_v1  ;;  %v10490_v4 = vpop.f32.mrb[55].mxu1 }
0x1df2   : > { %v5925_v5 = vsel %vm1816_vm2, %v5922_v3, -inf }
0x1df3   : > { %5926 = vmax.xlane.f32.xlu0 %v5925_v5 }
0x1e80   : > { %v5927_v6 = vpop.xlane.xlu0 %5926 }
0x1e81   : > { %v5928_v7 = vsub.f32 %v5922_v3, %v5927_v6  ;;  %v9563_v6 = vld [vmem:[%s12977_s1 + $0x18] sm:$0xff]  ;;  %s12987_s1 = sld [smem:[#allocation36_spill]] }
0x1e83   : > { %v5929_v9 = vmul.f32 1.442695, %v5928_v7 }
0x1e85   : > { %11288 = vpow2.f32 %v5929_v9 }
0x1e8f   : > { %v11289_v10 = vpop.eup %11288 }
0x1e90   : > { %v5931_v11 = vsel %vm1816_vm2, %v11289_v10, 0.0 }
0x1e91   : > { %5932 = vadd.xlane.f32.xlu1 %v5931_v11 }
0x1f1e   : > { %v5933_v14 = vpop.xlane.xlu1 %5932 }
0x1f1f   : > { %11290 = vrcp.f32 %v5933_v14 }
0x1f29   : > { %v11291_v21 = vpop.eup %11290 }
0x1f2a   : > { %v5935_v17 = vmul.f32 %v11291_v21, %v11289_v10  ;;  %v9565_v21 = vld [vmem:[%s12978_s18] ss:$0 sm:$0xff]  ;;  %s12981_s18 = sld [smem:[#allocation29_spill]] }
0x1f2c   : > { %10494 = vmatmul.mubr.msk.f32.vlgmr.msra.gmra.mrb[56].mxu1 %vm1816_vm2, %v5935_v17  ;;  %v12392_v28 = vadd.f32 %v5935_v17, %v5598_v27 }
0x1f2d   : > { %10998 = vmatpush3.bf16.msra.mxu1 %v10997_v16  ;;  %10509 = vmatprep.mubr.msk.f32.mxu1 %vm11562_vm1, %v11563_v20 }
0x1f2e   : > { %10999 = vmatprep.subr.bf16.mxu1 %v11561_v12 }
0x1f31   : > { %11001 = vmatpush3.bf16.msra.mxu1 %v11000_v29 }
0x1f32   : > { %11008 = vmatprep.subr.bf16.mxu1 %v11561_v12 }
0x1f34   : > { %10510 = vmatmul.mubr.msk.f32.vlgmr.msra.gmra.mrb[58].mxu1 %vm1534_vm0, %v12222_v43 }
0x1f35   : > { %11010 = vmatpush3.bf16.msra.mxu1 %v11009_v33  ;;  %10531 = vmatprep.mubr.msk.f32.mxu1 %vm11562_vm1, %v11563_v20 }
0x1f36   : > { %11011 = vmatprep.subr.bf16.mxu1 %v11561_v12 }
0x1f39   : > { %11013 = vmatpush3.bf16.msra.mxu1 %v11012_v2  ;;  %v9571_v2 = vld [vmem:[%s12979_s3 + $0x88] sm:$0xff] }
0x1f3a   : > { %10544 = vmatprep.subr.mxu1 %v11563_v20  ;;  %v11020_v34 = vpack.c.bf16 %v9571_v2, %v9570_v32 }
0x1f3c   : > { %10532 = vmatmul.mubr.msk.f32.vlgmr.msra.gmra.mrb[60].mxu1 %vm1534_vm0, %v12222_v43 }
0x1f3d   : > { %10546 = vmatprep.mubr.msk.f32.mxu1 %vm11562_vm1, %v11563_v20  ;;  %10545 = vmatpush3.msra.mxu1 %v9563_v6 }
0x1f3e   : > { %11021 = vmatprep.subr.bf16.mxu1 %v11020_v34 }
0x1fff   : > { %v6005_v40 = vpop.f32.mrb[56].mxu1 }
0x2000   : > { %v10495_v41 = vpop.f32.mrb[57].mxu1  ;;  %10499 = vmatmul.mubr.msk.f32.vlgmr.msra.gmra.mrb[48].mxu0 %vm1816_vm2, %v6005_v40  ;;  %v6613_v40 = vld [vmem:[%s12979_s3 + $0x8] sm:$0xff] }
0x2001   : > { %11004 = vmatpush3.bf16.msra.mxu0 %v11003_v36  ;;  %10520 = vmatprep.mubr.msk.f32.mxu0 %vm11562_vm1, %v11563_v20  ;;  %v9573_v36 = vld [vmem:[%s12979_s3 + $0x98] sm:$0xff]  ;;  %v12469_v41 = vld [vmem:[%s12084_s17 + $0x8] sm:$0x3]  ;;  %s12985_s17 = sld [smem:[#allocation32_spill]] }
0x2002   : > { %11005 = vmatprep.subr.bf16.mxu0 %v11561_v12  ;;  %v11024_v38 = vpack.c.bf16 %v9573_v36, %v9572_v35 }
0x2005   : > { %11007 = vmatpush3.bf16.msra.mxu0 %v11006_v42  ;;  %v11015_v42 = vpack.c.bf16 %v6613_v40, %v6612_v39  ;;  %v9598_v40 = vld [vmem:[%s12979_s3 + $0xa0] sm:$0xff] }
0x2006   : > { %10534 = vmatprep.subr.mxu0 %v11563_v20 }
0x2007   : > { %v6165_v56 = vpop.f32.mrb[58].mxu1 }
0x2008   : > { %v10511_v44 = vpop.f32.mrb[59].mxu1  ;;  %10521 = vmatmul.mubr.msk.f32.vlgmr.msra.gmra.mrb[50].mxu0 %vm1534_vm0, %v12222_v43  ;;  %v6166_v55 = vadd.f32 %v9544_v51, %v6165_v56  ;;  %v6614_v56 = vld [vmem:[%s12979_s3 + $0x10] sm:$0xff]  ;;  %v9566_v51 = vld [vmem:[%s12980_s10] ss:$0 sm:$0xff]  ;;  %s12986_s10 = sld [smem:[#allocation33_spill]] }
0x2009   : > { %10536 = vmatprep.mubr.msk.f32.mxu0 %vm11562_vm1, %v11563_v20  ;;  %v6615_v44 = vld [vmem:[%s12979_s3 + $0x18] sm:$0xff] }
0x200a   : > { %v6169_v59 = vmul.f32 0.35355338, %v6166_v55  ;;  %v9567_v55 = vld [vmem:[%s12981_s18] ss:$0 sm:$0xff]  ;;  %s12919_s18 = scalar_lea.vmem [#allocation9], %s12072_s5 }
0x200f   : > { %v6332_v26 = vpop.f32.mrb[60].mxu1 }
0x2010   : > { %v10533_v45 = vpop.f32.mrb[61].mxu1  ;;  %v6333_v43 = vadd.f32 %v9558_v58, %v6332_v26  ;;  %v11018_v26 = vpack.c.bf16 %v6615_v44, %v6614_v56 }
0x20d3   : > { %v6080_v47 = vpop.f32.mrb[48].mxu0 }
0x20d4   : > { %v6084_v49 = vadd.f32 %v6080_v47, %v12372_v54  ;;  %v10500_v50 = vpop.f32.mrb[49].mxu0 }
0x20db   : > { %v6249_v0 = vpop.f32.mrb[50].mxu0 }
0x20dc   : > { %v6250_v18 = vadd.f32 %v9551_v53, %v6249_v0  ;;  %v10522_v48 = vpop.f32.mrb[51].mxu0 }
0x20de   : > { %10535 = vmatpush3.xpose.msk.msra.mxu0 %vm1816_vm2, %v6250_v18 }
0x20df   : > { %10539 = vmatprep.subr.mxu0 %v11563_v20 }
0x20e1   : > { %10537 = vmatmul.mubr.msk.f32.vlgmr.msra.gmra.mrb[52].mxu0 %vm1816_vm2, %v6169_v59 }
0x20e2   : > { %10540 = vmatpush3.msra.mxu0 %v6333_v43  ;;  %10541 = vmatprep.mubr.msk.f32.mxu0 %vm11562_vm1, %v11563_v20 }
0x20e3   : > { %11014 = vmatprep.subr.bf16.mxu0 %v11561_v12 }
0x21b4   : > { %v6408_v54 = vpop.f32.mrb[52].mxu0 }
0x21b5   : > { %v6409_v60 = vadd.f32 %v12290_v37, %v6408_v54  ;;  %v10538_v61 = vpop.f32.mrb[53].mxu0 }
0x21b7   : > { %v6412_v62 = vsel %vm1816_vm2, %v6409_v60, -inf }
0x21b8   : > { %6413 = vmax.xlane.f32.xlu0 %v6412_v62  ;;  %v9591_v62 = vld [vmem:[%s12979_s3 + $0x20] sm:$0xff] }
0x2245   : > { %v6414_v63 = vpop.xlane.xlu0 %6413 }
0x2246   : > { %v6415_v1 = vsub.f32 %v6409_v60, %v6414_v63  ;;  %v9592_v63 = vld [vmem:[%s12979_s3 + $0x28] sm:$0xff] }
0x2248   : > { %v6416_v3 = vmul.f32 1.442695, %v6415_v1 }
0x224a   : > { %11292 = vpow2.f32 %v6416_v3 }
0x2254   : > { %v11293_v4 = vpop.eup %11292 }
0x2255   : > { %v6418_v5 = vsel %vm1816_vm2, %v11293_v4, 0.0 }
0x2256   : > { %6419 = vadd.xlane.f32.xlu1 %v6418_v5  ;;  %v11045_v5 = vpack.c.bf16 %v9592_v63, %v9591_v62  ;;  %v9606_v62 = vld [vmem:[%s12979_s3 + $0x120] sm:$0xff]  ;;  %v9607_v63 = vld [vmem:[%s12979_s3 + $0x128] sm:$0xff] }
0x22e3   : > { %v6420_v7 = vpop.xlane.xlu1 %6419 }
0x22e4   : > { %11294 = vrcp.f32 %v6420_v7  ;;  %v9593_v7 = vld [vmem:[%s12979_s3 + $0x30] sm:$0xff] }
0x22ee   : > { %v11295_v37 = vpop.eup %11294 }
0x22ef   : > { %v6422_v9 = vmul.f32 %v11295_v37, %v11293_v4  ;;  %v9594_v37 = vld [vmem:[%s12979_s3 + $0x38] sm:$0xff] }
0x22f1   : > { %10542 = vmatmul.mubr.msk.f32.vlgmr.msra.gmra.mrb[54].mxu0 %vm1816_vm2, %v6422_v9  ;;  %v6572_v10 = vadd.f32 %v6422_v9, %v12392_v28  ;;  %v11048_v9 = vpack.c.bf16 %v9594_v37, %v9593_v7 }
0x22f2   : > { %10557 = vmatprep.mubr.msk.f32.mxu0 %vm11562_vm1, %v11563_v20  ;;  %11016 = vmatpush3.bf16.msra.mxu0 %v11015_v42  ;;  %v9599_v42 = vld [vmem:[%s12979_s3 + $0xa8] sm:$0xff] }
0x22f3   : > { %v6581_v11 = vmul.f32 0.25, %v6572_v10  ;;  %11017 = vmatprep.subr.bf16.mxu0 %v11561_v12  ;;  %v9578_v10 = vld [vmem:[%s12979_s3 + $0x100] sm:$0xff]  ;;  %v11050_v56 = vpack.c.bf16 %v9599_v42, %v9598_v40  ;;  %v9623_v40 = vld [vmem:[%s12979_s3 + $0x48] sm:$0xff] }
0x22f5   : > { %8865 = vst.msk [vmem:[%s12917_s7] sm:$0xff] %vm1816_vm2, %v6581_v11  ;;  %s12982_s7 = sld [smem:[#allocation31_spill]]  ;;  %v9579_v11 = vld [vmem:[%s12979_s3 + $0x108] sm:$0xff] }
0x22f6   : > { %11019 = vmatpush3.bf16.msra.mxu0 %v11018_v26  ;;  %v9600_v26 = vld [vmem:[%s12979_s3 + $0xb0] sm:$0xff] }
0x22fb   : > { %v9575_v48 = vld [vmem:[%s12982_s7 + $0x4] ss:$0 sm:$0xff]  ;;  %v9568_v61 = vld [vmem:[%s12982_s7] ss:$0 sm:$0xff]  ;;  %v9583_v2 = vld [vmem:[%s12982_s7 + $0x8] ss:$0 sm:$0xff] }
0x23c4   : > { %v6492_v13 = vpop.f32.mrb[54].mxu0 }
0x23c5   : > { %v10543_v14 = vpop.f32.mrb[55].mxu0  ;;  %10547 = vmatmul.mubr.msk.f32.vlgmr.msra.gmra.mrb[62].mxu1 %vm1816_vm2, %v6492_v13  ;;  %v9580_v13 = vld [vmem:[%s12979_s3 + $0x110] sm:$0xff] }
0x23c6   : > { %10568 = vmatprep.mubr.msk.f32.mxu1 %vm1534_vm0, %v12449_v15  ;;  %11023 = vmatpush3.bf16.msra.mxu1 %v11020_v34  ;;  %v11028_v14 = vpack.c.bf16 %v9579_v11, %v9578_v10 }
0x23c7   : > { %11025 = vmatprep.subr.bf16.mxu1 %v11024_v38 }
0x23c8   : > { %11029 = vmatprep.subr.bf16.mxu0 %v11028_v14 }
0x23ca   : > { %11027 = vmatpush3.bf16.msra.mxu1 %v11024_v38 }
0x23cb   : > { %11036 = vmatprep.subr.bf16.mxu1 %v11561_v12 }
0x23cd   : > { %10569 = vmatmul.mubr.msk.f32.vlgmr.msra.gmra.mrb[64].mxu1 %vm1534_vm0, %v12469_v41 }
0x23ce   : > { %10586 = vmatprep.mubr.msk.f32.mxu1 %vm11562_vm1, %v11563_v20 }
0x2498   : > { %v6567_v19 = vpop.f32.mrb[62].mxu1 }
0x2499   : > { %v6571_v16 = vadd.f32 %v6567_v19, %v6084_v49  ;;  %v10548_v17 = vpop.f32.mrb[63].mxu1  ;;  %v9581_v19 = vld [vmem:[%s12979_s3 + $0x118] sm:$0xff] }
0x249b   : > { %v6580_v22 = vadd.f32 %v9565_v21, %v6571_v16  ;;  %v11032_v21 = vpack.c.bf16 %v9581_v19, %v9580_v13 }
0x249d   : > { %v12455_v27 = vadd.f32 %v11336_v25, %v6580_v22 }
0x249f   : > { %v6583_v28 = vsel %vm1534_vm0, %v12455_v27, 0.0 }
0x24a0   : > { %6584 = vadd.xlane.f32.xlu0 %v6583_v28  ;;  %v10570_v58 = vpop.f32.mrb[64].mxu1 }
0x24a1   : > { %v6782_v59 = vadd.f32 %v10570_v58, %v9575_v48  ;;  %v6776_v43 = vpop.f32.mrb[65].mxu1 }
0x24a2   : > { %v6777_v54 = vadd.f32 %v9575_v48, %v6776_v43  ;;  %v9596_v43 = vld [vmem:[%s12982_s7 + $0x1] ss:$0 sm:$0xff] }
0x24a4   : > { %v11037_v60 = vpack.c.bf16 %v6782_v59, %v6777_v54 }
0x24a6   : > { %11039 = vmatpush3.bf16.xpose.msk.msra.mxu1 %vm12135_vm3, %v11037_v60 }
0x24a7   : > { %11044 = vmatprep.subr.bf16.mxu1 %v11561_v12 }
0x252d   : > { %v6585_v29 = vpop.xlane.xlu0 %6584 }
0x252e   : > { %v6586_v30 = vmul.f32 0.03125, %v6585_v29 }
0x2530   : > { %v6587_v31 = vsub.f32 %v12455_v27, %v6586_v30 }
0x2532   : > { %v6588_v33 = vmul.f32 %v6587_v31, %v6587_v31 }
0x2534   : > { %v6589_v52 = vsel %vm1534_vm0, %v6588_v33, 0.0 }
0x2535   : > { %6590 = vadd.xlane.f32.xlu1 %v6589_v52 }
0x25c2   : > { %v6591_v45 = vpop.xlane.xlu1 %6590 }
0x25c3   : > { %v6592_v47 = vmul.f32 0.03125, %v6591_v45  ;;  %v9601_v45 = vld [vmem:[%s12979_s3 + $0xb8] sm:$0xff] }
0x25c5   : > { %v6593_v49 = vadd.f32 1e-05, %v6592_v47 }
0x25c7   : > { %11296 = vrsqrt.f32 %v6593_v49 }
0x25d1   : > { %v11297_v50 = vpop.eup %11296 }
0x25d2   : > { %v6595_v53 = vmul.f32 %v11297_v50, %v6587_v31  ;;  %v11054_v50 = vpack.c.bf16 %v9601_v45, %v9600_v26 }
0x25d4   : > { %v6603_v0 = vmul.f32 %v9566_v51, %v6595_v53 }
0x25d6   : > { %v12480_v18 = vadd.f32 %v9567_v55, %v6603_v0  ;;  %v9603_v55 = vld [vmem:[%s12982_s7 + $0x5] ss:$0 sm:$0xff] }
0x25d8   : > { %10558 = vmatmul.mubr.msk.f32.vlgmr.msra.gmra.mrb[56].mxu0 %vm1534_vm0, %v12480_v18 }
0x25d9   : > { %10579 = vmatprep.mubr.msk.f32.mxu0 %vm1534_vm0, %v12449_v15  ;;  %11031 = vmatpush3.bf16.msra.mxu0 %v11028_v14 }
0x25da   : > { %11033 = vmatprep.subr.bf16.mxu0 %v11032_v21 }
0x25dd   : > { %11035 = vmatpush3.bf16.msra.mxu0 %v11032_v21  ;;  %v9611_v21 = vld [vmem:[%s12982_s7 + $0x9] ss:$0 sm:$0xff] }
0x25de   : > { %11040 = vmatprep.subr.bf16.mxu0 %v11561_v12 }
0x25e0   : > { %10580 = vmatmul.mubr.msk.f32.vlgmr.msra.gmra.mrb[58].mxu0 %vm1534_vm0, %v12469_v41 }
0x25e1   : > { %10593 = vmatprep.mubr.msk.f32.mxu0 %vm11562_vm1, %v11563_v20 }
0x26ab   : > { %v6692_v1 = vpop.f32.mrb[56].mxu0 }
0x26ac   : > { %v6693_v3 = vadd.f32 %v9568_v61, %v6692_v1  ;;  %v10559_v4 = vpop.f32.mrb[57].mxu0  ;;  %v9608_v1 = vld [vmem:[%s12979_s3 + $0x130] sm:$0xff] }
0x26ad   : > { %v9609_v4 = vld [vmem:[%s12979_s3 + $0x138] sm:$0xff] }
0x26ae   : > { %v6696_v6 = vmul.f32 0.35355338, %v6693_v3  ;;  %v11058_v3 = vpack.c.bf16 %v9607_v63, %v9606_v62 }
0x26b0   : > { %10587 = vmatmul.mubr.msk.f32.vlgmr.msra.gmra.mrb[66].mxu1 %vm1816_vm2, %v6696_v6 }
0x26b1   : > { %11046 = vmatpush3.bf16.msra.mxu1 %v11045_v5  ;;  %10604 = vmatprep.mubr.msk.f32.mxu1 %vm11562_vm1, %v11563_v20  ;;  %v11062_v5 = vpack.c.bf16 %v9609_v4, %v9608_v1  ;;  %v9637_v4 = vld [vmem:[%s12979_s3 + $0x140] sm:$0xff] }
0x26b2   : > { %11047 = vmatprep.subr.bf16.mxu1 %v11561_v12 }
0x26b3   : > { %v10581_v32 = vpop.f32.mrb[58].mxu0 }
0x26b4   : > { %v6864_v34 = vpop.f32.mrb[59].mxu0  ;;  %v6870_v35 = vadd.f32 %v10581_v32, %v9583_v2  ;;  %v7040_v32 = vld [vmem:[%s12985_s17] sm:$0xff] }
0x26b5   : > { %11049 = vmatpush3.bf16.msra.mxu1 %v11048_v9  ;;  %v6865_v36 = vadd.f32 %v9583_v2, %v6864_v34  ;;  %v9631_v34 = vld [vmem:[%s12979_s3 + $0xd0] sm:$0xff] }
0x26b6   : > { %11059 = vmatprep.subr.bf16.mxu1 %v11058_v3 }
0x26b7   : > { %v11041_v38 = vpack.c.bf16 %v6870_v35, %v6865_v36  ;;  %v9632_v35 = vld [vmem:[%s12979_s3 + $0xd8] sm:$0xff] }
0x26b8   : > { %10605 = vmatmul.mubr.msk.f32.vlgmr.msra.gmra.mrb[68].mxu1 %vm1534_vm0, %v12480_v18  ;;  %v11084_v36 = vpack.c.bf16 %v9632_v35, %v9631_v34  ;;  %v9653_v34 = vld [vmem:[%s12979_s3 + $0x68] sm:$0xff] }
0x26b9   : > { %10626 = vmatprep.mubr.msk.f32.mxu1 %vm1534_vm0, %v12449_v15  ;;  %11043 = vmatpush3.bf16.msk.msra.mxu0 %vm12515_vm7, %v11041_v38  ;;  %v9622_v38 = vld [vmem:[%s12979_s3 + $0x40] sm:$0xff] }
0x26ba   : > { %11051 = vmatprep.subr.bf16.mxu0 %v11050_v56  ;;  %11061 = vmatpush3.bf16.msra.mxu1 %v11058_v3  ;;  %v11075_v42 = vpack.c.bf16 %v9623_v40, %v9622_v38 }
0x26bb   : > { %11063 = vmatprep.subr.bf16.mxu1 %v11062_v5 }
0x26be   : > { %11065 = vmatpush3.bf16.msra.mxu1 %v11062_v5  ;;  %v9638_v5 = vld [vmem:[%s12979_s3 + $0x148] sm:$0xff] }
0x26bf   : > { %11070 = vmatprep.subr.bf16.mxu1 %v11561_v12 }
0x26c1   : > { %10627 = vmatmul.mubr.msk.f32.vlgmr.msra.gmra.mrb[70].mxu1 %vm1534_vm0, %v12469_v41 }
0x26c2   : > { %10640 = vmatprep.mubr.msk.f32.mxu1 %vm11562_vm1, %v11563_v20 }
0x2783   : > { %v6948_v16 = vpop.f32.mrb[66].mxu1 }
0x2784   : > { %v10588_v17 = vpop.f32.mrb[67].mxu1  ;;  %v6952_v22 = vsel %vm3808_vm4, %v6948_v16, -inf }
0x2785   : > { %6953 = vmax.xlane.f32.xlu0 %v6952_v22 }
0x278b   : > { %v7120_v25 = vpop.f32.mrb[68].mxu1 }
0x278c   : > { %v10606_v28 = vpop.f32.mrb[69].mxu1  ;;  %v7121_v60 = vadd.f32 %v9596_v43, %v7120_v25 }
0x278d   : > { %v9619_v28 = vld [vmem:[%s12985_s17 + $0x8] sm:$0xff] }
0x278e   : > { %v7124_v61 = vmul.f32 0.35355338, %v7121_v60 }
0x2794   : > { %v10628_v19 = vpop.f32.mrb[70].mxu1 }
0x2795   : > { %v7298_v17 = vadd.f32 %v10628_v19, %v9611_v21 }
0x2812   : > { %v6954_v29 = vpop.xlane.xlu0 %6953 }
0x2813   : > { %v6955_v30 = vsub.f32 %v6948_v16, %v6954_v29  ;;  %v7292_v16 = vpop.f32.mrb[71].mxu1 }
0x2814   : > { %v7293_v22 = vadd.f32 %v9611_v21, %v7292_v16 }
0x2815   : > { %v6956_v31 = vmul.f32 1.442695, %v6955_v30  ;;  %v9629_v30 = vld [vmem:[%s12979_s3 + $0xc0] sm:$0xff] }
0x2816   : > { %v11071_v25 = vpack.c.bf16 %v7298_v17, %v7293_v22 }
0x2817   : > { %11298 = vpow2.f32 %v6956_v31  ;;  %v9630_v31 = vld [vmem:[%s12979_s3 + $0xc8] sm:$0xff] }
0x2818   : > { %11073 = vmatpush3.bf16.msk.msra.mxu1 %vm12515_vm7, %v11071_v25  ;;  %v11080_v2 = vpack.c.bf16 %v9630_v31, %v9629_v30  ;;  %v9642_v25 = vld [vmem:[%s12982_s7 + $0xa] ss:$0 sm:$0xff] }
0x2819   : > { %10648 = vmatprep.subr.mxu1 %v11563_v20 }
0x2821   : > { %v11299_v33 = vpop.eup %11298 }
0x2822   : > { %v6958_v52 = vsel %vm3808_vm4, %v11299_v33, 0.0 }
0x2823   : > { %6959 = vadd.xlane.f32.xlu1 %v6958_v52 }
0x28b0   : > { %v6960_v44 = vpop.xlane.xlu1 %6959 }
0x28b1   : > { %11300 = vrcp.f32 %v6960_v44  ;;  %v9625_v44 = vld [vmem:[%s12979_s3 + $0x58] sm:$0xff] }
0x28bb   : > { %v11301_v47 = vpop.eup %11300 }
0x28bc   : > { %v12525_v49 = vmul.f32 %v11301_v47, %v11299_v33 }
0x28be   : > { %10594 = vmatmul.mubr.msk.f32.vlgmr.msra.gmra.mrb[60].mxu0 %vm3808_vm4, %v12525_v49 }
0x28bf   : > { %11053 = vmatpush3.bf16.msra.mxu0 %v11050_v56  ;;  %10615 = vmatprep.mubr.msk.f32.mxu0 %vm1534_vm0, %v12449_v15  ;;  %v9624_v56 = vld [vmem:[%s12979_s3 + $0x50] sm:$0xff] }
0x28c0   : > { %11055 = vmatprep.subr.bf16.mxu0 %v11054_v50  ;;  %v11078_v47 = vpack.c.bf16 %v9625_v44, %v9624_v56  ;;  %v9655_v56 = vld [vmem:[%s12979_s3 + $0x78] sm:$0xff] }
0x28c3   : > { %11057 = vmatpush3.bf16.msra.mxu0 %v11054_v50 }
0x28c4   : > { %11066 = vmatprep.subr.bf16.mxu0 %v11561_v12 }
0x28c6   : > { %10616 = vmatmul.mubr.msk.f32.vlgmr.msra.gmra.mrb[62].mxu0 %vm1534_vm0, %v12469_v41 }
0x28c7   : > { %10633 = vmatprep.mubr.msk.f32.mxu0 %vm11562_vm1, %v11563_v20 }
0x2991   : > { %v12536_v51 = vpop.f32.mrb[60].mxu0 }
0x2992   : > { %v10595_v53 = vpop.f32.mrb[61].mxu0 }
0x2999   : > { %v10617_v0 = vpop.f32.mrb[62].mxu0 }
0x299a   : > { %v7210_v48 = vadd.f32 %v10617_v0, %v9603_v55  ;;  %v7204_v58 = vpop.f32.mrb[63].mxu0 }
0x299b   : > { %v7205_v59 = vadd.f32 %v9603_v55, %v7204_v58  ;;  %v9634_v55 = vld [vmem:[%s12982_s7 + $0x6] ss:$0 sm:$0xff] }
0x299d   : > { %v11067_v54 = vpack.c.bf16 %v7210_v48, %v7205_v59 }
0x299f   : > { %11069 = vmatpush3.bf16.xpose.msk.msra.mxu0 %vm12135_vm3, %v11067_v54 }
0x29a0   : > { %10643 = vmatprep.subr.mxu0 %v11563_v20 }
0x29a6   : > { %10634 = vmatmul.mubr.msk.f32.vlgmr.msra.gmra.mrb[64].mxu0 %vm1816_vm2, %v7124_v61  ;;  %v9627_v61 = vld [vmem:[%s12982_s7 + $0x2] ss:$0 sm:$0xff] }
0x29a7   : > { %10645 = vmatprep.mubr.msk.f32.mxu0 %vm11562_vm1, %v11563_v20  ;;  %10644 = vmatpush3.msra.mxu0 %v9619_v28 }
0x29a8   : > { %11074 = vmatprep.subr.bf16.mxu0 %v11561_v12 }
0x2a79   : > { %v7376_v6 = vpop.f32.mrb[64].mxu0 }
0x2a7a   : > { %v10635_v7 = vpop.f32.mrb[65].mxu0  ;;  %v7380_v37 = vsel %vm3808_vm4, %v7376_v6, -inf }
0x2a7b   : > { %7381 = vmax.xlane.f32.xlu0 %v7380_v37  ;;  %v11088_v7 = vpack.c.bf16 %v9638_v5, %v9637_v4  ;;  %v9640_v37 = vld [vmem:[%s12979_s3 + $0x158] sm:$0xff]  ;;  %v9668_v5 = vld [vmem:[%s12979_s3 + $0x168] sm:$0xff] }
0x2b08   : > { %v7382_v9 = vpop.xlane.xlu0 %7381 }
0x2b09   : > { %v7383_v10 = vsub.f32 %v7376_v6, %v7382_v9  ;;  %v9639_v6 = vld [vmem:[%s12979_s3 + $0x150] sm:$0xff] }
0x2b0a   : > { %v11092_v9 = vpack.c.bf16 %v9640_v37, %v9639_v6  ;;  %v9669_v6 = vld [vmem:[%s12979_s3 + $0x170] sm:$0xff]  ;;  %v9670_v37 = vld [vmem:[%s12979_s3 + $0x178] sm:$0xff] }
0x2b0b   : > { %v7384_v11 = vmul.f32 1.442695, %v7383_v10 }
0x2b0d   : > { %11302 = vpow2.f32 %v7384_v11 }
0x2b17   : > { %v11303_v13 = vpop.eup %11302 }
0x2b18   : > { %v7386_v14 = vsel %vm3808_vm4, %v11303_v13, 0.0 }
0x2b19   : > { %7387 = vadd.xlane.f32.xlu1 %v7386_v14 }
0x2ba6   : > { %v7388_v29 = vpop.xlane.xlu1 %7387 }
0x2ba7   : > { %11304 = vrcp.f32 %v7388_v29 }
0x2bb1   : > { %v11305_v33 = vpop.eup %11304 }
0x2bb2   : > { %v12565_v52 = vmul.f32 %v11305_v33, %v11303_v13  ;;  %v9650_v33 = vld [vmem:[%s12985_s17 + $0x10] sm:$0xff] }
0x2bb4   : > { %10641 = vmatmul.mubr.msk.f32.vlgmr.msra.gmra.mrb[72].mxu1 %vm3808_vm4, %v12565_v52  ;;  %v7615_v38 = vadd.f32 %v12565_v52, %v12525_v49  ;;  %v9659_v49 = vld [vmem:[%s12979_s3 + $0xe0] sm:$0xff]  ;;  %v9660_v52 = vld [vmem:[%s12979_s3 + $0xe8] sm:$0xff] }
0x2bb5   : > { %10649 = vmatpush3.msra.mxu1 %v7040_v32  ;;  %10650 = vmatprep.mubr.msk.f32.mxu1 %vm11562_vm1, %v11563_v20 }
0x2bb6   : > { %11081 = vmatprep.subr.bf16.mxu1 %v11080_v2 }
0x2bb8   : > { %10651 = vmatmul.mubr.msk.f32.vlgmr.msra.gmra.mrb[74].mxu1 %vm1816_vm2, %v12536_v51 }
0x2bb9   : > { %11083 = vmatpush3.bf16.msra.mxu1 %v11080_v2  ;;  %10672 = vmatprep.mubr.msk.f32.mxu1 %vm1534_vm0, %v12449_v15  ;;  %v9652_v2 = vld [vmem:[%s12979_s3 + $0x60] sm:$0xff] }
0x2bba   : > { %11085 = vmatprep.subr.bf16.mxu1 %v11084_v36 }
0x2bbd   : > { %11087 = vmatpush3.bf16.msra.mxu1 %v11084_v36  ;;  %v11105_v36 = vpack.c.bf16 %v9653_v34, %v9652_v2 }
0x2bbe   : > { %11096 = vmatprep.subr.bf16.mxu1 %v11561_v12 }
0x2bc0   : > { %10673 = vmatmul.mubr.msk.f32.vlgmr.msra.gmra.mrb[76].mxu1 %vm1534_vm0, %v12469_v41 }
0x2bc1   : > { %10690 = vmatprep.mubr.msk.f32.mxu1 %vm11562_vm1, %v11563_v20 }
0x2c87   : > { %v7463_v26 = vpop.f32.mrb[72].mxu1 }
0x2c88   : > { %v10642_v45 = vpop.f32.mrb[73].mxu1  ;;  %10646 = vmatmul.mubr.msk.f32.vlgmr.msra.gmra.mrb[66].mxu0 %vm1816_vm2, %v7463_v26 }
0x2c89   : > { %11076 = vmatpush3.bf16.msra.mxu0 %v11075_v42  ;;  %10661 = vmatprep.mubr.msk.f32.mxu0 %vm11562_vm1, %v11563_v20  ;;  %v9654_v42 = vld [vmem:[%s12979_s3 + $0x70] sm:$0xff]  ;;  %v11110_v45 = vpack.c.bf16 %v9660_v52, %v9659_v49 }
0x2c8a   : > { %11077 = vmatprep.subr.bf16.mxu0 %v11561_v12  ;;  %v11108_v26 = vpack.c.bf16 %v9655_v56, %v9654_v42 }
0x2c8b   : > { %v7611_v50 = vpop.f32.mrb[74].mxu1 }
0x2c8c   : > { %v10652_v51 = vpop.f32.mrb[75].mxu1 }
0x2c8d   : > { %11079 = vmatpush3.bf16.msra.mxu0 %v11078_v47  ;;  %v9661_v47 = vld [vmem:[%s12979_s3 + $0xf0] sm:$0xff] }
0x2c8e   : > { %11089 = vmatprep.subr.bf16.mxu0 %v11088_v7 }
0x2c90   : > { %10662 = vmatmul.mubr.msk.f32.vlgmr.msra.gmra.mrb[68].mxu0 %vm1534_vm0, %v12480_v18 }
0x2c91   : > { %10683 = vmatprep.mubr.msk.f32.mxu0 %vm1534_vm0, %v12449_v15  ;;  %11091 = vmatpush3.bf16.msra.mxu0 %v11088_v7 }
0x2c92   : > { %11093 = vmatprep.subr.bf16.mxu0 %v11092_v9 }
0x2c93   : > { %v10674_v53 = vpop.f32.mrb[76].mxu1 }
0x2c94   : > { %v7785_v0 = vadd.f32 %v10674_v53, %v9634_v55  ;;  %v7779_v48 = vpop.f32.mrb[77].mxu1 }
0x2c95   : > { %v7780_v58 = vadd.f32 %v9634_v55, %v7779_v48  ;;  %11095 = vmatpush3.bf16.msra.mxu0 %v11092_v9  ;;  %v11122_v9 = vpack.c.bf16 %v9670_v37, %v9669_v6 }
0x2c96   : > { %11100 = vmatprep.subr.bf16.mxu0 %v11561_v12 }
0x2c97   : > { %v11097_v59 = vpack.c.bf16 %v7785_v0, %v7780_v58 }
0x2c98   : > { %10684 = vmatmul.mubr.msk.f32.vlgmr.msra.gmra.mrb[70].mxu0 %vm1534_vm0, %v12469_v41 }
0x2c99   : > { %11099 = vmatpush3.bf16.xpose.msk.msra.mxu1 %vm12135_vm3, %v11097_v59  ;;  %10697 = vmatprep.mubr.msk.f32.mxu0 %vm11562_vm1, %v11563_v20  ;;  %v9664_v59 = vld [vmem:[%s12982_s7 + $0x7] ss:$0 sm:$0xff] }
0x2c9a   : > { %10700 = vmatprep.subr.mxu1 %v11563_v20 }
0x2d5b   : > { %v7538_v43 = vpop.f32.mrb[66].mxu0 }
0x2d5c   : > { %v12599_v54 = vadd.f32 %v7611_v50, %v7538_v43  ;;  %v10647_v60 = vpop.f32.mrb[67].mxu0  ;;  %v9662_v50 = vld [vmem:[%s12979_s3 + $0xf8] sm:$0xff] }
0x2d5d   : > { %v11114_v51 = vpack.c.bf16 %v9662_v50, %v9661_v47 }
0x2d63   : > { %v7695_v62 = vpop.f32.mrb[68].mxu0 }
0x2d64   : > { %v7696_v63 = vadd.f32 %v9627_v61, %v7695_v62  ;;  %v10663_v1 = vpop.f32.mrb[69].mxu0 }
0x2d66   : > { %v7699_v3 = vmul.f32 0.35355338, %v7696_v63  ;;  %v9657_v63 = vld [vmem:[%s12982_s7 + $0x3] ss:$0 sm:$0xff] }
0x2d68   : > { %10691 = vmatmul.mubr.msk.f32.vlgmr.msra.gmra.mrb[78].mxu1 %vm1816_vm2, %v7699_v3 }
0x2d69   : > { %10702 = vmatprep.mubr.msk.f32.mxu1 %vm11562_vm1, %v11563_v20  ;;  %10701 = vmatpush3.msra.mxu1 %v9650_v33 }
0x2d6a   : > { %11111 = vmatprep.subr.bf16.mxu1 %v11110_v45 }
0x2d6b   : > { %v10685_v22 = vpop.f32.mrb[70].mxu0 }
0x2d6c   : > { %v7867_v28 = vpop.f32.mrb[71].mxu0  ;;  %v7873_v29 = vadd.f32 %v10685_v22, %v9642_v25  ;;  %v9672_v22 = vld [vmem:[%s12982_s7 + $0xb] ss:$0 sm:$0xff]  ;;  %s12992_s7 = sld [smem:[#allocation39_spill]] }
0x2d6d   : > { %v7868_v30 = vadd.f32 %v9642_v25, %v7867_v28 }
0x2d6f   : > { %v11101_v31 = vpack.c.bf16 %v7873_v29, %v7868_v30  ;;  %v9680_v30 = vld [vmem:[%s12985_s17 + $0x18] sm:$0xff]  ;;  %s11565_s17 = smov [#allocation4]  }
0x2d71   : > { %11103 = vmatpush3.bf16.msk.msra.mxu0 %vm12515_vm7, %v11101_v31 }
0x2d72   : > { %11104 = vmatprep.subr.bf16.mxu0 %v11561_v12 }
0x2e3b   : > { %v7951_v10 = vpop.f32.mrb[78].mxu1 }
0x2e3c   : > { %v10692_v11 = vpop.f32.mrb[79].mxu1  ;;  %v7955_v13 = vsel %vm3808_vm4, %v7951_v10, -inf }
0x2e3d   : > { %7956 = vmax.xlane.f32.xlu0 %v7955_v13 }
0x2eca   : > { %v7957_v14 = vpop.xlane.xlu0 %7956 }
0x2ecb   : > { %v7958_v19 = vsub.f32 %v7951_v10, %v7957_v14 }
0x2ecd   : > { %v7959_v21 = vmul.f32 1.442695, %v7958_v19 }
0x2ecf   : > { %11306 = vpow2.f32 %v7959_v21 }
0x2ed9   : > { %v11307_v16 = vpop.eup %11306 }
0x2eda   : > { %v7961_v17 = vsel %vm3808_vm4, %v11307_v16, 0.0 }
0x2edb   : > { %7962 = vadd.xlane.f32.xlu1 %v7961_v17 }
0x2f68   : > { %v7963_v32 = vpop.xlane.xlu1 %7962 }
0x2f69   : > { %11308 = vrcp.f32 %v7963_v32 }
0x2f73   : > { %v11309_v35 = vpop.eup %11308 }
0x2f74   : > { %v7965_v40 = vmul.f32 %v11309_v35, %v11307_v16 }
0x2f76   : > { %10698 = vmatmul.mubr.msk.f32.vlgmr.msra.gmra.mrb[72].mxu0 %vm3808_vm4, %v7965_v40  ;;  %v12628_v44 = vadd.f32 %v7965_v40, %v7615_v38  ;;  %v9682_v38 = vld [vmem:[%s12986_s10] ss:$0 sm:$0xff]  ;;  %s12989_s10 = sld [smem:[#allocation34_spill]] }
0x2f77   : > { %11106 = vmatpush3.bf16.msra.mxu0 %v11105_v36  ;;  %10713 = vmatprep.mubr.msk.f32.mxu0 %vm11562_vm1, %v11563_v20 }
0x2f78   : > { %11107 = vmatprep.subr.bf16.mxu0 %v11561_v12 }
0x2f7b   : > { %11109 = vmatpush3.bf16.msra.mxu0 %v11108_v26 }
0x2f7e   : > { %10714 = vmatmul.mubr.msk.f32.vlgmr.msra.gmra.mrb[74].mxu0 %vm1534_vm0, %v12480_v18 }
0x2f7f   : > { %10735 = vmatprep.mubr.msk.f32.mxu0 %vm1534_vm0, %v12449_v15 }
0x3049   : > { %v8038_v53 = vpop.f32.mrb[72].mxu0 }
0x304a   : > { %v10699_v55 = vpop.f32.mrb[73].mxu0  ;;  %10703 = vmatmul.mubr.msk.f32.vlgmr.msra.gmra.mrb[80].mxu1 %vm1816_vm2, %v8038_v53  ;;  %v8662_v53 = vld [vmem:[%s12987_s1 + $0x8] sm:$0xff] }
0x304b   : > { %11113 = vmatpush3.bf16.msra.mxu1 %v11110_v45  ;;  %10724 = vmatprep.mubr.msk.f32.mxu1 %vm1534_vm0, %v12449_v15 }
0x304c   : > { %11115 = vmatprep.subr.bf16.mxu1 %v11114_v51 }
0x304f   : > { %11117 = vmatpush3.bf16.msra.mxu1 %v11114_v51  ;;  %v8661_v51 = vld [vmem:[%s12987_s1] sm:$0xff] }
0x3050   : > { %11126 = vmatprep.subr.bf16.mxu1 %v11561_v12  ;;  %v11135_v55 = vpack.c.bf16 %v8662_v53, %v8661_v51 }
0x3051   : > { %v8198_v18 = vpop.f32.mrb[74].mxu0 }
0x3052   : > { %v10715_v0 = vpop.f32.mrb[75].mxu0  ;;  %10725 = vmatmul.mubr.msk.f32.vlgmr.msra.gmra.mrb[82].mxu1 %vm1534_vm0, %v12469_v41  ;;  %v8199_v3 = vadd.f32 %v9657_v63, %v8198_v18  ;;  %v8664_v18 = vld [vmem:[%s12987_s1 + $0x18] sm:$0xff] }
0x3053   : > { %10742 = vmatprep.mubr.msk.f32.mxu1 %vm11562_vm1, %v11563_v20 }
0x3054   : > { %v8202_v4 = vmul.f32 0.35355338, %v8199_v3 }
0x311d   : > { %v8113_v48 = vpop.f32.mrb[80].mxu1 }
0x311e   : > { %v12650_v58 = vadd.f32 %v8113_v48, %v12599_v54  ;;  %v10704_v15 = vpop.f32.mrb[81].mxu1  ;;  %v9667_v54 = vld [vmem:[%s12979_s3 + $0x160] sm:$0xff]  ;;  %s12990_s3 = sld [smem:[#allocation35_spill]] }
0x311f   : > { %v11118_v7 = vpack.c.bf16 %v9668_v5, %v9667_v54  ;;  %v9683_v5 = vld [vmem:[%s12989_s10] ss:$0 sm:$0xff]  ;;  %s8957_s10 = sand.u32 1, %s11796_s0  }
0x3120   : > { %s12773_s13 = scalar_lea.sflag [#allocation5], %s8957_s10 }
0x3121   : > { %11119 = vmatprep.subr.bf16.mxu0 %v11118_v7 }
0x3122   : > { %11121 = vmatpush3.bf16.msra.mxu0 %v11118_v7 }
0x3123   : > { %11123 = vmatprep.subr.bf16.mxu0 %v11122_v9 }
0x3124   : > { %v9684_v7 = vld [vmem:[%s12990_s3] ss:$0 sm:$0xff]  ;;  %s12993_s3 = sld [smem:[#allocation42_spill]] }
0x3125   : > { %v10726_v43 = vpop.f32.mrb[82].mxu1 }
0x3126   : > { %v8288_v60 = vadd.f32 %v10726_v43, %v9664_v59  ;;  %v8282_v61 = vpop.f32.mrb[83].mxu1  ;;  %11125 = vmatpush3.bf16.msra.mxu0 %v11122_v9 }
0x3127   : > { %v8283_v62 = vadd.f32 %v9664_v59, %v8282_v61  ;;  %11130 = vmatprep.subr.bf16.mxu0 %v11561_v12 }
0x3129   : > { %v11127_v1 = vpack.c.bf16 %v8288_v60, %v8283_v62  ;;  %10736 = vmatmul.mubr.msk.f32.vlgmr.msra.gmra.mrb[76].mxu0 %vm1534_vm0, %v12469_v41 }
0x312a   : > { %10749 = vmatprep.mubr.msk.f32.mxu0 %vm11562_vm1, %v11563_v20  ;;  %v8870_v51 = vld [vmem:[%s12993_s3 + $0x18] sm:$0xff] }
0x312b   : > { %11129 = vmatpush3.bf16.xpose.msk.msra.mxu1 %vm12135_vm3, %v11127_v1 }
0x312c   : > { %10752 = vmatprep.subr.mxu1 %v11563_v20 }
0x3132   : > { %10743 = vmatmul.mubr.msk.f32.vlgmr.msra.gmra.mrb[84].mxu1 %vm1816_vm2, %v8202_v4 }
0x3133   : > { %10754 = vmatprep.mubr.msk.f32.mxu1 %vm11562_vm1, %v11563_v20  ;;  %10753 = vmatpush3.msra.mxu1 %v9680_v30  ;;  %v4334_v30 = vsel %vm3808_vm4, %v12257_v57, -inf }
0x3134   : > { %11140 = vmatprep.subr.bf16.mxu1 %v11561_v12 }
0x31fc   : > { %v10737_v17 = vpop.f32.mrb[76].mxu0 }
0x31fd   : > { %v8370_v41 = vpop.f32.mrb[77].mxu0  ;;  %v8376_v25 = vadd.f32 %v10737_v17, %v9672_v22  ;;  %v9687_v17 = vld [vmem:[%s12992_s7] ss:$0 sm:$0xff]  ;;  %s12994_s7 = sld [smem:[#allocation40_spill]] }
0x31fe   : > { %v8371_v28 = vadd.f32 %v9672_v22, %v8370_v41 }
0x3200   : > { %v11131_v29 = vpack.c.bf16 %v8376_v25, %v8371_v28 }
0x3202   : > { %11133 = vmatpush3.bf16.msk.msra.mxu0 %vm12515_vm7, %v11131_v29 }
0x3203   : > { %11134 = vmatprep.subr.bf16.mxu0 %v11561_v12 }
0x3205   : > { %v8454_v23 = vpop.f32.mrb[84].mxu1 }
0x3206   : > { %v10744_v10 = vpop.f32.mrb[85].mxu1  ;;  %v8458_v11 = vsel %vm3808_vm4, %v8454_v23, -inf }
0x3207   : > { %8459 = vmax.xlane.f32.xlu0 %v8458_v11 }
0x3294   : > { %v8460_v13 = vpop.xlane.xlu0 %8459 }
0x3295   : > { %v8461_v14 = vsub.f32 %v8454_v23, %v8460_v13 }
0x3297   : > { %v8462_v19 = vmul.f32 1.442695, %v8461_v14 }
0x3299   : > { %11310 = vpow2.f32 %v8462_v19 }
0x32a3   : > { %v11311_v21 = vpop.eup %11310 }
0x32a4   : > { %v8464_v16 = vsel %vm3808_vm4, %v11311_v21, 0.0 }
0x32a5   : > { %8465 = vadd.xlane.f32.xlu1 %v8464_v16 }
0x3332   : > { %v8466_v31 = vpop.xlane.xlu1 %8465 }
0x3333   : > { %11312 = vrcp.f32 %v8466_v31 }
0x333d   : > { %v11313_v33 = vpop.eup %11312 }
0x333e   : > { %v8468_v32 = vmul.f32 %v11313_v33, %v11311_v21 }
0x3340   : > { %10750 = vmatmul.mubr.msk.f32.vlgmr.msra.gmra.mrb[78].mxu0 %vm3808_vm4, %v8468_v32  ;;  %v8621_v2 = vadd.f32 %v8468_v32, %v12628_v44 }
0x3341   : > { %10765 = vmatprep.mubr.msk.f32.mxu0 %vm11562_vm1, %v11563_v20  ;;  %11136 = vmatpush3.bf16.msra.mxu0 %v11135_v55 }
0x3342   : > { %v8630_v39 = vmul.f32 0.25, %v8621_v2  ;;  %11137 = vmatprep.subr.bf16.mxu0 %v11561_v12 }
0x3344   : > { %8866 = vst.msk [vmem:[%s12919_s18] sm:$0xff] %vm3808_vm4, %v8630_v39  ;;  %s12988_s18 = sld [smem:[#allocation38_spill]] }
0x334a   : > { %v8746_v48 = vld [vmem:[%s12988_s18] sm:$0xff]  ;;  %v8748_v15 = vld [vmem:[%s12988_s18 + $0x10] sm:$0xff]  ;;  %v8749_v43 = vld [vmem:[%s12988_s18 + $0x18] sm:$0xff] }
0x334b   : > { %v11144_v60 = vpack.c.bf16 %v8749_v43, %v8748_v15  ;;  %v8750_v61 = vld [vmem:[%s12988_s18 + $0x20] sm:$0xff]  ;;  %v8751_v62 = vld [vmem:[%s12988_s18 + $0x28] sm:$0xff]  ;;  %v8752_v23 = vld [vmem:[%s12988_s18 + $0x30] sm:$0xff] }
0x334c   : > { %v11147_v63 = vpack.c.bf16 %v8751_v62, %v8750_v61  ;;  %v8753_v10 = vld [vmem:[%s12988_s18 + $0x38] sm:$0xff] }
0x334d   : > { %v11150_v11 = vpack.c.bf16 %v8753_v10, %v8752_v23 }
0x3413   : > { %v8541_v34 = vpop.f32.mrb[78].mxu0 }
0x3414   : > { %v10751_v35 = vpop.f32.mrb[79].mxu0  ;;  %10755 = vmatmul.mubr.msk.f32.vlgmr.msra.gmra.mrb[86].mxu1 %vm1816_vm2, %v8541_v34 }
0x3415   : > { %10784 = vmatprep.mubr.msk.f32.mxu1 %vm11562_vm1, %v11563_v20 }
0x34e7   : > { %v8616_v36 = vpop.f32.mrb[86].mxu1 }
0x34e8   : > { %v8620_v40 = vadd.f32 %v8616_v36, %v12650_v58  ;;  %v10756_v42 = vpop.f32.mrb[87].mxu1  ;;  %v8747_v58 = vld [vmem:[%s12988_s18 + $0x8] sm:$0xff]  ;;  %s11342_s18 = sshll.u32 %s11565_s17, 4  ;;  %s11343_s18 = int_to_ptr.vmem [resolvable:$false] %s11342_s18 }
0x34e9   : > { %v11141_v59 = vpack.c.bf16 %v8747_v58, %v8746_v48  ;;  %s11344_s19 = scalar_lea.vmem %s11343_s18, 256 }
0x34ea   : > { %v8629_v56 = vadd.f32 %v9682_v38, %v8620_v40 }
0x34eb   : > { %11142 = vmatpush3.bf16.msra.mxu1 %v11141_v59 }
0x34ec   : > { %v8631_v44 = vadd.f32 %v8629_v56, %v12455_v27  ;;  %v8663_v27 = vld [vmem:[%s12987_s1 + $0x10] sm:$0xff]  ;;  %11143 = vmatprep.subr.bf16.mxu1 %v11561_v12  ;;  %s12991_s1 = sld [smem:[#allocation37_spill]]  ;;  %v4071_v56 = vsel %vm3808_vm4, %v12192_v8, -inf }
0x34ed   : > { %v11138_v0 = vpack.c.bf16 %v8664_v18, %v8663_v27 }
0x34ee   : > { %v8632_v26 = vsel %vm1534_vm0, %v8631_v44, 0.0 }
0x34ef   : > { %8633 = vadd.xlane.f32.xlu0 %v8632_v26  ;;  %11139 = vmatpush3.bf16.msra.mxu0 %v11138_v0 }
0x34f0   : > { %11152 = vmatprep.subr.bf16.mxu0 %v11561_v12  ;;  %11145 = vmatpush3.bf16.msra.mxu1 %v11144_v60  ;;  %v9689_v60 = vld [vmem:[%s12994_s7] ss:$0 sm:$0xff]  ;;  %s12757_s7 = sshll.u32 %s11796_s0, 7 }
0x34f1   : > { %11146 = vmatprep.subr.bf16.mxu1 %v11561_v12  ;;  %s12769_s9 = scalar_lea.hbm %s11768_s12, %s12757_s7 }
0x34f2   : > { %v9685_v13 = vld [vmem:[%s12991_s1] ss:$0 sm:$0xff]  ;;  %s12995_s1 = sld [smem:[#allocation41_spill]] }
0x34f4   : > { %11148 = vmatpush3.bf16.msra.mxu1 %v11147_v63 }
0x34f5   : > { %11149 = vmatprep.subr.bf16.mxu1 %v11561_v12 }
0x34f8   : > { %11151 = vmatpush3.bf16.msra.mxu1 %v11150_v11  ;;  %v9690_v62 = vld [vmem:[%s12995_s1] ss:$0 sm:$0xff]  ;;  %s12761_s1 = scalar_lea.hbm %s11758_s27, %s12757_s7 }
0x357c   : > { %v8634_v49 = vpop.xlane.xlu0 %8633 }
0x357d   : > { %v8635_v52 = vmul.f32 0.03125, %v8634_v49 }
0x357f   : > { %v8636_v45 = vsub.f32 %v8631_v44, %v8635_v52  ;;  %v8867_v52 = vld [vmem:[%s12993_s3] sm:$0xff] }
0x3581   : > { %v8637_v47 = vmul.f32 %v8636_v45, %v8636_v45 }
0x3583   : > { %v8638_v50 = vsel %vm1534_vm0, %v8637_v47, 0.0 }
0x3584   : > { %8639 = vadd.xlane.f32.xlu1 %v8638_v50  ;;  %v8869_v50 = vld [vmem:[%s12993_s3 + $0x10] sm:$0xff] }
0x3585   : > { %v11156_v53 = vpack.c.bf16 %v8870_v51, %v8869_v50 }
0x3611   : > { %v8640_v1 = vpop.xlane.xlu1 %8639 }
0x3612   : > { %v8641_v3 = vmul.f32 0.03125, %v8640_v1 }
0x3614   : > { %v8642_v4 = vadd.f32 1e-05, %v8641_v3 }
0x3616   : > { %11314 = vrsqrt.f32 %v8642_v4 }
0x3620   : > { %v11315_v54 = vpop.eup %11314 }
0x3621   : > { %v8644_v6 = vmul.f32 %v11315_v54, %v8636_v45  ;;  %v8868_v45 = vld [vmem:[%s12993_s3 + $0x8] sm:$0xff]  ;;  %s12996_s3 = scalar_lea.vmem [#allocation4], %s12072_s5 }
0x3622   : > { %v11153_v47 = vpack.c.bf16 %v8868_v45, %v8867_v52  ;;  %s8999_s8 = sshll.u32 %s12996_s3, 4  ;;  %s12765_s8 = int_to_ptr.vmem [resolvable:$true] %s8999_s8 }
0x3623   : > { %v8652_v37 = vmul.f32 %v9683_v5, %v8644_v6  ;;  %s11338_s14 = scalar_lea.vmem %s12765_s8, 128  ;;  %p11345_p0 = scmp.lt.s32.totalorder %s12765_s8, %s11343_s18 }
0x3624   : > { %p11339_p11 = scmp.ne.s32.totalorder %s12765_s8, %s11338_s14  ;;  %p11346_p1 = scmp.lt.s32.totalorder %s11344_s19, %s11338_s14 }
0x3625   : > { %v8660_v9 = vadd.f32 %v9684_v7, %v8652_v37 }
0x3626   : > { %p11340_p12 = pnand %p11339_p11, %p11815_p5  ;;  %p11347_p2 = por %p11346_p1, %p11345_p0 }
0x3627   : > { %10766 = vmatmul.mubr.msk.f32.vlgmr.msra.gmra.mrb[80].mxu0 %vm1534_vm0, %v8660_v9 }
0x3628   : > { %10795 = vmatprep.mubr.msk.f32.mxu0 %vm11562_vm1, %v11563_v20  ;;  %v3809_v20 = vsel %vm3808_vm4, %v12164_v46, -inf  ;;  %11154 = vmatpush3.bf16.msra.mxu0 %v11153_v47  ;;  %p11341_p13 = pneg %p11340_p12 }
0x3629   : > { %11155 = vmatprep.subr.bf16.mxu0 %v11561_v12 }
0x362a   : > { %p11348_p3 = pnand %p11347_p2, %p11341_p13 }
0x362c   : > { %11157 = vmatpush3.bf16.msra.mxu0 %v11156_v53 }
0x36fa   : > { %v8741_v14 = vpop.f32.mrb[80].mxu0 }
0x36fb   : > { %v8742_v19 = vadd.f32 %v9685_v13, %v8741_v14  ;;  %v10767_v21 = vpop.f32.mrb[81].mxu0 }
0x36fd   : > { %v8745_v16 = vmax.f32 %v8742_v19, 0.0 }
0x36ff   : > { %10785 = vmatmul.mubr.msk.f32.vlgmr.msra.gmra.mrb[88].mxu1 %vm8761_vm8, %v8745_v16 }
0x37d2   : > { %v8831_v22 = vpop.f32.mrb[88].mxu1 }
0x37d3   : > { %v8832_v41 = vadd.f32 %v9687_v17, %v8831_v22  ;;  %v10786_v25 = vpop.f32.mrb[89].mxu1 }
0x37d5   : > { %v8835_v28 = vadd.f32 %v8832_v41, %v8631_v44 }
0x37d7   : > { %v8836_v29 = vsel %vm1534_vm0, %v8835_v28, 0.0 }
0x37d8   : > { %8837 = vadd.xlane.f32.xlu0 %v8836_v29 }
0x37dc   : > { %3810 = vmax.xlane.f32.xlu0 %v3809_v20 }
0x37e0   : > { %4335 = vmax.xlane.f32.xlu0 %v4334_v30 }
0x3865   : > { %v8838_v31 = vpop.xlane.xlu0 %8837 }
0x3866   : > { %v8839_v33 = vmul.f32 0.03125, %v8838_v31 }
0x3868   : > { %v8840_v32 = vsub.f32 %v8835_v28, %v8839_v33 }
0x3869   : > { %v3811_v2 = vpop.xlane.xlu0 %3810 }
0x386a   : > { %v3812_v39 = vsub.f32 %v12164_v46, %v3811_v2  ;;  %v8841_v34 = vmul.f32 %v8840_v32, %v8840_v32  ;;  %v4597_v46 = vsel %vm3808_vm4, %v12278_v24, -inf }
0x386c   : > { %v3813_v35 = vmul.f32 1.442695, %v3812_v39  ;;  %v8842_v36 = vsel %vm1534_vm0, %v8841_v34, 0.0 }
0x386d   : > { %8843 = vadd.xlane.f32.xlu1 %v8842_v36  ;;  %v4336_v38 = vpop.xlane.xlu0 %4335 }
0x386e   : > { %11316 = vpow2.f32 %v3813_v35  ;;  %v4337_v40 = vsub.f32 %v12257_v57, %v4336_v38 }
0x3870   : > { %v4338_v42 = vmul.f32 1.442695, %v4337_v40 }
0x3871   : > { %4072 = vmax.xlane.f32.xlu1 %v4071_v56 }
0x3872   : > { %11318 = vpow2.f32 %v4338_v42 }
0x3875   : > { %4598 = vmax.xlane.f32.xlu1 %v4597_v46 }
0x3878   : > { %v12729_v44 = vpop.eup %11316 }
0x3879   : > { %v3815_v26 = vsel %vm3808_vm4, %v12729_v44, 0.0 }
0x387a   : > { %3816 = vadd.xlane.f32.xlu0 %v3815_v26 }
0x387c   : > { %v12733_v49 = vpop.eup %11318 }
0x387d   : > { %v4340_v57 = vsel %vm3808_vm4, %v12733_v49, 0.0 }
0x387e   : > { %4341 = vadd.xlane.f32.xlu0 %v4340_v57 }
0x38fa   : > { %v8844_v55 = vpop.xlane.xlu1 %8843 }
0x38fb   : > { %v8845_v27 = vmul.f32 0.03125, %v8844_v55 }
0x38fd   : > { %v8846_v18 = vadd.f32 1e-05, %v8845_v27 }
0x38fe   : > { %v4073_v0 = vpop.xlane.xlu1 %4072 }
0x38ff   : > { %11320 = vrsqrt.f32 %v8846_v18  ;;  %v4074_v48 = vsub.f32 %v12192_v8, %v4073_v0 }
0x3901   : > { %v4075_v58 = vmul.f32 1.442695, %v4074_v48 }
0x3902   : > { %v4599_v15 = vpop.xlane.xlu1 %4598 }
0x3903   : > { %11322 = vpow2.f32 %v4075_v58  ;;  %v4600_v59 = vsub.f32 %v12278_v24, %v4599_v15 }
0x3905   : > { %v4601_v12 = vmul.f32 1.442695, %v4600_v59 }
0x3907   : > { %11324 = vpow2.f32 %v4601_v12 }
0x3909   : > { %v11321_v43 = vpop.eup %11320 }
0x390a   : > { %v8848_v61 = vmul.f32 %v11321_v43, %v8840_v32 }
0x390c   : > { %v8856_v63 = vmul.f32 %v9689_v60, %v8848_v61 }
0x390d   : > { %v12746_v1 = vpop.eup %11322 }
0x390e   : > { %v4077_v8 = vsel %vm3808_vm4, %v12746_v1, 0.0  ;;  %v8864_v24 = vadd.f32 %v9690_v62, %v8856_v63 }
0x390f   : > { %4078 = vadd.xlane.f32.xlu1 %v4077_v8 }
0x3910   : > { %10796 = vmatmul.mubr.msk.f32.vlgmr.msra.gmra.mrb[82].mxu0 %vm1534_vm0, %v8864_v24 }
0x3911   : > { %v12751_v3 = vpop.eup %11324 }
0x3912   : > { %v4603_v4 = vsel %vm3808_vm4, %v12751_v3, 0.0 }
0x3913   : > { %4604 = vadd.xlane.f32.xlu1 %v4603_v4 }
0x3914   : > { %11351 = shalt.err (!%p11348_p3)
}
0x3915   : > { %s11352_s3 = scalar_lea.hbm %s12761_s1, 128  ;;  %s11356_s17 = scalar_lea.hbm %s11758_s27, 256 }
0x3916   : > { %p11353_p4 = scmp.ne.s32.totalorder %s12761_s1, %s11352_s3  ;;  %p11357_p9 = scmp.lt.u32.totalorder %s12761_s1, %s11758_s27 }
0x3917   : > { %p11358_p10 = scmp.lt.u32.totalorder %s11356_s17, %s11352_s3  ;;  %p11360_p12 = scmp.lt.u32.totalorder %s11352_s3, %s12761_s1 }
0x3918   : > { %p11354_p7 = pnand %p11353_p4, %p11815_p5 }
0x3919   : > { %p11359_p11 = por %p11358_p10, %p11357_p9 }
0x391a   : > { %p11355_p8 = pneg %p11354_p7 }
0x391b   : > { %p11361_p0 = por %p11360_p12, %p11359_p11 }
0x391d   : > { %p11362_p13 = pnand %p11361_p0, %p11355_p8 }
0x391f   : > { %11365 = shalt.err (!%p11362_p13)
}
0x3920   : > { %11159 = dma.vmem_to_hbm [thread:$0]  (%p11815_p5), %s12765_s8, 128, %s12761_s1, %s12773_s13  }
0x3921   : > { %s12997_s14 = scalar_lea.vmem [#allocation7], %s12072_s5  ;;  %s12797_s18 = scalar_lea.sflag [#allocation8], %s8957_s10 }
0x3922   : > { %s9025_s19 = sshll.u32 %s12997_s14, 4  ;;  %s11566_s3 = smov [#allocation7]   ;;  %s9026_s19 = int_to_ptr.vmem [resolvable:$true] %s9025_s19 }
0x3923   : > { %s11366_s17 = scalar_lea.vmem %s9026_s19, 128  ;;  %s11370_s20 = sshll.u32 %s11566_s3, 4  ;;  %s11371_s20 = int_to_ptr.vmem [resolvable:$false] %s11370_s20 }
0x3924   : > { %p11367_p1 = scmp.ne.s32.totalorder %s9026_s19, %s11366_s17  ;;  %s11372_s21 = scalar_lea.vmem %s11371_s20, 256 }
0x3925   : > { %p11373_p4 = scmp.lt.s32.totalorder %s9026_s19, %s11371_s20  ;;  %p11374_p7 = scmp.lt.s32.totalorder %s11372_s21, %s11366_s17 }
0x3926   : > { %p11368_p2 = pnand %p11367_p1, %p11815_p5 }
0x3927   : > { %p11375_p8 = por %p11374_p7, %p11373_p4 }
0x3928   : > { %p11369_p3 = pneg %p11368_p2 }
0x392a   : > { %p11376_p9 = pnand %p11375_p8, %p11369_p3 }
0x392c   : > { %11379 = shalt.err (!%p11376_p9)
}
0x392d   : > { %s11380_s8 = scalar_lea.hbm %s12769_s9, 128  ;;  %s11384_s0 = scalar_lea.hbm %s11768_s12, 256 }
0x392e   : > { %p11381_p10 = scmp.ne.s32.totalorder %s12769_s9, %s11380_s8  ;;  %p11385_p0 = scmp.lt.u32.totalorder %s12769_s9, %s11768_s12 }
0x392f   : > { %p11386_p13 = scmp.lt.u32.totalorder %s11384_s0, %s11380_s8  ;;  %p11388_p2 = scmp.lt.u32.totalorder %s11380_s8, %s12769_s9 }
0x3930   : > { %p11382_p11 = pnand %p11381_p10, %p11815_p5 }
0x3931   : > { %p11387_p1 = por %p11386_p13, %p11385_p0 }
0x3932   : > { %p11383_p12 = pneg %p11382_p11 }
0x3933   : > { %p11389_p4 = por %p11388_p2, %p11387_p1 }
0x3935   : > { %p11390_p3 = pnand %p11389_p4, %p11383_p12 }
0x3937   : > { %11393 = shalt.err (!%p11390_p3)
}
0x3938   : > { %11161 = dma.vmem_to_hbm [thread:$0]  (%p11815_p5), %s9026_s19, 128, %s12769_s9, %s12797_s18  }
0x3939   : > { %s12815_s21 = scalar_lea.hbm %s11773_s6, %s12757_s7  ;;  %s12998_s20 = scalar_lea.vmem [#allocation9], %s12072_s5 }
0x393a   : > { %s9038_s10 = sshll.u32 %s12998_s20, 4  ;;  %s11567_s14 = smov [#allocation9]   ;;  %s9039_s10 = int_to_ptr.vmem [resolvable:$true] %s9038_s10 }
0x393b   : > { %s11394_s1 = scalar_lea.vmem %s9039_s10, 128  ;;  %s11398_s17 = sshll.u32 %s11567_s14, 4  ;;  %s11399_s17 = int_to_ptr.vmem [resolvable:$false] %s11398_s17 }
0x393c   : > { %p11395_p7 = scmp.ne.s32.totalorder %s9039_s10, %s11394_s1  ;;  %s11400_s3 = scalar_lea.vmem %s11399_s17, 256 }
0x393d   : > { %p11401_p10 = scmp.lt.s32.totalorder %s9039_s10, %s11399_s17  ;;  %p11402_p11 = scmp.lt.s32.totalorder %s11400_s3, %s11394_s1 }
0x393e   : > { %p11396_p8 = pnand %p11395_p7, %p11815_p5 }
0x393f   : > { %p11403_p12 = por %p11402_p11, %p11401_p10 }
0x3940   : > { %p11397_p9 = pneg %p11396_p8 }
0x3942   : > { %p11404_p0 = pnand %p11403_p12, %p11397_p9 }
0x3944   : > { %11407 = shalt.err (!%p11404_p0)
}
0x3945   : > { %s11408_s9 = scalar_lea.hbm %s12815_s21, 128  ;;  %s11412_s19 = scalar_lea.hbm %s11773_s6, 256 }
0x3946   : > { %p11409_p13 = scmp.ne.s32.totalorder %s12815_s21, %s11408_s9  ;;  %p11413_p4 = scmp.lt.u32.totalorder %s12815_s21, %s11773_s6 }
0x3947   : > { %p11414_p3 = scmp.lt.u32.totalorder %s11412_s19, %s11408_s9  ;;  %p11416_p8 = scmp.lt.u32.totalorder %s11408_s9, %s12815_s21 }
0x3948   : > { %p11410_p1 = pnand %p11409_p13, %p11815_p5 }
0x3949   : > { %p11415_p7 = por %p11414_p3, %p11413_p4 }
0x394a   : > { %p11411_p2 = pneg %p11410_p1 }
0x394b   : > { %p11417_p10 = por %p11416_p8, %p11415_p7 }
0x394d   : > { %p11418_p9 = pnand %p11417_p10, %p11411_p2 }
0x394f   : > { %11421 = shalt.err (!%p11418_p9)
}
0x3950   : > { %11162 = dma.vmem_to_hbm [thread:$0]  (%p11815_p5), %s9039_s10, 128, %s12815_s21, %s12797_s18   ;;  %v3817_v54 = vpop.xlane.xlu0 %3816 }
0x3951   : > { %11326 = vrcp.f32 %v3817_v54  ;;  %s1502_s18 = scalar_lea.vmem [#allocation6], %s12072_s5  ;;  %s12840_s0 = scalar_lea.hbm %s11763_s4, %s12757_s7 }
0x3952   : > { %s9012_s8 = sshll.u32 %s1502_s18, 4  ;;  %s11568_s20 = smov [#allocation6]   ;;  %s9013_s8 = int_to_ptr.vmem [resolvable:$true] %s9012_s8 }
0x3953   : > { %s11422_s21 = scalar_lea.vmem %s9013_s8, 128  ;;  %s11426_s10 = sshll.u32 %s11568_s20, 4  ;;  %s11427_s10 = int_to_ptr.vmem [resolvable:$false] %s11426_s10 }
0x3954   : > { %v4342_v5 = vpop.xlane.xlu0 %4341  ;;  %p11423_p11 = scmp.ne.s32.totalorder %s9013_s8, %s11422_s21  ;;  %s11428_s1 = scalar_lea.vmem %s11427_s10, 256 }
0x3955   : > { %11328 = vrcp.f32 %v4342_v5  ;;  %p11429_p13 = scmp.lt.s32.totalorder %s9013_s8, %s11427_s10  ;;  %p11430_p1 = scmp.lt.s32.totalorder %s11428_s1, %s11422_s21 }
0x3956   : > { %p11424_p12 = pnand %p11423_p11, %p11815_p5 }
0x3957   : > { %p11431_p2 = por %p11430_p1, %p11429_p13 }
0x3958   : > { %p11425_p0 = pneg %p11424_p12 }
0x395a   : > { %p11432_p4 = pnand %p11431_p2, %p11425_p0 }
0x395b   : > { %v11327_v37 = vpop.eup %11326 }
0x395c   : > { %v3819_v10 = vmul.f32 %v11327_v37, %v12729_v44 }
0x395f   : > { %v11329_v9 = vpop.eup %11328 }
0x3960   : > { %v4344_v13 = vmul.f32 %v11329_v9, %v12733_v49 }
0x399c   : > { %v4079_v6 = vpop.xlane.xlu1 %4078 }
0x399d   : > { %11330 = vrcp.f32 %v4079_v6 }
0x39a0   : > { %v4605_v7 = vpop.xlane.xlu1 %4604 }
0x39a1   : > { %11332 = vrcp.f32 %v4605_v7 }
0x39a7   : > { %v11331_v23 = vpop.eup %11330 }
0x39a8   : > { %v4081_v11 = vmul.f32 %v11331_v23, %v12746_v1 }
0x39aa   : > { %v4082_v14 = vadd.f32 %v4081_v11, %v3819_v10 }
0x39ab   : > { %v11333_v19 = vpop.eup %11332 }
0x39ac   : > { %v4607_v21 = vmul.f32 %v11333_v19, %v12751_v3  ;;  %v4345_v16 = vadd.f32 %v4344_v13, %v4082_v14 }
0x39ae   : > { %v4608_v17 = vadd.f32 %v4607_v21, %v4345_v16 }
0x39b0   : > { %v4609_v22 = vmul.f32 0.25, %v4608_v17 }
0x39b2   : > { %4611 = vst.msk [vmem:[%s1502_s18] sm:$0xff] %vm3808_vm4, %v4609_v22 }
0x39b3   : > { %11435 = shalt.err (!%p11432_p4)
}
0x39b4   : > { %s11436_s14 = scalar_lea.hbm %s12840_s0, 128  ;;  %s11440_s17 = scalar_lea.hbm %s11763_s4, 256 }
0x39b5   : > { %p11437_p3 = scmp.ne.s32.totalorder %s12840_s0, %s11436_s14  ;;  %p11441_p10 = scmp.lt.u32.totalorder %s12840_s0, %s11763_s4 }
0x39b6   : > { %p11442_p9 = scmp.lt.u32.totalorder %s11440_s17, %s11436_s14  ;;  %p11444_p12 = scmp.lt.u32.totalorder %s11436_s14, %s12840_s0 }
0x39b7   : > { %p11438_p7 = pnand %p11437_p3, %p11815_p5 }
0x39b8   : > { %p11443_p11 = por %p11442_p9, %p11441_p10 }
0x39b9   : > { %p11439_p8 = pneg %p11438_p7 }
0x39ba   : > { %p11445_p13 = por %p11444_p12, %p11443_p11 }
0x39bc   : > { %p11446_p0 = pnand %p11445_p13, %p11439_p8 }
0x39be   : > { %11449 = shalt.err (!%p11446_p0)
}
0x39bf   : > { %s12999_s3 = sld [smem:[#allocation43_spill]]  ;;  %s13000_s9 = sld [smem:[#allocation44_spill]] }
0x39c0   : > { %11160 = dma.vmem_to_hbm [thread:$0]  (%p11815_p5), %s9013_s8, 128, %s12840_s0, %s12773_s13  }
0x39c1   : > { %s1488_s19 = scalar_lea.vmem [#allocation2], %s12072_s5  ;;  %s13001_s20 = sand.u32 1, %s11512_s23  }
0x39c2   : > { %s8986_s18 = sshll.u32 %s1488_s19, 4  ;;  %s8953_s10 = scalar_lea.sflag [#allocation3], %s13001_s20  ;;  %s12863_s18 = int_to_ptr.vmem [resolvable:$true] %s8986_s18 }
0x39c3   : > { %s11450_s1 = scalar_lea.vmem %s12863_s18, 128  ;;  %s11569_s5 = smov [#allocation2]  }
0x39c4   : > { %p11451_p1 = scmp.ne.s32.totalorder %s12863_s18, %s11450_s1  ;;  %s11454_s13 = sshll.u32 %s11569_s5, 4  ;;  %s11455_s13 = int_to_ptr.vmem [resolvable:$false] %s11454_s13 }
0x39c5   : > { %v9691_v41 = vld [vmem:[%s12999_s3] ss:$0 sm:$0xff]  ;;  %s12861_s21 = scalar_lea.hbm %s13000_s9, %s12757_s7  ;;  %s11456_s8 = scalar_lea.vmem %s11455_s13, 256 }
0x39c6   : > { %p11452_p2 = pnand %p11451_p1, %p11815_p5  ;;  %p11457_p3 = scmp.lt.s32.totalorder %s12863_s18, %s11455_s13 }
0x39c7   : > { %p11458_p7 = scmp.lt.s32.totalorder %s11456_s8, %s11450_s1 }
0x39c8   : > { %p11453_p4 = pneg %p11452_p2 }
0x39c9   : > { %p11459_p8 = por %p11458_p7, %p11457_p3 }
0x39cb   : > { %p11460_p10 = pnand %p11459_p8, %p11453_p4 }
0x39e3   : > { %v8947_v25 = vpop.f32.mrb[82].mxu0 }
0x39e4   : > { %v8948_v28 = vadd.f32 %v9691_v41, %v8947_v25  ;;  %v10797_v29 = vpop.f32.mrb[83].mxu0 }
0x39e6   : > { %8951 = vst [vmem:[%s1488_s19] sm:$0xff] %v8948_v28 }
0x39e7   : > { %11463 = shalt.err (!%p11460_p10)
}
0x39e8   : > { %s11464_s7 = scalar_lea.hbm %s12861_s21, 128  ;;  %s11468_s0 = scalar_lea.hbm %s13000_s9, 256 }
0x39e9   : > { %p11465_p9 = scmp.ne.s32.totalorder %s12861_s21, %s11464_s7  ;;  %p11469_p13 = scmp.lt.u32.totalorder %s12861_s21, %s13000_s9 }
0x39ea   : > { %p11470_p0 = scmp.lt.u32.totalorder %s11468_s0, %s11464_s7  ;;  %p11472_p2 = scmp.lt.u32.totalorder %s11464_s7, %s12861_s21 }
0x39eb   : > { %p11466_p11 = pnand %p11465_p9, %p11815_p5 }
0x39ec   : > { %p11471_p1 = por %p11470_p0, %p11469_p13 }
0x39ed   : > { %p11467_p12 = pneg %p11466_p11 }
0x39ee   : > { %p11473_p3 = por %p11472_p2, %p11471_p1 }
0x39f0   : > { %p11474_p4 = pnand %p11473_p3, %p11467_p12 }
0x39f2   : > { %11477 = shalt.err (!%p11474_p4)
}
0x39f3   : > { %11158 = dma.vmem_to_hbm [thread:$0]  (%p11815_p5), %s12863_s18, 128, %s12861_s21, %s8953_s10  }
0x39f4 PF: > { %p11184_p7 = scmp.ge.s32.totalorder %s11520_s28, 2  ;;  %s9050_s14 = sand.u32 1, %s11508_s22  }
0x39f5   : > { %s9051_s17 = scalar_lea.sflag [#allocation3], %s9050_s14 }
0x39f6   : > { %p11169_p8 = pnand %p11184_p7, %p11819_p6 }
0x39f8   : > { %11495 = dma.done.wait (!%p11169_p8), %s9051_s17, 128  }
0x39f9   : > { %11497 = vsyncadd (!%p11169_p8), %s9051_s17, 4294967168  ;;  %s13002_s3 = sadd.s32 4294967294, %s11520_s28  }
0x39fa   : > { %s9059_s19 = sand.u32 1, %s13002_s3  }
0x39fb   : > { %s9060_s20 = scalar_lea.sflag [#allocation5], %s9059_s19 }
0x39fc   : > { %11499 = dma.done.wait (!%p11169_p8), %s9060_s20, 256  }
0x39fd   : > { %11501 = vsyncadd (!%p11169_p8), %s9060_s20, 4294967040  ;;  %s9078_s15 = scalar_lea.sflag [#allocation8], %s9059_s19 }
0x39fe   : > { %11503 = dma.done.wait (!%p11169_p8), %s9078_s15, 256  }
0x39ff   : > { %11505 = vsyncadd (!%p11169_p8), %s9078_s15, 4294967040  ;;  %p116_p5 = scmp.ge.s32.totalorder %s11800_s2, 4   ;;  %s13003_s22 = smov %s11512_s23 }
0x3a00   : > { %s13004_s23 = smov %s11516_s26  ;;  %s13005_s26 = smov %s11813_s11 }
0x3a01   : > { %s13006_s28 = smov %s11800_s2  ;;  %118 = sbr.rel (!%p116_p5) target bundleno = 91 (0x5b), region = 443 }
0x3a08   :  { %9092 = vsyncpa [#allocation3], 1 }
0x3a09   :  { %9094 = vsyncpa [#allocation3 + $0x1], 1 }
0x3a0a   :  { %9095 = vsyncpa [#allocation5], 1 }
0x3a0b   :  { %9097 = vsyncpa [#allocation5 + $0x1], 1 }
0x3a0c   :  { %9098 = vsyncpa [#allocation8], 1 }
0x3a0d   :  { %9100 = vsyncpa [#allocation8 + $0x1], 1 }

</bundles_post_ra>
